<compile_context>
chip_gen: v5e
topology: v5e:2x2
jax: 0.10.0
libtpu: 0.0.40
codegen_flags: <defaults>
</compile_context>

<pallas_src>
import jax
import jax.numpy as jnp
from jax.experimental import pallas as pl
from jax.experimental.pallas import tpu as pltpu


def f_ext_content_kernel(x_ref, w1_ref, b1_ref, w2_ref, b2_ref, out_ref, padbuf):
    # x_ref  : (1, H+2, W+2, Cin) f32  zero-padded NHWC input slab for this batch element
    # w1_ref : (9*Cin, C2) bf16        conv1 weights flattened to im2col layout
    # b1_ref : (1, C2) f32
    # w2_ref : (9*C2, C2) bf16         conv2 weights flattened to im2col layout
    # b2_ref : (1, C2) f32
    # out_ref: (1, C2, H*W) f32        NCHW-direct, lane-dense output block
    # padbuf : (H+2, W+2, C2) f32      halo scratch shared by conv2 and the gradient stage
    Cin = x_ref.shape[3]
    C2 = out_ref.shape[1]
    Hp2, Wp2 = padbuf.shape[0], padbuf.shape[1]
    H, W = Hp2 - 2, Wp2 - 2

    def im2col(patch_fn, c):
        cols = [patch_fn(dy, dx).reshape(H * W, c)
                for dy in range(3) for dx in range(3)]
        return jnp.concatenate(cols, axis=-1)            # (H*W, 9*c)

    # ---- conv1: one im2col matmul, K = 9*Cin, bf16 operands, f32 accumulation (MXU) ----
    x = x_ref[0]                                         # (H+2, W+2, Cin)
    lhs1 = im2col(lambda dy, dx: x[dy:dy + H, dx:dx + W, :], Cin).astype(jnp.bfloat16)
    c1 = jnp.maximum(
        jnp.dot(lhs1, w1_ref[...], preferred_element_type=jnp.float32) + b1_ref[...],
        0.0)                                             # (H*W, C2) f32

    # ---- zero only the 1-pixel border of the halo scratch (interior overwritten below) ----
    padbuf[0:1, :, :] = jnp.zeros((1, Wp2, C2), jnp.float32)
    padbuf[H + 1:H + 2, :, :] = jnp.zeros((1, Wp2, C2), jnp.float32)
    padbuf[:, 0:1, :] = jnp.zeros((Hp2, 1, C2), jnp.float32)
    padbuf[:, W + 1:W + 2, :] = jnp.zeros((Hp2, 1, C2), jnp.float32)

    # ---- conv2: stash c1 in the halo scratch, one im2col matmul with K = 9*C2 ----
    padbuf[1:H + 1, 1:W + 1, :] = c1.reshape(H, W, C2)
    lhs2 = im2col(lambda dy, dx: padbuf[dy:dy + H, dx:dx + W, :], C2).astype(jnp.bfloat16)
    c2 = jnp.maximum(
        jnp.dot(lhs2, w2_ref[...], preferred_element_type=jnp.float32) + b2_ref[...],
        0.0)                                             # (H*W, C2) f32

    # ---- Get_gradient_nopadding: central differences, reusing the same halo scratch ----
    padbuf[1:H + 1, 1:W + 1, :] = c2.reshape(H, W, C2)
    gv = padbuf[2:H + 2, 1:W + 1, :] - padbuf[0:H, 1:W + 1, :]   # x[i+1,j] - x[i-1,j]
    gh = padbuf[1:H + 1, 2:W + 2, :] - padbuf[1:H + 1, 0:W, :]   # x[i,j+1] - x[i,j-1]
    grad = jnp.sqrt(gv * gv + gh * gh + 1e-6).reshape(H * W, C2)

    # ---- lane-dense NCHW-direct store: (H*W, C2) -> (C2, H*W) (XLU transpose) ----
    out_ref[0] = grad.T


def f_ext_content(x_nchw, w1, b1, w2, b2):
    """x_nchw: (N, Cin, H, W) f32; w1/w2 in HWIO layout. Returns (N, C2, H, W) f32."""
    N, Cin, H, W = x_nchw.shape
    C2 = w1.shape[-1]

    # Input-side layout prep stays in the wrapper (input is the smallest tensor: Cin=3
    # channels); the output side is written NCHW directly by the kernel (no transpose).
    x_nhwc = jnp.transpose(x_nchw, (0, 2, 3, 1)).astype(jnp.float32)
    x_pad = jnp.pad(x_nhwc, ((0, 0), (1, 1), (1, 1), (0, 0)))      # nn.ZeroPad2d(1)

    w1f = w1.astype(jnp.bfloat16).reshape(9 * Cin, C2)             # im2col weight layout
    w2f = w2.astype(jnp.bfloat16).reshape(9 * C2, C2)
    b1r = b1.reshape(1, C2).astype(jnp.float32)
    b2r = b2.reshape(1, C2).astype(jnp.float32)

    out = pl.pallas_call(
        f_ext_content_kernel,
        out_shape=jax.ShapeDtypeStruct((N, C2, H * W), jnp.float32),
        grid_spec=pltpu.PrefetchScalarGridSpec(
            num_scalar_prefetch=0,
            grid=(N,),
            in_specs=[
                pl.BlockSpec((1, H + 2, W + 2, Cin), lambda n: (n, 0, 0, 0)),
                pl.BlockSpec((9 * Cin, C2), lambda n: (0, 0)),
                pl.BlockSpec((1, C2), lambda n: (0, 0)),
                pl.BlockSpec((9 * C2, C2), lambda n: (0, 0)),
                pl.BlockSpec((1, C2), lambda n: (0, 0)),
            ],
            out_specs=pl.BlockSpec((1, C2, H * W), lambda n: (n, 0, 0)),
            scratch_shapes=[pltpu.VMEM((H + 2, W + 2, C2), jnp.float32)],
        ),
        compiler_params=pltpu.CompilerParams(dimension_semantics=("parallel",)),
    )(x_pad, w1f, b1r, w2f, b2r)

    # (N, C2, H*W) -> (N, C2, H, W): pure metadata reshape, already NCHW row-major.
    return out.reshape(N, C2, H, W)


def ref_forward(x_nchw, w1, b1, w2, b2):
    """Pure-JAX f32 reference (matches the PyTorch F_ext_content forward)."""
    dn = ("NHWC", "HWIO", "NHWC")
    hp = jax.lax.Precision.HIGHEST
    x = jnp.transpose(x_nchw, (0, 2, 3, 1))
    c1 = jax.nn.relu(jax.lax.conv_general_dilated(
        x, w1, (1, 1), ((1, 1), (1, 1)), dimension_numbers=dn, precision=hp) + b1)
    c2 = jax.nn.relu(jax.lax.conv_general_dilated(
        c1, w2, (1, 1), ((1, 1), (1, 1)), dimension_numbers=dn, precision=hp) + b2)
    p = jnp.pad(c2, ((0, 0), (1, 1), (1, 1), (0, 0)))
    gv = p[:, 2:, 1:-1, :] - p[:, :-2, 1:-1, :]
    gh = p[:, 1:-1, 2:, :] - p[:, 1:-1, :-2, :]
    out = jnp.sqrt(gv * gv + gh * gh + 1e-6)
    return jnp.transpose(out, (0, 3, 1, 2))


if __name__ == "__main__":
    # Small shapes consistent with the module: in_channel=3, middle_channel=32.
    N, Cin, H, W = 2, 3, 16, 16
    C2 = 32

    key = jax.random.PRNGKey(0)
    kx, k1, kb1, k2, kb2 = jax.random.split(key, 5)
    x = jax.random.normal(kx, (N, Cin, H, W), dtype=jnp.float32)
    # Deterministic synthetic parameters (HWIO layout), scaled like a fan-in init.
    w1 = jax.random.normal(k1, (3, 3, Cin, C2), dtype=jnp.float32) * 0.2
    b1 = jax.random.normal(kb1, (C2,), dtype=jnp.float32) * 0.05
    w2 = jax.random.normal(k2, (3, 3, C2, C2), dtype=jnp.float32) * 0.1
    b2 = jax.random.normal(kb2, (C2,), dtype=jnp.float32) * 0.05

    out = jax.block_until_ready(f_ext_content(x, w1, b1, w2, b2))
    ref = jax.block_until_ready(ref_forward(x, w1, b1, w2, b2))

    assert out.shape == (N, C2, H, W), out.shape
    max_err = float(jnp.max(jnp.abs(out - ref)))
    # bf16 MXU operands (f32 accumulation) -> relaxed tolerance vs the pure-f32 reference.
    assert jnp.allclose(out, ref, atol=5e-2, rtol=5e-2), max_err

    print("KERNEL_OK")
</pallas_src>

<mosaic_0001>
module attributes {stable_mosaic.version = 11 : i64} {
  func.func @f_ext_content_kernel(%arg0: i32, %arg1: memref<1x18x18x3xf32, #tpu.memory_space<vmem>>, %arg2: memref<27x32xbf16, #tpu.memory_space<vmem>>, %arg3: memref<1x32xf32, #tpu.memory_space<vmem>>, %arg4: memref<288x32xbf16, #tpu.memory_space<vmem>>, %arg5: memref<1x32xf32, #tpu.memory_space<vmem>>, %arg6: memref<1x32x256xf32, #tpu.memory_space<vmem>>, %arg7: memref<18x18x32xf32, #tpu.memory_space<vmem>>) attributes {dimension_semantics = [#tpu.dimension_semantics<parallel>], iteration_bounds = array<i64: 2>, scalar_prefetch = 0 : i64, scratch_operands = 1 : i64, tpu.core_type = #tpu.core_type<tc>, window_params = [{transform_indices = @transform_0, window_bounds = array<i64: 1, 18, 18, 3>}, {pipeline_mode = #tpu.pipeline_mode<synchronous>, transform_indices = @transform_1, window_bounds = array<i64: 27, 32>}, {pipeline_mode = #tpu.pipeline_mode<synchronous>, transform_indices = @transform_2, window_bounds = array<i64: 1, 32>}, {pipeline_mode = #tpu.pipeline_mode<synchronous>, transform_indices = @transform_3, window_bounds = array<i64: 288, 32>}, {pipeline_mode = #tpu.pipeline_mode<synchronous>, transform_indices = @transform_4, window_bounds = array<i64: 1, 32>}, {transform_indices = @transform_5, window_bounds = array<i64: 1, 32, 256>}]} {
    %c0 = arith.constant 0 : index
    %c0_0 = arith.constant 0 : index
    %c0_1 = arith.constant 0 : index
    %c0_2 = arith.constant 0 : index
    %0 = vector.load %arg1[%c0, %c0_0, %c0_1, %c0_2] : memref<1x18x18x3xf32, #tpu.memory_space<vmem>>, vector<1x18x18x3xf32>
    %1 = vector.shape_cast %0 : vector<1x18x18x3xf32> to vector<18x18x3xf32>
    %2 = vector.extract_strided_slice %1 {offsets = [0, 0, 0], sizes = [16, 16, 3], strides = [1, 1, 1]} : vector<18x18x3xf32> to vector<16x16x3xf32>
    %3 = vector.shape_cast %2 : vector<16x16x3xf32> to vector<256x3xf32>
    %4 = vector.extract_strided_slice %1 {offsets = [0, 1, 0], sizes = [16, 16, 3], strides = [1, 1, 1]} : vector<18x18x3xf32> to vector<16x16x3xf32>
    %5 = vector.shape_cast %4 : vector<16x16x3xf32> to vector<256x3xf32>
    %6 = vector.extract_strided_slice %1 {offsets = [0, 2, 0], sizes = [16, 16, 3], strides = [1, 1, 1]} : vector<18x18x3xf32> to vector<16x16x3xf32>
    %7 = vector.shape_cast %6 : vector<16x16x3xf32> to vector<256x3xf32>
    %8 = vector.extract_strided_slice %1 {offsets = [1, 0, 0], sizes = [16, 16, 3], strides = [1, 1, 1]} : vector<18x18x3xf32> to vector<16x16x3xf32>
    %9 = vector.shape_cast %8 : vector<16x16x3xf32> to vector<256x3xf32>
    %10 = vector.extract_strided_slice %1 {offsets = [1, 1, 0], sizes = [16, 16, 3], strides = [1, 1, 1]} : vector<18x18x3xf32> to vector<16x16x3xf32>
    %11 = vector.shape_cast %10 : vector<16x16x3xf32> to vector<256x3xf32>
    %12 = vector.extract_strided_slice %1 {offsets = [1, 2, 0], sizes = [16, 16, 3], strides = [1, 1, 1]} : vector<18x18x3xf32> to vector<16x16x3xf32>
    %13 = vector.shape_cast %12 : vector<16x16x3xf32> to vector<256x3xf32>
    %14 = vector.extract_strided_slice %1 {offsets = [2, 0, 0], sizes = [16, 16, 3], strides = [1, 1, 1]} : vector<18x18x3xf32> to vector<16x16x3xf32>
    %15 = vector.shape_cast %14 : vector<16x16x3xf32> to vector<256x3xf32>
    %16 = vector.extract_strided_slice %1 {offsets = [2, 1, 0], sizes = [16, 16, 3], strides = [1, 1, 1]} : vector<18x18x3xf32> to vector<16x16x3xf32>
    %17 = vector.shape_cast %16 : vector<16x16x3xf32> to vector<256x3xf32>
    %18 = vector.extract_strided_slice %1 {offsets = [2, 2, 0], sizes = [16, 16, 3], strides = [1, 1, 1]} : vector<18x18x3xf32> to vector<16x16x3xf32>
    %19 = vector.shape_cast %18 : vector<16x16x3xf32> to vector<256x3xf32>
    %20 = tpu.concatenate %3, %5, %7, %9, %11, %13, %15, %17, %19 in 1 : vector<256x3xf32>, vector<256x3xf32>, vector<256x3xf32>, vector<256x3xf32>, vector<256x3xf32>, vector<256x3xf32>, vector<256x3xf32>, vector<256x3xf32>, vector<256x3xf32> -> vector<256x27xf32>
    %21 = arith.truncf %20 : vector<256x27xf32> to vector<256x27xbf16>
    %c0_3 = arith.constant 0 : index
    %c0_4 = arith.constant 0 : index
    %22 = vector.load %arg2[%c0_3, %c0_4] : memref<27x32xbf16, #tpu.memory_space<vmem>>, vector<27x32xbf16>
    %cst = arith.constant dense<0.000000e+00> : vector<256x32xf32>
    %23 = tpu.matmul %21, %22, %cst {dimension_numbers = #tpu.dot_dimension_numbers<[1], [0], [0], [1], [0, 0, 1, 1], [], []>} : vector<256x27xbf16>, vector<27x32xbf16>, vector<256x32xf32> -> vector<256x32xf32>
    %c0_5 = arith.constant 0 : index
    %c0_6 = arith.constant 0 : index
    %24 = vector.load %arg3[%c0_5, %c0_6] : memref<1x32xf32, #tpu.memory_space<vmem>>, vector<1x32xf32>
    %25 = vector.broadcast %24 : vector<1x32xf32> to vector<256x32xf32>
    %26 = arith.addf %23, %25 : vector<256x32xf32>
    %cst_7 = arith.constant 0.000000e+00 : f32
    %27 = vector.broadcast %cst_7 : f32 to vector<256x32xf32>
    %28 = arith.maximumf %26, %27 : vector<256x32xf32>
    %cst_8 = arith.constant 0.000000e+00 : f32
    %29 = vector.broadcast %cst_8 : f32 to vector<1x18x32xf32>
    %c0_9 = arith.constant 0 : index
    %c0_10 = arith.constant 0 : index
    %c0_11 = arith.constant 0 : index
    %30 = vector.load %arg7[%c0_9, %c0_10, %c0_11] : memref<18x18x32xf32, #tpu.memory_space<vmem>>, vector<1x18x32xf32>
    tpu.vector_store %arg7[%c0_9, %c0_10, %c0_11], %29 {strides = array<i32>} : memref<18x18x32xf32, #tpu.memory_space<vmem>>, vector<1x18x32xf32>,
    %cst_12 = arith.constant 0.000000e+00 : f32
    %31 = vector.broadcast %cst_12 : f32 to vector<1x18x32xf32>
    %c17 = arith.constant 17 : index
    %c0_13 = arith.constant 0 : index
    %c0_14 = arith.constant 0 : index
    %32 = vector.load %arg7[%c17, %c0_13, %c0_14] : memref<18x18x32xf32, #tpu.memory_space<vmem>>, vector<1x18x32xf32>
    tpu.vector_store %arg7[%c17, %c0_13, %c0_14], %31 {strides = array<i32>} : memref<18x18x32xf32, #tpu.memory_space<vmem>>, vector<1x18x32xf32>,
    %cst_15 = arith.constant 0.000000e+00 : f32
    %33 = vector.broadcast %cst_15 : f32 to vector<18x1x32xf32>
    %c0_16 = arith.constant 0 : index
    %c0_17 = arith.constant 0 : index
    %c0_18 = arith.constant 0 : index
    %34 = vector.load %arg7[%c0_16, %c0_17, %c0_18] : memref<18x18x32xf32, #tpu.memory_space<vmem>>, vector<18x1x32xf32>
    tpu.vector_store %arg7[%c0_16, %c0_17, %c0_18], %33 {strides = array<i32>} : memref<18x18x32xf32, #tpu.memory_space<vmem>>, vector<18x1x32xf32>,
    %cst_19 = arith.constant 0.000000e+00 : f32
    %35 = vector.broadcast %cst_19 : f32 to vector<18x1x32xf32>
    %c0_20 = arith.constant 0 : index
    %c17_21 = arith.constant 17 : index
    %c0_22 = arith.constant 0 : index
    %36 = vector.load %arg7[%c0_20, %c17_21, %c0_22] : memref<18x18x32xf32, #tpu.memory_space<vmem>>, vector<18x1x32xf32>
    tpu.vector_store %arg7[%c0_20, %c17_21, %c0_22], %35 {strides = array<i32>} : memref<18x18x32xf32, #tpu.memory_space<vmem>>, vector<18x1x32xf32>,
    %37 = vector.shape_cast %28 : vector<256x32xf32> to vector<16x16x32xf32>
    %c1 = arith.constant 1 : index
    %c1_23 = arith.constant 1 : index
    %c0_24 = arith.constant 0 : index
    %38 = vector.load %arg7[%c1, %c1_23, %c0_24] : memref<18x18x32xf32, #tpu.memory_space<vmem>>, vector<16x16x32xf32>
    tpu.vector_store %arg7[%c1, %c1_23, %c0_24], %37 {strides = array<i32>} : memref<18x18x32xf32, #tpu.memory_space<vmem>>, vector<16x16x32xf32>,
    %c0_25 = arith.constant 0 : index
    %c0_26 = arith.constant 0 : index
    %c0_27 = arith.constant 0 : index
    %39 = vector.load %arg7[%c0_25, %c0_26, %c0_27] : memref<18x18x32xf32, #tpu.memory_space<vmem>>, vector<16x16x32xf32>
    %40 = vector.shape_cast %39 : vector<16x16x32xf32> to vector<256x32xf32>
    %c0_28 = arith.constant 0 : index
    %c1_29 = arith.constant 1 : index
    %c0_30 = arith.constant 0 : index
    %41 = vector.load %arg7[%c0_28, %c1_29, %c0_30] : memref<18x18x32xf32, #tpu.memory_space<vmem>>, vector<16x16x32xf32>
    %42 = vector.shape_cast %41 : vector<16x16x32xf32> to vector<256x32xf32>
    %c0_31 = arith.constant 0 : index
    %c2 = arith.constant 2 : index
    %c0_32 = arith.constant 0 : index
    %43 = vector.load %arg7[%c0_31, %c2, %c0_32] : memref<18x18x32xf32, #tpu.memory_space<vmem>>, vector<16x16x32xf32>
    %44 = vector.shape_cast %43 : vector<16x16x32xf32> to vector<256x32xf32>
    %c1_33 = arith.constant 1 : index
    %c0_34 = arith.constant 0 : index
    %c0_35 = arith.constant 0 : index
    %45 = vector.load %arg7[%c1_33, %c0_34, %c0_35] : memref<18x18x32xf32, #tpu.memory_space<vmem>>, vector<16x16x32xf32>
    %46 = vector.shape_cast %45 : vector<16x16x32xf32> to vector<256x32xf32>
    %c1_36 = arith.constant 1 : index
    %c1_37 = arith.constant 1 : index
    %c0_38 = arith.constant 0 : index
    %47 = vector.load %arg7[%c1_36, %c1_37, %c0_38] : memref<18x18x32xf32, #tpu.memory_space<vmem>>, vector<16x16x32xf32>
    %48 = vector.shape_cast %47 : vector<16x16x32xf32> to vector<256x32xf32>
    %c1_39 = arith.constant 1 : index
    %c2_40 = arith.constant 2 : index
    %c0_41 = arith.constant 0 : index
    %49 = vector.load %arg7[%c1_39, %c2_40, %c0_41] : memref<18x18x32xf32, #tpu.memory_space<vmem>>, vector<16x16x32xf32>
    %50 = vector.shape_cast %49 : vector<16x16x32xf32> to vector<256x32xf32>
    %c2_42 = arith.constant 2 : index
    %c0_43 = arith.constant 0 : index
    %c0_44 = arith.constant 0 : index
    %51 = vector.load %arg7[%c2_42, %c0_43, %c0_44] : memref<18x18x32xf32, #tpu.memory_space<vmem>>, vector<16x16x32xf32>
    %52 = vector.shape_cast %51 : vector<16x16x32xf32> to vector<256x32xf32>
    %c2_45 = arith.constant 2 : index
    %c1_46 = arith.constant 1 : index
    %c0_47 = arith.constant 0 : index
    %53 = vector.load %arg7[%c2_45, %c1_46, %c0_47] : memref<18x18x32xf32, #tpu.memory_space<vmem>>, vector<16x16x32xf32>
    %54 = vector.shape_cast %53 : vector<16x16x32xf32> to vector<256x32xf32>
    %c2_48 = arith.constant 2 : index
    %c2_49 = arith.constant 2 : index
    %c0_50 = arith.constant 0 : index
    %55 = vector.load %arg7[%c2_48, %c2_49, %c0_50] : memref<18x18x32xf32, #tpu.memory_space<vmem>>, vector<16x16x32xf32>
    %56 = vector.shape_cast %55 : vector<16x16x32xf32> to vector<256x32xf32>
    %57 = tpu.concatenate %40, %42, %44, %46, %48, %50, %52, %54, %56 in 1 : vector<256x32xf32>, vector<256x32xf32>, vector<256x32xf32>, vector<256x32xf32>, vector<256x32xf32>, vector<256x32xf32>, vector<256x32xf32>, vector<256x32xf32>, vector<256x32xf32> -> vector<256x288xf32>
    %58 = arith.truncf %57 : vector<256x288xf32> to vector<256x288xbf16>
    %c0_51 = arith.constant 0 : index
    %c0_52 = arith.constant 0 : index
    %59 = vector.load %arg4[%c0_51, %c0_52] : memref<288x32xbf16, #tpu.memory_space<vmem>>, vector<288x32xbf16>
    %cst_53 = arith.constant dense<0.000000e+00> : vector<256x32xf32>
    %60 = tpu.matmul %58, %59, %cst_53 {dimension_numbers = #tpu.dot_dimension_numbers<[1], [0], [0], [1], [0, 0, 1, 1], [], []>} : vector<256x288xbf16>, vector<288x32xbf16>, vector<256x32xf32> -> vector<256x32xf32>
    %c0_54 = arith.constant 0 : index
    %c0_55 = arith.constant 0 : index
    %61 = vector.load %arg5[%c0_54, %c0_55] : memref<1x32xf32, #tpu.memory_space<vmem>>, vector<1x32xf32>
    %62 = vector.broadcast %61 : vector<1x32xf32> to vector<256x32xf32>
    %63 = arith.addf %60, %62 : vector<256x32xf32>
    %cst_56 = arith.constant 0.000000e+00 : f32
    %64 = vector.broadcast %cst_56 : f32 to vector<256x32xf32>
    %65 = arith.maximumf %63, %64 : vector<256x32xf32>
    %66 = vector.shape_cast %65 : vector<256x32xf32> to vector<16x16x32xf32>
    %c1_57 = arith.constant 1 : index
    %c1_58 = arith.constant 1 : index
    %c0_59 = arith.constant 0 : index
    %67 = vector.load %arg7[%c1_57, %c1_58, %c0_59] : memref<18x18x32xf32, #tpu.memory_space<vmem>>, vector<16x16x32xf32>
    tpu.vector_store %arg7[%c1_57, %c1_58, %c0_59], %66 {strides = array<i32>} : memref<18x18x32xf32, #tpu.memory_space<vmem>>, vector<16x16x32xf32>,
    %c2_60 = arith.constant 2 : index
    %c1_61 = arith.constant 1 : index
    %c0_62 = arith.constant 0 : index
    %68 = vector.load %arg7[%c2_60, %c1_61, %c0_62] : memref<18x18x32xf32, #tpu.memory_space<vmem>>, vector<16x16x32xf32>
    %c0_63 = arith.constant 0 : index
    %c1_64 = arith.constant 1 : index
    %c0_65 = arith.constant 0 : index
    %69 = vector.load %arg7[%c0_63, %c1_64, %c0_65] : memref<18x18x32xf32, #tpu.memory_space<vmem>>, vector<16x16x32xf32>
    %70 = arith.subf %68, %69 : vector<16x16x32xf32>
    %c1_66 = arith.constant 1 : index
    %c2_67 = arith.constant 2 : index
    %c0_68 = arith.constant 0 : index
    %71 = vector.load %arg7[%c1_66, %c2_67, %c0_68] : memref<18x18x32xf32, #tpu.memory_space<vmem>>, vector<16x16x32xf32>
    %c1_69 = arith.constant 1 : index
    %c0_70 = arith.constant 0 : index
    %c0_71 = arith.constant 0 : index
    %72 = vector.load %arg7[%c1_69, %c0_70, %c0_71] : memref<18x18x32xf32, #tpu.memory_space<vmem>>, vector<16x16x32xf32>
    %73 = arith.subf %71, %72 : vector<16x16x32xf32>
    %74 = arith.mulf %70, %70 : vector<16x16x32xf32>
    %75 = arith.mulf %73, %73 : vector<16x16x32xf32>
    %76 = arith.addf %74, %75 : vector<16x16x32xf32>
    %cst_72 = arith.constant 9.99999997E-7 : f32
    %77 = vector.broadcast %cst_72 : f32 to vector<16x16x32xf32>
    %78 = arith.addf %76, %77 : vector<16x16x32xf32>
    %79 = math.sqrt %78 : vector<16x16x32xf32>
    %80 = vector.shape_cast %79 : vector<16x16x32xf32> to vector<256x32xf32>
    %81 = tpu.transpose %80, [1, 0] : vector<256x32xf32> -> vector<32x256xf32>
    %c0_73 = arith.constant 0 : index
    %c0_74 = arith.constant 0 : index
    %c0_75 = arith.constant 0 : index
    %82 = vector.load %arg6[%c0_73, %c0_74, %c0_75] : memref<1x32x256xf32, #tpu.memory_space<vmem>>, vector<1x32x256xf32>
    %83 = vector.shape_cast %82 : vector<1x32x256xf32> to vector<32x256xf32>
    %84 = vector.shape_cast %81 : vector<32x256xf32> to vector<1x32x256xf32>
    tpu.vector_store %arg6[%c0_73, %c0_74, %c0_75], %84 {strides = array<i32>} : memref<1x32x256xf32, #tpu.memory_space<vmem>>, vector<1x32x256xf32>,
    return
  }
  func.func @transform_0(%arg0: i32) -> (i32, i32, i32, i32) {
    %c0_i32 = arith.constant 0 : i32
    %c0_i32_0 = arith.constant 0 : i32
    %c0_i32_1 = arith.constant 0 : i32
    %c0_i32_2 = arith.constant 0 : i32
    return %arg0, %c0_i32, %c0_i32_0, %c0_i32_1 : i32, i32, i32, i32
  }
  func.func @transform_1(%arg0: i32) -> (i32, i32) {
    %c0_i32 = arith.constant 0 : i32
    %c0_i32_0 = arith.constant 0 : i32
    %c0_i32_1 = arith.constant 0 : i32
    return %c0_i32, %c0_i32_0 : i32, i32
  }
  func.func @transform_2(%arg0: i32) -> (i32, i32) {
    %c0_i32 = arith.constant 0 : i32
    %c0_i32_0 = arith.constant 0 : i32
    %c0_i32_1 = arith.constant 0 : i32
    return %c0_i32, %c0_i32_0 : i32, i32
  }
  func.func @transform_3(%arg0: i32) -> (i32, i32) {
    %c0_i32 = arith.constant 0 : i32
    %c0_i32_0 = arith.constant 0 : i32
    %c0_i32_1 = arith.constant 0 : i32
    return %c0_i32, %c0_i32_0 : i32, i32
  }
  func.func @transform_4(%arg0: i32) -> (i32, i32) {
    %c0_i32 = arith.constant 0 : i32
    %c0_i32_0 = arith.constant 0 : i32
    %c0_i32_1 = arith.constant 0 : i32
    return %c0_i32, %c0_i32_0 : i32, i32
  }
  func.func @transform_5(%arg0: i32) -> (i32, i32, i32) {
    %c0_i32 = arith.constant 0 : i32
    %c0_i32_0 = arith.constant 0 : i32
    %c0_i32_1 = arith.constant 0 : i32
    return %arg0, %c0_i32, %c0_i32_0 : i32, i32, i32
  }
}

</mosaic_0001>

<bundles_post_ra>
// kernel: tpu_custom_call.1
= control target key start
LH: loop header
LB: loop body
LE: loop exit
PB: predicated region body
PF: predicated region fallthrough
CT: control target
= control target key end

     0   :  { %10 = vsyncpa [#allocation4], 0  ;;  %s9508_s0 = inlined_call_operand.vmem [shape: f32[2,18,18,3], index: 0, kind: input, shape index: {}]   ;;  %s9509_s1 = inlined_call_operand.vmem [shape: bf16[27,32], index: 1, kind: input, shape index: {}]   ;;  %s9510_s2 = inlined_call_operand.vmem [shape: f32[1,32], index: 2, kind: input, shape index: {}]   ;;  %s9511_s3 = inlined_call_operand.vmem [shape: bf16[288,32], index: 3, kind: input, shape index: {}]   ;;  %s9512_s4 = inlined_call_operand.vmem [shape: f32[1,32], index: 4, kind: input, shape index: {}]   ;;  %s9513_s5 = inlined_call_operand.hbm [shape: f32[2,32,256], index: 5, kind: output, shape index: {}]  }
   0x1   :  { %12 = vsyncpa [#allocation4 + $0x1], 0  ;;  %s6041_s18 = smov 0   ;;  %s6043_s19 = smov 0  }
   0x2   :  { %s6045_s20 = smov 0   ;;  %s6047_s21 = smov 0  }
   0x3 LB: > { %s6062_s22 = sadd.s32 4294967295, %s5994_s21   ;;  %s4516_s23 = sadd.s32 4294967294, %s5994_s21   ;;  %s5994_s21 = sphi %s6047_s21, %s9732_s21   ;;  %s5990_s20 = sphi %s6045_s20, %s9731_s20   ;;  %s5986_s19 = sphi %s6043_s19, %s9730_s19   ;;  %s5982_s18 = sphi %s6041_s18, %s9729_s18  }
   0x4   : > { %s6066_s24 = sadd.s32 1, %s5994_s21   ;;  %s135_s25 = sadd.s32 1, %s5990_s20 }
   0x5   : > { %s132_s26 = ssub.s32 %s5994_s21, %s6066_s24  ;;  %p145_p0 = scmp.ne.s32.totalorder %s5990_s20, %s5986_s19 }
   0x6   : > { %p133_p1 = scmp.eq.s32.totalorder %s132_s26, 0  ;;  %p146_p2 = scmp.eq.s32.totalorder %s6062_s22, 1 }
   0x7   : > { %p151_p3 = scmp.ne.s32.totalorder %s5986_s19, %s5982_s18  ;;  %p152_p4 = scmp.eq.s32.totalorder %s4516_s23, 1 }
   0x8   : > { %s6077_s27 = scalar_select %p133_p1, %s5990_s20, %s135_s25  }
   0x9   : > { %p6079_p5 = por %p146_p2, %p145_p0  ;;  %p6083_p6 = por %p152_p4, %p151_p3 }
   0xa   : > { %p4519_p7 = scmp.ge.s32.totalorder %s5994_s21, 1  ;;  %p190_p8 = scmp.lt.s32.totalorder %s5994_s21, 3 }
   0xc   : > { %p191_p9 = pnand %p4519_p7, %p190_p8 }
   0xe   : > { %194 = sbr.rel (%p191_p9) target bundleno = 1425 (0x591), region = 40 }
  0x13   : > { %p218_p10 = scmp.lt.s32.totalorder %s6062_s22, 1  ;;  %vm326_vm0 = vcmask 1046528   ;;  %s5996_s10 = smov 3   ;;  %vm407_vm1 = vcmask 1045504   ;;  %vm1282_vm2 = vcmask 23552   ;;  %vm1315_vm3 = vcmask 48128  }
  0x14   : > { %s5997_s11 = smov 6   ;;  %s5998_s12 = smov 9   ;;  %vm1348_vm4 = vcmask 72704   ;;  %vm1381_vm5 = vcmask 97280   ;;  %vm1414_vm6 = vcmask 121856   ;;  %vm1447_vm7 = vcmask 146432  }
  0x15   : > { %s219_s30 = scalar_select %p218_p10, %s6062_s22, 1  ;;  %vm1480_vm8 = vcmask 171008   ;;  %vm1630_vm9 = vcmask 1044480   ;;  %vm1513_vm10 = vcmask 195584   ;;  %vm1581_vm11 = vcmask 220160  }
  0x16   : > { %s5999_s13 = smov 12   ;;  %s6000_s14 = smov 15   ;;  %vm1766_vm12 = vcmask 253952   ;;  %vm1757_vm13 = vcmask 261120   ;;  %vm1760_vm14 = vcmask 254976   ;;  %vm2925_vm15 = vcmask 523264  }
  0x17   : > { %s4660_s6 = smul.u32 432, %s219_s30  ;;  %s6001_s15 = smov 18  }
  0x18   : > { %s6002_s16 = smov 21   ;;  %s6003_s17 = smov 24  }
  0x19   : > { %s6094_s9 = scalar_lea.vmem %s9508_s0, %s4660_s6  ;;  %s215_s8 = sand.u32 1, %s5986_s19  }
  0x1a   : > { %v6097_v0 = vld [vmem:[%s6094_s9 + $0x60] sm:$0xff]  ;;  %v6100_v1 = vld [vmem:[%s6094_s9 + $0x68] sm:$0xff]  ;;  %v6103_v2 = vld [vmem:[%s6094_s9 + $0x70] sm:$0x3]  ;;  %s4439_s26 = scalar_lea.sflag [#allocation4], %s215_s8 }
  0x1b   : > { %v347_v3 = vrot.slane %v6097_v0, 1  ;;  %v348_v4 = vrot.slane %v6100_v1, 1  ;;  %v350_v5 = vrot.slane %v6103_v2, 1  ;;  %v6109_v6 = vld [vmem:[%s6094_s9 + $0x30] sm:$0xff]  ;;  %v6112_v7 = vld [vmem:[%s6094_s9 + $0x38] sm:$0xff]  ;;  %v6120_v11 = vld [vmem:[%s6094_s9] sm:$0xff] }
  0x1c   : > { %v6115_v8 = vld [vmem:[%s6094_s9 + $0x40] sm:$0x3]  ;;  %v337_v9 = vrot.slane %v6109_v6, 1  ;;  %v338_v10 = vrot.slane %v6112_v7, 1  ;;  %v6123_v12 = vld [vmem:[%s6094_s9 + $0x8] sm:$0xff]  ;;  %v6132_v17 = vld [vmem:[%s6094_s9 + $0x78] sm:$0xff] }
  0x1d   : > { %v349_v13 = vsel %vm326_vm0, %v347_v3, %v348_v4  ;;  %v351_v14 = vsel %vm326_vm0, %v348_v4, %v350_v5  ;;  %v340_v15 = vrot.slane %v6115_v8, 1  ;;  %v6129_v16 = vld [vmem:[%s6094_s9 + $0x10] sm:$0x3]  ;;  %v6135_v18 = vld [vmem:[%s6094_s9 + $0x80] sm:$0xff]  ;;  %v327_v21 = vrot.slane %v6120_v11, 1  ;;  %v6146_v24 = vld [vmem:[%s6094_s9 + $0x48] sm:$0xff] }
  0x1e   : > { %v6137_v19 = vpack.i.bf16 %v351_v14, %v349_v13  ;;  %v339_v20 = vsel %vm326_vm0, %v337_v9, %v338_v10  ;;  %v328_v22 = vrot.slane %v6123_v12, 1  ;;  %v6143_v23 = vld [vmem:[%s6094_s9 + $0x88] sm:$0x3]  ;;  %v6149_v25 = vld [vmem:[%s6094_s9 + $0x50] sm:$0xff]  ;;  %v330_v27 = vrot.slane %v6129_v16, 1  ;;  %v6158_v30 = vld [vmem:[%s6094_s9 + $0x18] sm:$0xff] }
  0x1f   : > { %v341_v26 = vsel %vm326_vm0, %v338_v10, %v340_v15  ;;  %v352_v28 = vrot.slane %v6132_v17, 1  ;;  %v6155_v29 = vld [vmem:[%s6094_s9 + $0x58] sm:$0x3]  ;;  %v353_v33 = vrot.slane %v6135_v18, 1  ;;  %v355_v34 = vrot.slane %v6143_v23, 1  ;;  %v6168_v35 = vld [vmem:[%s6094_s9 + $0x20] sm:$0xff] }
  0x20   : > { %9584 = vst [vmem:[#allocation6_spill] sm:$0xff] %v6137_v19  ;;  %4736 = vrot.lane.b32.xlu2 %v6137_v19, %s5996_s10  ;;  %v6162_v31 = vpack.i.bf16 %v341_v26, %v339_v20  ;;  %v329_v32 = vsel %vm326_vm0, %v327_v21, %v328_v22  ;;  %v6171_v36 = vld [vmem:[%s6094_s9 + $0x28] sm:$0x3]  ;;  %v331_v37 = vsel %vm326_vm0, %v328_v22, %v330_v27  ;;  %v342_v38 = vrot.slane %v6146_v24, 1  ;;  %v6178_v41 = vld [vmem:[%s6094_s9 + $0xc0] sm:$0xff]  ;;  %v6204_v56 = vld [vmem:[%s6094_s9 + $0xb0] sm:$0xff] }
  0x21   : > { %v343_v39 = vrot.slane %v6149_v25, 1  ;;  %v345_v40 = vrot.slane %v6155_v29, 1  ;;  %v6181_v42 = vld [vmem:[%s6094_s9 + $0xc8] sm:$0xff]  ;;  %v4715_v43 = vpack.i.bf16 %v331_v37, %v329_v32  ;;  %v354_v44 = vsel %vm326_vm0, %v352_v28, %v353_v33  ;;  %v6189_v47 = vld [vmem:[%s6094_s9 + $0xd0] sm:$0x3]  ;;  %v6218_v63 = vld [vmem:[%s6094_s9 + $0x98] sm:$0xff] }
  0x22   : > { %9585 = vst [vmem:[#allocation7_spill] sm:$0xff] %v6162_v31  ;;  %4726 = vrot.lane.b32.xlu1 %v6162_v31, %s5996_s10  ;;  %v356_v45 = vsel %vm326_vm0, %v353_v33, %v355_v34  ;;  %v332_v46 = vrot.slane %v6158_v30, 1  ;;  %v333_v50 = vrot.slane %v6168_v35, 1  ;;  %v6195_v51 = vld [vmem:[%s6094_s9 + $0xa8] sm:$0xff]  ;;  %v335_v53 = vrot.slane %v6171_v36, 1  ;;  %v6215_v62 = vld [vmem:[%s6094_s9 + $0x90] sm:$0xff] }
  0x23   : > { %v344_v48 = vsel %vm326_vm0, %v342_v38, %v343_v39  ;;  %v346_v49 = vsel %vm326_vm0, %v343_v39, %v345_v40  ;;  %4716 = vrot.lane.b32.xlu0 %v4715_v43, %s5996_s10  ;;  %v6198_v52 = vpack.i.bf16 %v356_v45, %v354_v44  ;;  %v367_v54 = vrot.slane %v6178_v41, 1  ;;  %v6207_v57 = vld [vmem:[%s6094_s9 + $0xb8] sm:$0x3]  ;;  %v6221_v3 = vld [vmem:[%s6094_s9 + $0xa0] sm:$0x3]  ;;  %v6236_v22 = vld [vmem:[%s6094_s9 + $0x108] sm:$0xff] }
  0x24   : > { %v368_v55 = vrot.slane %v6181_v42, 1  ;;  %v334_v58 = vsel %vm326_vm0, %v332_v46, %v333_v50  ;;  %v370_v59 = vrot.slane %v6189_v47, 1  ;;  %v6211_v60 = vpack.i.bf16 %v346_v49, %v344_v48  ;;  %v6239_v26 = vld [vmem:[%s6094_s9 + $0x110] sm:$0xff]  ;;  %v6244_v27 = vld [vmem:[%s6094_s9 + $0x118] sm:$0x3]  ;;  %v6272_v49 = vld [vmem:[%s6094_s9 + $0xe0] sm:$0xff] }
  0x25   : > { %9586 = vst [vmem:[#allocation8_spill] sm:$0xff] %v6198_v52  ;;  %v336_v61 = vsel %vm326_vm0, %v333_v50, %v335_v53  ;;  %v362_v4 = vrot.slane %v6195_v51, 1  ;;  %v363_v5 = vrot.slane %v6204_v56, 1  ;;  %v365_v9 = vrot.slane %v6207_v57, 1  ;;  %v6255_v38 = vld [vmem:[%s6094_s9 + $0xf0] sm:$0xff]  ;;  %v6258_v39 = vld [vmem:[%s6094_s9 + $0xf8] sm:$0xff] }
  0x26   : > { %v6228_v10 = vpack.i.bf16 %v336_v61, %v334_v58  ;;  %v369_v13 = vsel %vm326_vm0, %v367_v54, %v368_v55  ;;  %v371_v14 = vsel %vm326_vm0, %v368_v55, %v370_v59  ;;  %v357_v15 = vrot.slane %v6215_v62, 1  ;;  %v6261_v40 = vld [vmem:[%s6094_s9 + $0x100] sm:$0x3]  ;;  %v6269_v48 = vld [vmem:[%s6094_s9 + $0xd8] sm:$0xff]  ;;  %v6275_v50 = vld [vmem:[%s6094_s9 + $0xe8] sm:$0x3] }
  0x27   : > { %v358_v20 = vrot.slane %v6218_v63, 1  ;;  %v360_v21 = vrot.slane %v6221_v3, 1  ;;  %v364_v28 = vsel %vm326_vm0, %v362_v4, %v363_v5  ;;  %v366_v32 = vsel %vm326_vm0, %v363_v5, %v365_v9 }
  0x28   : > { %4741 = vrot.lane.b32.xlu2 %v6198_v52, %s5996_s10  ;;  %9587 = vst [vmem:[#allocation9_spill] sm:$0xff] %v6228_v10  ;;  %v6250_v33 = vpack.i.bf16 %v371_v14, %v369_v13  ;;  %v382_v34 = vrot.slane %v6236_v22, 1  ;;  %v383_v37 = vrot.slane %v6239_v26, 1  ;;  %v385_v45 = vrot.slane %v6244_v27, 1  ;;  %v6290_v13 = vld [vmem:[%s6094_s9 + $0x150] sm:$0xff]  ;;  %v6293_v14 = vld [vmem:[%s6094_s9 + $0x158] sm:$0xff] }
  0x29   : > { %v359_v43 = vsel %vm326_vm0, %v357_v15, %v358_v20  ;;  %v361_v44 = vsel %vm326_vm0, %v358_v20, %v360_v21  ;;  %v6266_v46 = vpack.i.bf16 %v366_v32, %v364_v28  ;;  %v377_v53 = vrot.slane %v6255_v38, 1  ;;  %v6298_v15 = vld [vmem:[%s6094_s9 + $0x160] sm:$0x3] }
  0x2a   : > { %4731 = vrot.lane.b32.xlu1 %v6211_v60, %s5996_s10  ;;  %9588 = vst [vmem:[#allocation10_spill] sm:$0xff] %v6250_v33  ;;  %v378_v54 = vrot.slane %v6258_v39, 1  ;;  %v380_v55 = vrot.slane %v6261_v40, 1  ;;  %v6282_v58 = vpack.i.bf16 %v361_v44, %v359_v43  ;;  %v384_v59 = vsel %vm326_vm0, %v382_v34, %v383_v37  ;;  %v6312_v43 = vld [vmem:[%s6094_s9 + $0x140] sm:$0xff]  ;;  %v6315_v44 = vld [vmem:[%s6094_s9 + $0x148] sm:$0x3] }
  0x2b   : > { %4721 = vrot.lane.b32.xlu0 %v6228_v10, %s5996_s10  ;;  %9589 = vst [vmem:[#allocation11_spill] sm:$0xff] %v6266_v46  ;;  %v386_v61 = vsel %vm326_vm0, %v383_v37, %v385_v45  ;;  %v372_v4 = vrot.slane %v6269_v48, 1  ;;  %v373_v5 = vrot.slane %v6272_v49, 1  ;;  %v375_v9 = vrot.slane %v6275_v50, 1  ;;  %v6309_v37 = vld [vmem:[%s6094_s9 + $0x138] sm:$0xff] }
  0x2c   : > { %9590 = vst [vmem:[#allocation12_spill] sm:$0xff] %v6282_v58  ;;  %v379_v20 = vsel %vm326_vm0, %v377_v53, %v378_v54  ;;  %v381_v21 = vsel %vm326_vm0, %v378_v54, %v380_v55  ;;  %v6304_v28 = vpack.i.bf16 %v386_v61, %v384_v59  ;;  %v397_v32 = vrot.slane %v6290_v13, 1  ;;  %v6323_v59 = vld [vmem:[%s6094_s9 + $0x120] sm:$0xff]  ;;  %v6326_v61 = vld [vmem:[%s6094_s9 + $0x128] sm:$0xff] }
  0x2d   : > { %v398_v34 = vrot.slane %v6293_v14, 1  ;;  %v374_v45 = vsel %vm326_vm0, %v372_v4, %v373_v5  ;;  %v376_v53 = vsel %vm326_vm0, %v373_v5, %v375_v9  ;;  %v400_v54 = vrot.slane %v6298_v15, 1 }
  0x2e   : > { %9591 = vst [vmem:[#allocation13_spill] sm:$0xff] %v6304_v28  ;;  %v6320_v55 = vpack.i.bf16 %v381_v21, %v379_v20  ;;  %v393_v19 = vrot.slane %v6312_v43, 1  ;;  %v395_v52 = vrot.slane %v6315_v44, 1  ;;  %v6336_v4 = vpack.i.bf16 %v376_v53, %v374_v45 }
  0x2f   : > { %v399_v5 = vsel %vm326_vm0, %v397_v32, %v398_v34  ;;  %v401_v9 = vsel %vm326_vm0, %v398_v34, %v400_v54  ;;  %v387_v20 = vrot.slane %v6323_v59, 1  ;;  %v388_v21 = vrot.slane %v6326_v61, 1 }
  0x30   : > { %4756 = vrot.lane.b32.xlu2 %v6250_v33, %s5996_s10  ;;  %9592 = vst [vmem:[#allocation14_spill] sm:$0xff] %v6320_v55  ;;  %v392_v33 = vrot.slane %v6309_v37, 1  ;;  %v396_v45 = vsel %vm326_vm0, %v393_v19, %v395_v52  ;;  %v6349_v32 = vpack.i.bf16 %v401_v9, %v399_v5  ;;  %v413_v34 = vrot.slane %v6158_v30, 2  ;;  %v6365_v52 = vld [vmem:[%s6094_s9 + $0x178] sm:$0x3] }
  0x31   : > { %9593 = vst [vmem:[#allocation15_spill] sm:$0xff] %v6336_v4  ;;  %v414_v53 = vrot.slane %v6168_v35, 2  ;;  %v389_v54 = vsel %vm326_vm0, %v387_v20, %v388_v21  ;;  %v411_v5 = vrot.slane %v6129_v16, 2  ;;  %v408_v9 = vrot.slane %v6120_v11, 2 }
  0x32   : > { %4751 = vrot.lane.b32.xlu1 %v6266_v46, %s5996_s10  ;;  %v6329_v46 = vld [vmem:[%s6094_s9 + $0x130] sm:$0x3]  ;;  %v431_v16 = vrot.slane %v6103_v2, 2  ;;  %v426_v2 = vrot.slane %v6155_v29, 2 }
  0x33   : > { %4746 = vrot.lane.b32.xlu0 %v6282_v58, %s5996_s10  ;;  %v390_v58 = vrot.slane %v6329_v46, 1 }
  0x35   : > { %v391_v10 = vsel %vm326_vm0, %v388_v21, %v390_v58 }
  0x36   : > { %v6372_v58 = vpack.i.bf16 %v391_v10, %v389_v54  ;;  %v429_v54 = vrot.slane %v6100_v1, 2 }
  0x38   : > { %4771 = vrot.lane.b32.xlu2 %v6304_v28, %s5996_s10  ;;  %v394_v28 = vsel %vm326_vm0, %v392_v33, %v393_v19  ;;  %v6359_v33 = vld [vmem:[%s6094_s9 + $0x168] sm:$0xff]  ;;  %v6362_v19 = vld [vmem:[%s6094_s9 + $0x170] sm:$0xff] }
  0x39   : > { %v6356_v31 = vpack.i.bf16 %v396_v45, %v394_v28  ;;  %v402_v20 = vrot.slane %v6359_v33, 1  ;;  %v403_v21 = vrot.slane %v6362_v19, 1  ;;  %v405_v45 = vrot.slane %v6365_v52, 1 }
  0x3a   : > { %4766 = vrot.lane.b32.xlu1 %v6320_v55, %s5996_s10  ;;  %v416_v55 = vrot.slane %v6171_v36, 2  ;;  %v415_v36 = vsel %vm407_vm1, %v413_v34, %v414_v53 }
  0x3b   : > { %4761 = vrot.lane.b32.xlu0 %v6336_v4, %s5996_s10  ;;  %9594 = vst [vmem:[#allocation16_spill] sm:$0xff] %v6356_v31  ;;  %v409_v4 = vrot.slane %v6123_v12, 2  ;;  %v406_v34 = vsel %vm326_vm0, %v403_v21, %v405_v45  ;;  %v419_v45 = vrot.slane %v6112_v7, 2 }
  0x3c   : > { %v417_v28 = vsel %vm407_vm1, %v414_v53, %v416_v55  ;;  %v404_v55 = vsel %vm326_vm0, %v402_v20, %v403_v21  ;;  %v428_v53 = vrot.slane %v6097_v0, 2  ;;  %v432_v20 = vsel %vm407_vm1, %v429_v54, %v431_v16 }
  0x3d   : > { %v410_v11 = vsel %vm407_vm1, %v408_v9, %v409_v4  ;;  %v412_v12 = vsel %vm407_vm1, %v409_v4, %v411_v5  ;;  %v6386_v10 = vpack.i.bf16 %v417_v28, %v415_v36  ;;  %v423_v9 = vrot.slane %v6146_v24, 2 }
  0x3e   : > { %v424_v4 = vrot.slane %v6149_v25, 2  ;;  %v421_v5 = vrot.slane %v6115_v8, 2  ;;  %v6398_v36 = vpack.i.bf16 %v406_v34, %v404_v55  ;;  %v430_v28 = vsel %vm407_vm1, %v428_v53, %v429_v54 }
  0x3f   : > { %v418_v21 = vrot.slane %v6109_v6, 2  ;;  %v444_v34 = vrot.slane %v6204_v56, 2  ;;  %v446_v53 = vrot.slane %v6207_v57, 2  ;;  %v438_v54 = vrot.slane %v6215_v62, 2 }
  0x40   : > { %4786 = vrot.lane.b32.xlu2 %v6349_v32, %s5996_s10  ;;  %v425_v29 = vsel %vm407_vm1, %v423_v9, %v424_v4  ;;  %v427_v8 = vsel %vm407_vm1, %v424_v4, %v426_v2  ;;  %v422_v16 = vsel %vm407_vm1, %v419_v45, %v421_v5  ;;  %v439_v9 = vrot.slane %v6218_v63, 2 }
  0x41   : > { %v420_v55 = vsel %vm407_vm1, %v418_v21, %v419_v45  ;;  %v441_v4 = vrot.slane %v6221_v3, 2  ;;  %v434_v57 = vrot.slane %v6135_v18, 2  ;;  %v436_v21 = vrot.slane %v6143_v23, 2 }
  0x42   : > { %4781 = vrot.lane.b32.xlu1 %v6356_v31, %s5996_s10  ;;  %v4795_v31 = vpack.i.bf16 %v412_v12, %v410_v11  ;;  %v6409_v11 = vpack.i.bf16 %v432_v20, %v430_v28  ;;  %v443_v12 = vrot.slane %v6195_v51, 2  ;;  %v6423_v2 = vpack.i.bf16 %v422_v16, %v420_v55 }
  0x43   : > { %4776 = vrot.lane.b32.xlu0 %v6372_v58, %s5996_s10  ;;  %v433_v28 = vrot.slane %v6132_v17, 2  ;;  %v447_v20 = vsel %vm407_vm1, %v444_v34, %v446_v53  ;;  %v440_v3 = vsel %vm407_vm1, %v438_v54, %v439_v9  ;;  %v442_v45 = vsel %vm407_vm1, %v439_v9, %v441_v4 }
  0x44   : > { %v445_v5 = vsel %vm407_vm1, %v443_v12, %v444_v34  ;;  %v459_v12 = vrot.slane %v6258_v39, 2  ;;  %v437_v23 = vsel %vm407_vm1, %v434_v57, %v436_v21  ;;  %v461_v16 = vrot.slane %v6261_v40, 2 }
  0x45   : > { %v435_v55 = vsel %vm407_vm1, %v433_v28, %v434_v57  ;;  %v6443_v34 = vpack.i.bf16 %v442_v45, %v440_v3  ;;  %v453_v53 = vrot.slane %v6269_v48, 2  ;;  %v454_v54 = vrot.slane %v6272_v49, 2 }
  0x46   : > { %v456_v9 = vrot.slane %v6275_v50, 2  ;;  %v6450_v4 = vpack.i.bf16 %v437_v23, %v435_v55  ;;  %v462_v28 = vsel %vm407_vm1, %v459_v12, %v461_v16  ;;  %v449_v40 = vrot.slane %v6181_v42, 2 }
  0x47   : > { %v451_v57 = vrot.slane %v6189_v47, 2  ;;  %v455_v50 = vsel %vm407_vm1, %v453_v53, %v454_v54  ;;  %v473_v45 = vrot.slane %v6309_v37, 2  ;;  %v476_v55 = vrot.slane %v6315_v44, 2 }
  0x48   : > { %4801 = vrot.lane.b32.xlu2 %v6386_v10, %s5997_s11  ;;  %v457_v21 = vsel %vm407_vm1, %v454_v54, %v456_v9  ;;  %v468_v16 = vrot.slane %v6323_v59, 2  ;;  %v469_v53 = vrot.slane %v6326_v61, 2  ;;  %v471_v54 = vrot.slane %v6329_v46, 2 }
  0x49   : > { %v452_v47 = vsel %vm407_vm1, %v449_v40, %v451_v57  ;;  %v6470_v23 = vpack.i.bf16 %v457_v21, %v455_v50  ;;  %v464_v44 = vrot.slane %v6239_v26, 2 }
  0x4a   : > { %4796 = vrot.lane.b32.xlu1 %v4795_v31, %s5997_s11  ;;  %v6416_v31 = vpack.i.bf16 %v427_v8, %v425_v29  ;;  %v6436_v29 = vpack.i.bf16 %v447_v20, %v445_v5  ;;  %v458_v8 = vrot.slane %v6255_v38, 2  ;;  %v448_v20 = vrot.slane %v6178_v41, 2 }
  0x4b   : > { %4791 = vrot.lane.b32.xlu0 %v6398_v36, %s5996_s10  ;;  %v470_v46 = vsel %vm407_vm1, %v468_v16, %v469_v53  ;;  %v472_v57 = vsel %vm407_vm1, %v469_v53, %v471_v54  ;;  %v478_v16 = vrot.slane %v6290_v13, 2  ;;  %v479_v53 = vrot.slane %v6293_v14, 2 }
  0x4c   : > { %v460_v5 = vsel %vm407_vm1, %v458_v8, %v459_v12  ;;  %v474_v8 = vrot.slane %v6312_v43, 2  ;;  %v450_v12 = vsel %vm407_vm1, %v448_v20, %v449_v40  ;;  %v463_v20 = vrot.slane %v6236_v22, 2 }
  0x4d   : > { %v6463_v3 = vpack.i.bf16 %v462_v28, %v460_v5  ;;  %v6477_v9 = vpack.i.bf16 %v452_v47, %v450_v12  ;;  %v466_v40 = vrot.slane %v6244_v27, 2  ;;  %v483_v27 = vrot.slane %v6359_v33, 2 }
  0x4e   : > { %v475_v5 = vsel %vm407_vm1, %v473_v45, %v474_v8  ;;  %v477_v28 = vsel %vm407_vm1, %v474_v8, %v476_v55  ;;  %v465_v21 = vsel %vm407_vm1, %v463_v20, %v464_v44  ;;  %v6494_v8 = vpack.i.bf16 %v472_v57, %v470_v46 }
  0x4f   : > { %v6490_v50 = vpack.i.bf16 %v477_v28, %v475_v5  ;;  %v467_v45 = vsel %vm407_vm1, %v464_v44, %v466_v40  ;;  %v484_v12 = vrot.slane %v6362_v19, 2  ;;  %v486_v47 = vrot.slane %v6365_v52, 2 }
  0x50   : > { %4816 = vrot.lane.b32.xlu2 %v6409_v11, %s5997_s11  ;;  %v6501_v55 = vpack.i.bf16 %v467_v45, %v465_v21  ;;  %v481_v54 = vrot.slane %v6298_v15, 2  ;;  %v4875_v52 = vpack.i.bf16 %v6168_v35, %v6158_v30  ;;  %v480_v20 = vsel %vm407_vm1, %v478_v16, %v479_v53  ;;  %v9604_v45 = vld [vmem:[#allocation12_spill] sm:$0xff] }
  0x51   : > { %v485_v5 = vsel %vm407_vm1, %v483_v27, %v484_v12  ;;  %v487_v28 = vsel %vm407_vm1, %v484_v12, %v486_v47  ;;  %v6527_v30 = vpack.i.bf16 %v6100_v1, %v6097_v0  ;;  %v6531_v35 = vpack.i.bf16 %v6149_v25, %v6146_v24  ;;  %v9605_v27 = vld [vmem:[#allocation8_spill] sm:$0xff]  ;;  %v9607_v47 = vld [vmem:[#allocation6_spill] sm:$0xff] }
  0x52   : > { %4811 = vrot.lane.b32.xlu1 %v6416_v31, %s5997_s11  ;;  %v482_v44 = vsel %vm407_vm1, %v479_v53, %v481_v54  ;;  %v6516_v40 = vpack.i.bf16 %v487_v28, %v485_v5  ;;  %v6537_v46 = vpack.i.bf16 %v6112_v7, %v6109_v6  ;;  %v6547_v0 = vpack.i.bf16 %v6204_v56, %v6195_v51  ;;  %v9610_v54 = vld [vmem:[#allocation15_spill] sm:$0xff]  ;;  %v9611_v5 = vld [vmem:[#allocation10_spill] sm:$0xff] }
  0x53   : > { %4806 = vrot.lane.b32.xlu0 %v6423_v2, %s5997_s11  ;;  %v6519_v15 = vpack.i.bf16 %v482_v44, %v480_v20  ;;  %v6551_v1 = vpack.i.bf16 %v6218_v63, %v6215_v62  ;;  %v6557_v6 = vpack.i.bf16 %v6135_v18, %v6132_v17  ;;  %v6567_v24 = vpack.i.bf16 %v6258_v39, %v6255_v38  ;;  %v6603_v62 = vld [vmem:[%s6094_s9 + $0x188] sm:$0xff] }
  0x54   : > { %v6571_v25 = vpack.i.bf16 %v6272_v49, %v6269_v48  ;;  %v6577_v17 = vpack.i.bf16 %v6181_v42, %v6178_v41  ;;  %v6587_v51 = vpack.i.bf16 %v6312_v43, %v6309_v37  ;;  %v6591_v56 = vpack.i.bf16 %v6326_v61, %v6323_v59  ;;  %v6600_v42 = vld [vmem:[%s6094_s9 + $0x180] sm:$0xff]  ;;  %v9599_v59 = vld [vmem:[#allocation7_spill] sm:$0xff] }
  0x55   : > { %v6597_v41 = vpack.i.bf16 %v6239_v26, %v6236_v22  ;;  %v6615_v39 = vpack.i.bf16 %v6603_v62, %v6600_v42  ;;  %v6621_v26 = vpack.i.bf16 %v6362_v19, %v6359_v33  ;;  %v6627_v48 = vpack.i.bf16 %v6293_v14, %v6290_v13  ;;  %v9601_v14 = vld [vmem:[#allocation9_spill] sm:$0xff] }
  0x58   : > { %4831 = vrot.lane.b32.xlu2 %v6436_v29, %s5997_s11 }
  0x5a   : > { %4826 = vrot.lane.b32.xlu1 %v6443_v34, %s5997_s11 }
  0x5b   : > { %4821 = vrot.lane.b32.xlu0 %v6450_v4, %s5997_s11 }
  0x60   : > { %4846 = vrot.lane.b32.xlu2 %v6463_v3, %s5997_s11 }
  0x62   : > { %4841 = vrot.lane.b32.xlu1 %v6470_v23, %s5997_s11 }
  0x63   : > { %4836 = vrot.lane.b32.xlu0 %v6477_v9, %s5997_s11 }
  0x68   : > { %4861 = vrot.lane.b32.xlu2 %v6490_v50, %s5997_s11 }
  0x6a   : > { %4856 = vrot.lane.b32.xlu1 %v6494_v8, %s5997_s11 }
  0x6b   : > { %4851 = vrot.lane.b32.xlu0 %v6501_v55, %s5997_s11 }
  0x70   : > { %4876 = vrot.lane.b32.xlu2 %v4875_v52, %s5998_s12  ;;  %v9613_v52 = vld [vmem:[#allocation11_spill] sm:$0xff] }
  0x72   : > { %4871 = vrot.lane.b32.xlu1 %v6516_v40, %s5997_s11 }
  0x73   : > { %4866 = vrot.lane.b32.xlu0 %v6519_v15, %s5997_s11  ;;  %s4659_s11 = sshll.u32 %s6062_s22, 6 }
  0x78   : > { %4891 = vrot.lane.b32.xlu2 %v6527_v30, %s5998_s12 }
  0x7a   : > { %4886 = vrot.lane.b32.xlu1 %v6531_v35, %s5998_s12  ;;  %v6541_v57 = vpop.permute.xlu2 %4736 }
  0x7b   : > { %4881 = vrot.lane.b32.xlu0 %v6537_v46, %s5998_s12 }
  0x80   : > { %4906 = vrot.lane.b32.xlu2 %v6547_v0, %s5998_s12 }
  0x82   : > { %4901 = vrot.lane.b32.xlu1 %v6551_v1, %s5998_s12  ;;  %v6561_v7 = vpop.permute.xlu2 %4741 }
  0x83   : > { %4896 = vrot.lane.b32.xlu0 %v6557_v6, %s5998_s12 }
  0x88   : > { %4921 = vrot.lane.b32.xlu2 %v6567_v24, %s5998_s12 }
  0x8a   : > { %4916 = vrot.lane.b32.xlu1 %v6571_v25, %s5998_s12  ;;  %v6581_v18 = vpop.permute.xlu2 %4756 }
  0x8b   : > { %4911 = vrot.lane.b32.xlu0 %v6577_v17, %s5998_s12 }
  0x90   : > { %4936 = vrot.lane.b32.xlu2 %v6587_v51, %s5998_s12 }
  0x92   : > { %4931 = vrot.lane.b32.xlu1 %v6591_v56, %s5998_s12  ;;  %v6607_v63 = vpop.permute.xlu2 %4771 }
  0x93   : > { %4926 = vrot.lane.b32.xlu0 %v6597_v41, %s5998_s12 }
  0x94   : > { %v6611_v38 = vpop.permute.xlu1 %4726 }
  0x95   : > { %9595 = vst [vmem:[#allocation17_spill] sm:$0xff] %v6611_v38  ;;  %v6617_v22 = vpop.permute.xlu0 %4716  ;;  %v274_v38 = vld [vmem:[%s6094_s9 + $0x190] sm:$0x3] }
  0x96   : > { %9596 = vst [vmem:[#allocation18_spill] sm:$0xff] %v6617_v22 }
  0x98   : > { %4951 = vrot.lane.b32.xlu2 %v6615_v39, %s5998_s12 }
  0x9a   : > { %4946 = vrot.lane.b32.xlu1 %v6621_v26, %s5998_s12  ;;  %v6631_v49 = vpop.permute.xlu2 %4786 }
  0x9b   : > { %4941 = vrot.lane.b32.xlu0 %v6627_v48, %s5998_s12 }
  0x9c   : > { %v6635_v37 = vpop.permute.xlu1 %4731 }
  0x9d   : > { %9597 = vst [vmem:[#allocation19_spill] sm:$0xff] %v6635_v37  ;;  %v6637_v43 = vpop.permute.xlu0 %4721 }
  0x9e   : > { %9598 = vst [vmem:[#allocation20_spill] sm:$0xff] %v6637_v43  ;;  %v492_v43 = vrot.slane %v6603_v62, 1 }
  0xa0   : > { %4966 = vrot.lane.b32.xlu2 %v6211_v60, %s5999_s13 }
  0xa2   : > { %4961 = vrot.lane.b32.xlu1 %v9599_v59, %s5999_s13  ;;  %v6643_v13 = vpop.permute.xlu2 %4801 }
  0xa3   : > { %9600 = vst [vmem:[#allocation7_spill] sm:$0xff] %v6643_v13  ;;  %4956 = vrot.lane.b32.xlu0 %v9601_v14, %s5999_s13  ;;  %v9616_v14 = vld [vmem:[#allocation13_spill] sm:$0xff]  ;;  %v491_v13 = vrot.slane %v6600_v42, 1 }
  0xa4   : > { %v6647_v61 = vpop.permute.xlu1 %4751 }
  0xa5   : > { %9602 = vst [vmem:[#allocation9_spill] sm:$0xff] %v6647_v61  ;;  %v6649_v21 = vpop.permute.xlu0 %4746 }
  0xa6   : > { %9603 = vst [vmem:[#allocation21_spill] sm:$0xff] %v6649_v21  ;;  %v9618_v21 = vld [vmem:[#allocation14_spill] sm:$0xff] }
  0xa8   : > { %4981 = vrot.lane.b32.xlu2 %v9604_v45, %s5999_s13 }
  0xaa   : > { %4976 = vrot.lane.b32.xlu1 %v9605_v27, %s5999_s13  ;;  %v6655_v12 = vpop.permute.xlu2 %4816 }
  0xab   : > { %9606 = vst [vmem:[#allocation12_spill] sm:$0xff] %v6655_v12  ;;  %4971 = vrot.lane.b32.xlu0 %v9607_v47, %s5999_s13 }
  0xac   : > { %v6659_v16 = vpop.permute.xlu1 %4766 }
  0xad   : > { %9608 = vst [vmem:[#allocation8_spill] sm:$0xff] %v6659_v16  ;;  %v6661_v53 = vpop.permute.xlu0 %4761  ;;  %v493_v16 = vsel %vm326_vm0, %v491_v13, %v492_v43 }
  0xae   : > { %9609 = vst [vmem:[#allocation6_spill] sm:$0xff] %v6661_v53  ;;  %v9621_v53 = vld [vmem:[#allocation16_spill] sm:$0xff] }
  0xb0   : > { %4996 = vrot.lane.b32.xlu2 %v9610_v54, %s5999_s13 }
  0xb2   : > { %4991 = vrot.lane.b32.xlu1 %v9611_v5, %s5999_s13  ;;  %v6667_v28 = vpop.permute.xlu2 %4831 }
  0xb3   : > { %9612 = vst [vmem:[#allocation15_spill] sm:$0xff] %v6667_v28  ;;  %4986 = vrot.lane.b32.xlu0 %v9613_v52, %s5999_s13 }
  0xb4   : > { %v6671_v20 = vpop.permute.xlu1 %4781 }
  0xb5   : > { %9614 = vst [vmem:[#allocation10_spill] sm:$0xff] %v6671_v20  ;;  %v6673_v44 = vpop.permute.xlu0 %4776 }
  0xb6   : > { %9615 = vst [vmem:[#allocation11_spill] sm:$0xff] %v6673_v44  ;;  %v494_v44 = vrot.slane %v274_v38, 1 }
  0xb8   : > { %5011 = vrot.lane.b32.xlu2 %v6372_v58, %s5999_s13  ;;  %v495_v22 = vsel %vm326_vm0, %v492_v43, %v494_v44 }
  0xb9   : > { %v6706_v20 = vpack.i.bf16 %v495_v22, %v493_v16 }
  0xba   : > { %5006 = vrot.lane.b32.xlu1 %v9616_v14, %s5999_s13  ;;  %v6679_v61 = vpop.permute.xlu2 %4846 }
  0xbb   : > { %9617 = vst [vmem:[#allocation13_spill] sm:$0xff] %v6679_v61  ;;  %5001 = vrot.lane.b32.xlu0 %v9618_v21, %s5999_s13 }
  0xbc   : > { %v6683_v37 = vpop.permute.xlu1 %4796 }
  0xbd   : > { %9619 = vst [vmem:[#allocation14_spill] sm:$0xff] %v6683_v37  ;;  %v6685_v28 = vpop.permute.xlu0 %4791 }
  0xc0   : > { %5026 = vrot.lane.b32.xlu2 %v6398_v36, %s5999_s13 }
  0xc2   : > { %5021 = vrot.lane.b32.xlu1 %v6349_v32, %s5999_s13  ;;  %v6694_v61 = vpop.permute.xlu2 %4861 }
  0xc3   : > { %9620 = vst [vmem:[#allocation22_spill] sm:$0xff] %v6694_v61  ;;  %5016 = vrot.lane.b32.xlu0 %v9621_v53, %s5999_s13 }
  0xc4   : > { %v6698_v37 = vpop.permute.xlu1 %4811 }
  0xc5   : > { %9622 = vst [vmem:[#allocation16_spill] sm:$0xff] %v6698_v37  ;;  %v6702_v12 = vpop.permute.xlu0 %4806 }
  0xc6   : > { %9623 = vst [vmem:[#allocation23_spill] sm:$0xff] %v6702_v12 }
  0xc8   : > { %5041 = vrot.lane.b32.xlu2 %v6423_v2, %s6000_s14 }
  0xca   : > { %5036 = vrot.lane.b32.xlu1 %v6386_v10, %s6000_s14  ;;  %v6710_v61 = vpop.permute.xlu2 %4876 }
  0xcb   : > { %9624 = vst [vmem:[#allocation24_spill] sm:$0xff] %v6710_v61  ;;  %5031 = vrot.lane.b32.xlu0 %v6706_v20, %s5999_s13  ;;  %v496_v61 = vrot.slane %v6600_v42, 2 }
  0xcc   : > { %v6714_v37 = vpop.permute.xlu1 %4826 }
  0xcd   : > { %9625 = vst [vmem:[#allocation25_spill] sm:$0xff] %v6714_v37  ;;  %v6716_v13 = vpop.permute.xlu0 %4821 }
  0xd0   : > { %5056 = vrot.lane.b32.xlu2 %v6450_v4, %s6000_s14 }
  0xd2   : > { %5051 = vrot.lane.b32.xlu1 %v6409_v11, %s6000_s14  ;;  %v6722_v22 = vpop.permute.xlu2 %4891 }
  0xd3   : > { %9626 = vst [vmem:[#allocation26_spill] sm:$0xff] %v6722_v22  ;;  %5046 = vrot.lane.b32.xlu0 %v6416_v31, %s6000_s14 }
  0xd4   : > { %v6726_v10 = vpop.permute.xlu1 %4841 }
  0xd5   : > { %9627 = vst [vmem:[#allocation27_spill] sm:$0xff] %v6726_v10  ;;  %v6728_v43 = vpop.permute.xlu0 %4836  ;;  %v499_v10 = vrot.slane %v274_v38, 2 }
  0xd6   : > { %9628 = vst [vmem:[#allocation28_spill] sm:$0xff] %v6728_v43 }
  0xd8   : > { %5071 = vrot.lane.b32.xlu2 %v6477_v9, %s6000_s14 }
  0xda   : > { %5066 = vrot.lane.b32.xlu1 %v6436_v29, %s6000_s14  ;;  %v6734_v16 = vpop.permute.xlu2 %4906 }
  0xdb   : > { %9629 = vst [vmem:[#allocation29_spill] sm:$0xff] %v6734_v16  ;;  %5061 = vrot.lane.b32.xlu0 %v6443_v34, %s6000_s14 }
  0xdc   : > { %v6738_v44 = vpop.permute.xlu1 %4856 }
  0xdd   : > { %9630 = vst [vmem:[#allocation30_spill] sm:$0xff] %v6738_v44  ;;  %v6740_v37 = vpop.permute.xlu0 %4851  ;;  %v497_v44 = vrot.slane %v6603_v62, 2 }
  0xde   : > { %9631 = vst [vmem:[#allocation31_spill] sm:$0xff] %v6740_v37 }
  0xdf   : > { %v500_v43 = vsel %vm407_vm1, %v497_v44, %v499_v10 }
  0xe0   : > { %5086 = vrot.lane.b32.xlu2 %v6501_v55, %s6000_s14 }
  0xe2   : > { %5081 = vrot.lane.b32.xlu1 %v6463_v3, %s6000_s14  ;;  %v6746_v22 = vpop.permute.xlu2 %4921 }
  0xe3   : > { %9632 = vst [vmem:[#allocation32_spill] sm:$0xff] %v6746_v22  ;;  %5076 = vrot.lane.b32.xlu0 %v6470_v23, %s6000_s14  ;;  %v498_v22 = vsel %vm407_vm1, %v496_v61, %v497_v44 }
  0xe4   : > { %v6750_v12 = vpop.permute.xlu1 %4871  ;;  %v6770_v62 = vpack.i.bf16 %v500_v43, %v498_v22 }
  0xe5   : > { %v6752_v16 = vpop.permute.xlu0 %4866 }
  0xe6   : > { %9633 = vst [vmem:[#allocation33_spill] sm:$0xff] %v6752_v16 }
  0xe8   : > { %5101 = vrot.lane.b32.xlu2 %v6519_v15, %s6000_s14 }
  0xea   : > { %5096 = vrot.lane.b32.xlu1 %v6490_v50, %s6000_s14  ;;  %v6760_v37 = vpop.permute.xlu2 %4936 }
  0xeb   : > { %5091 = vrot.lane.b32.xlu0 %v6494_v8, %s6000_s14 }
  0xec   : > { %v6766_v16 = vpop.permute.xlu1 %4886 }
  0xed   : > { %9634 = vst [vmem:[#allocation34_spill] sm:$0xff] %v6766_v16  ;;  %v6768_v42 = vpop.permute.xlu0 %4881 }
  0xee   : > { %9635 = vst [vmem:[#allocation35_spill] sm:$0xff] %v6768_v42  ;;  %v9658_v42 = vld [vmem:[#allocation33_spill] sm:$0xff] }
  0xf0   : > { %5116 = vrot.lane.b32.xlu2 %v6537_v46, %s6001_s15 }
  0xf2   : > { %5111 = vrot.lane.b32.xlu1 %v6770_v62, %s6000_s14  ;;  %v6776_v38 = vpop.permute.xlu2 %4951 }
  0xf3   : > { %5106 = vrot.lane.b32.xlu0 %v6516_v40, %s6000_s14  ;;  %s6006_s14 = smov 32  }
  0xf4   : > { %v6780_v61 = vpop.permute.xlu1 %4901 }
  0xf5   : > { %v6782_v10 = vpop.permute.xlu0 %4896 }
  0xf8   : > { %5131 = vrot.lane.b32.xlu2 %v6557_v6, %s6001_s15 }
  0xfa   : > { %5126 = vrot.lane.b32.xlu1 %v6527_v30, %s6001_s15  ;;  %v6788_v22 = vpop.permute.xlu2 %4966 }
  0xfb   : > { %9636 = vst [vmem:[#allocation36_spill] sm:$0xff] %v6788_v22  ;;  %5121 = vrot.lane.b32.xlu0 %v6531_v35, %s6001_s15 }
  0xfc   : > { %v6792_v46 = vpop.permute.xlu1 %4916 }
  0xfd   : > { %v6794_v43 = vpop.permute.xlu0 %4911 }
  0xfe   : > { %9637 = vst [vmem:[#allocation37_spill] sm:$0xff] %v6794_v43  ;;  %v6826_v43 = vld [vmem:[%s6094_s9 + $0x1a0] sm:$0xff] }
 0x100   : > { %5146 = vrot.lane.b32.xlu2 %v6577_v17, %s6001_s15 }
 0x102   : > { %5141 = vrot.lane.b32.xlu1 %v6547_v0, %s6001_s15  ;;  %v6800_v6 = vpop.permute.xlu2 %4981 }
 0x103   : > { %5136 = vrot.lane.b32.xlu0 %v6551_v1, %s6001_s15  ;;  %v6823_v1 = vld [vmem:[%s6094_s9 + $0x198] sm:$0xff] }
 0x104   : > { %v6804_v30 = vpop.permute.xlu1 %4931 }
 0x105   : > { %v6806_v35 = vpop.permute.xlu0 %4926 }
 0x108   : > { %5161 = vrot.lane.b32.xlu2 %v6597_v41, %s6001_s15  ;;  %v5190_v41 = vpack.i.bf16 %v6826_v43, %v6823_v1 }
 0x10a   : > { %5156 = vrot.lane.b32.xlu1 %v6567_v24, %s6001_s15  ;;  %v6812_v44 = vpop.permute.xlu2 %4996 }
 0x10b   : > { %5151 = vrot.lane.b32.xlu0 %v6571_v25, %s6001_s15 }
 0x10c   : > { %v6816_v0 = vpop.permute.xlu1 %4946 }
 0x10d   : > { %v6818_v17 = vpop.permute.xlu0 %4941 }
 0x110   : > { %5176 = vrot.lane.b32.xlu2 %v6627_v48, %s6001_s15 }
 0x112   : > { %5171 = vrot.lane.b32.xlu1 %v6587_v51, %s6001_s15  ;;  %v6830_v24 = vpop.permute.xlu2 %5011 }
 0x113   : > { %5166 = vrot.lane.b32.xlu0 %v6591_v56, %s6001_s15 }
 0x114   : > { %v6834_v25 = vpop.permute.xlu1 %4961 }
 0x115   : > { %9638 = vst [vmem:[#allocation38_spill] sm:$0xff] %v6834_v25  ;;  %v6838_v22 = vpop.permute.xlu0 %4956 }
 0x118   : > { %5191 = vrot.lane.b32.xlu2 %v5190_v41, %s6001_s15 }
 0x11a   : > { %5186 = vrot.lane.b32.xlu1 %v6615_v39, %s6001_s15  ;;  %v6843_v48 = vpop.permute.xlu2 %5026 }
 0x11b   : > { %5181 = vrot.lane.b32.xlu0 %v6621_v26, %s6001_s15  ;;  %s6007_s15 = smov 64  }
 0x11c   : > { %v6847_v51 = vpop.permute.xlu1 %4976 }
 0x11d   : > { %v6849_v56 = vpop.permute.xlu0 %4971 }
 0x11e   : > { %9639 = vst [vmem:[#allocation39_spill] sm:$0xff] %v6849_v56 }
 0x120   : > { %5206 = vrot.lane.b32.xlu2 %v9607_v47, %s6002_s16 }
 0x122   : > { %5201 = vrot.lane.b32.xlu1 %v6211_v60, %s6002_s16  ;;  %v6855_v41 = vpop.permute.xlu2 %5041 }
 0x123   : > { %9640 = vst [vmem:[#allocation40_spill] sm:$0xff] %v6855_v41  ;;  %5196 = vrot.lane.b32.xlu0 %v9599_v59, %s6002_s16 }
 0x124   : > { %v6859_v39 = vpop.permute.xlu1 %4991 }
 0x125   : > { %9641 = vst [vmem:[#allocation41_spill] sm:$0xff] %v6859_v39  ;;  %v6861_v16 = vpop.permute.xlu0 %4986 }
 0x126   : > { %9642 = vst [vmem:[#allocation42_spill] sm:$0xff] %v6861_v16 }
 0x128   : > { %5221 = vrot.lane.b32.xlu2 %v9613_v52, %s6002_s16 }
 0x12a   : > { %5216 = vrot.lane.b32.xlu1 %v9604_v45, %s6002_s16  ;;  %v6867_v26 = vpop.permute.xlu2 %5056 }
 0x12b   : > { %5211 = vrot.lane.b32.xlu0 %v9605_v27, %s6002_s16 }
 0x12c   : > { %v6871_v60 = vpop.permute.xlu1 %5006 }
 0x12d   : > { %v6873_v47 = vpop.permute.xlu0 %5001 }
 0x130   : > { %5236 = vrot.lane.b32.xlu2 %v9618_v21, %s6002_s16 }
 0x132   : > { %5231 = vrot.lane.b32.xlu1 %v9610_v54, %s6002_s16  ;;  %v6879_v59 = vpop.permute.xlu2 %5071 }
 0x133   : > { %9643 = vst [vmem:[#allocation43_spill] sm:$0xff] %v6879_v59  ;;  %5226 = vrot.lane.b32.xlu0 %v9611_v5, %s6002_s16  ;;  %v277_v5 = vld [vmem:[%s6094_s9 + $0x1a8] sm:$0x3]  ;;  %v505_v59 = vrot.slane %v6826_v43, 1 }
 0x134   : > { %v6883_v45 = vpop.permute.xlu1 %5021  ;;  %v507_v39 = vrot.slane %v277_v5, 1 }
 0x135   : > { %v6885_v52 = vpop.permute.xlu0 %5016 }
 0x136   : > { %v508_v56 = vsel %vm326_vm0, %v505_v59, %v507_v39  ;;  %v509_v39 = vrot.slane %v6823_v1, 2 }
 0x138   : > { %5251 = vrot.lane.b32.xlu2 %v9621_v53, %s6002_s16  ;;  %v504_v53 = vrot.slane %v6823_v1, 1 }
 0x13a   : > { %5246 = vrot.lane.b32.xlu1 %v6372_v58, %s6002_s16  ;;  %v6891_v27 = vpop.permute.xlu2 %5086  ;;  %v506_v16 = vsel %vm326_vm0, %v504_v53, %v505_v59  ;;  %v510_v53 = vrot.slane %v6826_v43, 2  ;;  %vm2958_vm0 = vcmask 785408  }
 0x13b   : > { %5241 = vrot.lane.b32.xlu0 %v9616_v14, %s6002_s16  ;;  %v5270_v41 = vpack.i.bf16 %v508_v56, %v506_v16 }
 0x13c   : > { %v6895_v21 = vpop.permute.xlu1 %5036  ;;  %v511_v16 = vsel %vm407_vm1, %v509_v39, %v510_v53  ;;  %v4743_v39 = vunpack.i.l.bf16 %v6561_v7 }
 0x13d   : > { %v6897_v54 = vpop.permute.xlu0 %5031 }
 0x140   : > { %5266 = vrot.lane.b32.xlu2 %v6706_v20, %s6002_s16 }
 0x142   : > { %5261 = vrot.lane.b32.xlu1 %v6398_v36, %s6002_s16  ;;  %v6906_v58 = vpop.permute.xlu2 %5101 }
 0x143   : > { %5256 = vrot.lane.b32.xlu0 %v6349_v32, %s6002_s16 }
 0x144   : > { %v6910_v14 = vpop.permute.xlu1 %5051 }
 0x145   : > { %9644 = vst [vmem:[#allocation44_spill] sm:$0xff] %v6910_v14  ;;  %v6914_v20 = vpop.permute.xlu0 %5046  ;;  %v5033_v14 = vunpack.i.l.bf16 %v6897_v54 }
 0x146   : > { %9645 = vst [vmem:[#allocation45_spill] sm:$0xff] %v6914_v20  ;;  %v4788_v20 = vunpack.i.l.bf16 %v6631_v49 }
 0x148   : > { %5281 = vrot.lane.b32.xlu2 %v6416_v31, %s6003_s17  ;;  %v512_v31 = vrot.slane %v277_v5, 2 }
 0x14a   : > { %5276 = vrot.lane.b32.xlu1 %v6423_v2, %s6003_s17  ;;  %v6920_v36 = vpop.permute.xlu2 %5116  ;;  %v513_v56 = vsel %vm407_vm1, %v510_v53, %v512_v31  ;;  %v4794_v53 = vunpack.i.h.bf16 %v6685_v28  ;;  %v4793_v31 = vunpack.i.l.bf16 %v6685_v28  ;;  %v4953_v28 = vunpack.i.l.bf16 %v6776_v38 }
 0x14b   : > { %9646 = vst [vmem:[#allocation46_spill] sm:$0xff] %v6920_v36  ;;  %5271 = vrot.lane.b32.xlu0 %v5270_v41, %s6002_s16  ;;  %v5350_v41 = vpack.i.bf16 %v513_v56, %v511_v16  ;;  %v4758_v16 = vunpack.i.l.bf16 %v6581_v18  ;;  %v4874_v56 = vunpack.i.h.bf16 %v6750_v12  ;;  %s6008_s16 = smov 96  }
 0x14c   : > { %v6923_v32 = vpop.permute.xlu1 %5066 }
 0x14d   : > { %9647 = vst [vmem:[#allocation47_spill] sm:$0xff] %v6923_v32  ;;  %v6927_v59 = vpop.permute.xlu0 %5061 }
 0x150   : > { %5296 = vrot.lane.b32.xlu2 %v6443_v34, %s6003_s17 }
 0x152   : > { %5291 = vrot.lane.b32.xlu1 %v6450_v4, %s6003_s17  ;;  %v6934_v2 = vpop.permute.xlu2 %5131 }
 0x153   : > { %9648 = vst [vmem:[#allocation48_spill] sm:$0xff] %v6934_v2  ;;  %5286 = vrot.lane.b32.xlu0 %v6409_v11, %s6003_s17  ;;  %v1314_v2 = vsel %vm1282_vm2, %v6362_v19, %v4794_v53  ;;  %v9652_v53 = vld [vmem:[#allocation10_spill] sm:$0xff] }
 0x154   : > { %v6939_v43 = vpop.permute.xlu1 %5081 }
 0x155   : > { %v6941_v1 = vpop.permute.xlu0 %5076 }
 0x158   : > { %5311 = vrot.lane.b32.xlu2 %v6470_v23, %s6003_s17 }
 0x15a   : > { %5306 = vrot.lane.b32.xlu1 %v6477_v9, %s6003_s17  ;;  %v6947_v34 = vpop.permute.xlu2 %5146 }
 0x15b   : > { %9649 = vst [vmem:[#allocation49_spill] sm:$0xff] %v6947_v34  ;;  %5301 = vrot.lane.b32.xlu0 %v6436_v29, %s6003_s17  ;;  %v4954_v34 = vunpack.i.h.bf16 %v6776_v38 }
 0x15c   : > { %v6951_v4 = vpop.permute.xlu1 %5096 }
 0x15d   : > { %v6953_v5 = vpop.permute.xlu0 %5091 }
 0x160   : > { %5326 = vrot.lane.b32.xlu2 %v6494_v8, %s6003_s17  ;;  %v4774_v8 = vunpack.i.h.bf16 %v6607_v63 }
 0x162   : > { %5321 = vrot.lane.b32.xlu1 %v6501_v55, %s6003_s17  ;;  %v6959_v11 = vpop.permute.xlu2 %5161  ;;  %v4873_v55 = vunpack.i.l.bf16 %v6750_v12  ;;  %v1313_v12 = vsel %vm1282_vm2, %v6359_v33, %v4793_v31  ;;  %v4783_v31 = vunpack.i.l.bf16 %v9652_v53 }
 0x163   : > { %5316 = vrot.lane.b32.xlu0 %v6463_v3, %s6003_s17  ;;  %v4744_v3 = vunpack.i.h.bf16 %v6561_v7  ;;  %v4773_v7 = vunpack.i.l.bf16 %v6607_v63 }
 0x164   : > { %v5112_v23 = vpop.permute.xlu1 %5111  ;;  %v1346_v38 = vsel %vm1315_vm3, %v1313_v12, %v4873_v55 }
 0x165   : > { %v6963_v9 = vpop.permute.xlu0 %5106  ;;  %v5113_v63 = vunpack.i.l.bf16 %v5112_v23  ;;  %v1379_v25 = vsel %vm1348_vm4, %v1346_v38, %v4953_v28 }
 0x166   : > { %v1412_v33 = vsel %vm1381_vm5, %v1379_v25, %v5033_v14  ;;  %v5901_v25 = vld [vmem:[%s6094_s9 + $0x80] sm:$0xff] }
 0x167   : > { %v1294_v14 = vsel %vm1282_vm2, %v5901_v25, %v4744_v3  ;;  %v5905_v3 = vld [vmem:[%s6094_s9 + $0x110] sm:$0xff] }
 0x168   : > { %5341 = vrot.lane.b32.xlu2 %v6516_v40, %s6003_s17 }
 0x16a   : > { %5336 = vrot.lane.b32.xlu1 %v6519_v15, %s6003_s17  ;;  %v6969_v29 = vpop.permute.xlu2 %5176  ;;  %v4759_v15 = vunpack.i.h.bf16 %v6581_v18  ;;  %v5034_v18 = vunpack.i.h.bf16 %v6897_v54 }
 0x16b   : > { %5331 = vrot.lane.b32.xlu0 %v6490_v50, %s6003_s17  ;;  %v4789_v50 = vunpack.i.h.bf16 %v6631_v49 }
 0x16c   : > { %v6979_v40 = vpop.permute.xlu1 %5126 }
 0x16d   : > { %9650 = vst [vmem:[#allocation50_spill] sm:$0xff] %v6979_v40  ;;  %v6989_v32 = vpop.permute.xlu0 %5121  ;;  %v5114_v40 = vunpack.i.h.bf16 %v5112_v23 }
 0x16e   : > { %9651 = vst [vmem:[#allocation51_spill] sm:$0xff] %v6989_v32  ;;  %v1347_v32 = vsel %vm1315_vm3, %v1314_v2, %v4874_v56  ;;  %v4784_v2 = vunpack.i.h.bf16 %v9652_v53 }
 0x16f   : > { %v1380_v19 = vsel %vm1348_vm4, %v1347_v32, %v4954_v34  ;;  %v1445_v32 = vsel %vm1414_vm6, %v1412_v33, %v5113_v63  ;;  %v5904_v63 = vld [vmem:[%s6094_s9 + $0xc0] sm:$0xff]  ;;  %v5906_v33 = vld [vmem:[%s6094_s9 + $0x108] sm:$0xff] }
 0x170   : > { %v1413_v49 = vsel %vm1381_vm5, %v1380_v19, %v5034_v18  ;;  %v1299_v38 = vsel %vm1282_vm2, %v5904_v63, %v4758_v16  ;;  %v1306_v19 = vsel %vm1282_vm2, %v5905_v3, %v4774_v8  ;;  %v5909_v16 = vld [vmem:[%s6094_s9 + $0x140] sm:$0xff]  ;;  %v4824_v8 = vunpack.i.h.bf16 %v6716_v13 }
 0x171   : > { %v1446_v34 = vsel %vm1414_vm6, %v1413_v49, %v5114_v40  ;;  %v5902_v40 = vld [vmem:[%s6094_s9 + $0x78] sm:$0xff]  ;;  %v1305_v49 = vsel %vm1282_vm2, %v5906_v33, %v4773_v7  ;;  %v1310_v25 = vsel %vm1282_vm2, %v5909_v16, %v4784_v2  ;;  %v9656_v63 = vld [vmem:[#allocation28_spill] sm:$0xff]  ;;  %v4903_v2 = vunpack.i.l.bf16 %v6780_v61 }
 0x172   : > { %5351 = vrot.lane.b32.xlu1 %v5350_v41, %s6003_s17  ;;  %v5192_v54 = vpop.permute.xlu2 %5191  ;;  %v1293_v18 = vsel %vm1282_vm2, %v5902_v40, %v4743_v39  ;;  %v9655_v39 = vld [vmem:[#allocation22_spill] sm:$0xff]  ;;  %v4823_v40 = vunpack.i.l.bf16 %v6716_v13  ;;  %v4839_v3 = vunpack.i.h.bf16 %v9656_v63  ;;  %v9657_v33 = vld [vmem:[#allocation31_spill] sm:$0xff] }
 0x173   : > { %v5194_v23 = vunpack.i.h.bf16 %v5192_v54  ;;  %v5193_v55 = vunpack.i.l.bf16 %v5192_v54  ;;  %5346 = vrot.lane.b32.xlu0 %v6770_v62, %s6003_s17  ;;  %v5903_v62 = vld [vmem:[%s6094_s9 + $0xc8] sm:$0xff]  ;;  %v4864_v53 = vunpack.i.h.bf16 %v9655_v39  ;;  %s4450_s17 = scalar_lea.hbm %s9513_s5, %s4659_s11 }
 0x174   : > { %v7011_v41 = vpop.permute.xlu1 %5141  ;;  %v1300_v12 = vsel %vm1282_vm2, %v5903_v62, %v4759_v15  ;;  %v5908_v15 = vld [vmem:[%s6094_s9 + $0x150] sm:$0xff]  ;;  %v5910_v62 = vld [vmem:[%s6094_s9 + $0x138] sm:$0xff]  ;;  %s4453_s25 = sshll.u32 %s4450_s17, 4  ;;  %s4454_s25 = int_to_ptr.hbm [resolvable:$true] %s4453_s25 }
 0x175   : > { %v7017_v56 = vsel %vm1447_vm7, %v1445_v32, %v5193_v55  ;;  %v7020_v28 = vsel %vm1447_vm7, %v1446_v34, %v5194_v23  ;;  %v7030_v54 = vpop.permute.xlu0 %5136  ;;  %v5907_v23 = vld [vmem:[%s6094_s9 + $0x158] sm:$0xff]  ;;  %v4863_v32 = vunpack.i.l.bf16 %v9655_v39  ;;  %v1311_v34 = vsel %vm1282_vm2, %v5908_v15, %v4788_v20  ;;  %s5946_s30 = sshra.s32 %s4454_s25, 4  ;;  %s5947_s30 = int_to_ptr.hbm [resolvable:$true] %s5946_s30 }
 0x176   : > { %9653 = vst [vmem:[#allocation10_spill] sm:$0xff] %v7017_v56  ;;  %v1312_v55 = vsel %vm1282_vm2, %v5907_v23, %v4789_v50  ;;  %v1309_v7 = vsel %vm1282_vm2, %v5910_v62, %v4783_v31  ;;  %v4838_v50 = vunpack.i.l.bf16 %v9656_v63  ;;  %v4854_v23 = vunpack.i.h.bf16 %v9657_v33  ;;  %s5948_s6 = scalar_lea.hbm %s5947_s30, 64  ;;  %p5953_p0 = scmp.lt.s32.totalorder %s5947_s30, %s9513_s5 }
 0x177   : > { %9654 = vst [vmem:[#allocation52_spill] sm:$0xff] %v7020_v28  ;;  %v4853_v39 = vunpack.i.l.bf16 %v9657_v33  ;;  %v4869_v20 = vunpack.i.h.bf16 %v9658_v42  ;;  %v4868_v15 = vunpack.i.l.bf16 %v9658_v42  ;;  %v1343_v13 = vsel %vm1315_vm3, %v1310_v25, %v4864_v53  ;;  %p5949_p11 = scmp.ne.s32.totalorder %s5947_s30, %s5948_s6 }
 0x178   : > { %v1342_v31 = vsel %vm1315_vm3, %v1309_v7, %v4863_v32  ;;  %v4904_v62 = vunpack.i.h.bf16 %v6780_v61  ;;  %v4918_v63 = vunpack.i.l.bf16 %v6792_v46  ;;  %v1327_v28 = vsel %vm1315_vm3, %v1294_v14, %v4824_v8 }
 0x179   : > { %v1326_v33 = vsel %vm1315_vm3, %v1293_v18, %v4823_v40  ;;  %v4919_v56 = vunpack.i.h.bf16 %v6792_v46  ;;  %v4983_v42 = vunpack.i.l.bf16 %v6800_v6  ;;  %v1332_v53 = vsel %vm1315_vm3, %v1299_v38, %v4838_v50  ;;  %p5950_p12 = pnand %p5949_p11, %p6079_p5 }
 0x17a   : > { %v7053_v16 = vpop.permute.xlu2 %5206  ;;  %v7068_v32 = vsel %vm1315_vm3, %v1306_v19, %v4854_v23  ;;  %v4984_v61 = vunpack.i.h.bf16 %v6800_v6  ;;  %v7072_v25 = vsel %vm1315_vm3, %v1305_v49, %v4853_v39  ;;  %v1345_v14 = vsel %vm1315_vm3, %v1312_v55, %v4869_v20 }
 0x17b   : > { %9659 = vst [vmem:[#allocation22_spill] sm:$0xff] %v7053_v16  ;;  %v1333_v16 = vsel %vm1315_vm3, %v1300_v12, %v4839_v3  ;;  %v1344_v46 = vsel %vm1315_vm3, %v1311_v34, %v4868_v15  ;;  %v1359_v18 = vsel %vm1348_vm4, %v1326_v33, %v4903_v2  ;;  %v1360_v12 = vsel %vm1348_vm4, %v1327_v28, %v4904_v62  ;;  %p5951_p13 = pneg %p5950_p12 }
 0x17c   : > { %v7063_v36 = vpop.permute.xlu1 %5156  ;;  %v1365_v38 = vsel %vm1348_vm4, %v1332_v53, %v4918_v63  ;;  %v5064_v19 = vunpack.i.h.bf16 %v6927_v59  ;;  %v5063_v40 = vunpack.i.l.bf16 %v6927_v59  ;;  %v1366_v6 = vsel %vm1348_vm4, %v1333_v16, %v4919_v56 }
 0x17d   : > { %v7077_v8 = vpop.permute.xlu0 %5151  ;;  %v1392_v49 = vsel %vm1381_vm5, %v1359_v18, %v4983_v42  ;;  %v5144_v55 = vunpack.i.h.bf16 %v7011_v41  ;;  %v5143_v34 = vunpack.i.l.bf16 %v7011_v41  ;;  %v1393_v7 = vsel %vm1381_vm5, %v1360_v12, %v4984_v61 }
 0x17e   : > { %v4934_v3 = vunpack.i.h.bf16 %v6804_v30  ;;  %v4933_v28 = vunpack.i.l.bf16 %v6804_v30  ;;  %v4999_v50 = vunpack.i.h.bf16 %v6812_v44  ;;  %v4998_v23 = vunpack.i.l.bf16 %v6812_v44 }
 0x17f   : > { %v4949_v59 = vunpack.i.h.bf16 %v6816_v0  ;;  %v4948_v56 = vunpack.i.l.bf16 %v6816_v0  ;;  %v4944_v39 = vunpack.i.h.bf16 %v6818_v17  ;;  %v1425_v15 = vsel %vm1414_vm6, %v1392_v49, %v5063_v40 }
 0x180   : > { %v1426_v41 = vsel %vm1414_vm6, %v1393_v7, %v5064_v19  ;;  %v4943_v62 = vunpack.i.l.bf16 %v6818_v17  ;;  %v1458_v63 = vsel %vm1447_vm7, %v1425_v15, %v5143_v34  ;;  %v5029_v0 = vunpack.i.h.bf16 %v6843_v48 }
 0x181   : > { %v1459_v33 = vsel %vm1447_vm7, %v1426_v41, %v5144_v55  ;;  %v5028_v42 = vunpack.i.l.bf16 %v6843_v48  ;;  %v1398_v18 = vsel %vm1381_vm5, %v1365_v38, %v4998_v23  ;;  %v1399_v17 = vsel %vm1381_vm5, %v1366_v6, %v4999_v50 }
 0x182   : > { %v5222_v20 = vpop.permute.xlu2 %5221  ;;  %v5024_v12 = vunpack.i.h.bf16 %v6883_v45  ;;  %v5023_v19 = vunpack.i.l.bf16 %v6883_v45  ;;  %v1377_v49 = vsel %vm1348_vm4, %v1344_v46, %v4948_v56  ;;  %v1378_v48 = vsel %vm1348_vm4, %v1345_v14, %v4949_v59 }
 0x183   : > { %v5224_v2 = vunpack.i.h.bf16 %v5222_v20  ;;  %v5223_v16 = vunpack.i.l.bf16 %v5222_v20  ;;  %v5079_v55 = vunpack.i.h.bf16 %v6941_v1  ;;  %v5078_v34 = vunpack.i.l.bf16 %v6941_v1 }
 0x184   : > { %v7100_v44 = vpop.permute.xlu1 %5171  ;;  %v1376_v7 = vsel %vm1348_vm4, %v1343_v13, %v4944_v39  ;;  %v1375_v38 = vsel %vm1348_vm4, %v1342_v31, %v4943_v62  ;;  %v5159_v6 = vunpack.i.h.bf16 %v7063_v36  ;;  %v5158_v50 = vunpack.i.l.bf16 %v7063_v36 }
 0x185   : > { %v7105_v53 = vsel %vm1480_vm8, %v1458_v63, %v5223_v16  ;;  %v7108_v61 = vsel %vm1480_vm8, %v1459_v33, %v5224_v2  ;;  %v7114_v40 = vpop.permute.xlu0 %5166  ;;  %v5014_v45 = vunpack.i.h.bf16 %v6830_v24  ;;  %v5013_v23 = vunpack.i.l.bf16 %v6830_v24 }
 0x186   : > { %v1410_v46 = vsel %vm1381_vm5, %v1377_v49, %v5028_v42  ;;  %v1411_v14 = vsel %vm1381_vm5, %v1378_v48, %v5029_v0  ;;  %v1408_v59 = vsel %vm1381_vm5, %v1375_v38, %v5023_v19  ;;  %v1409_v1 = vsel %vm1381_vm5, %v1376_v7, %v5024_v12 }
 0x187   : > { %v5109_v13 = vunpack.i.h.bf16 %v6963_v9  ;;  %v5108_v31 = vunpack.i.l.bf16 %v6963_v9  ;;  %v1431_v39 = vsel %vm1414_vm6, %v1398_v18, %v5078_v34  ;;  %v1432_v36 = vsel %vm1414_vm6, %v1399_v17, %v5079_v55 }
 0x188   : > { %v5104_v24 = vunpack.i.h.bf16 %v6906_v58  ;;  %v5103_v41 = vunpack.i.l.bf16 %v6906_v58  ;;  %v1464_v2 = vsel %vm1447_vm7, %v1431_v39, %v5158_v50  ;;  %v1465_v16 = vsel %vm1447_vm7, %v1432_v36, %v5159_v6 }
 0x189   : > { %v5094_v42 = vunpack.i.h.bf16 %v6953_v5  ;;  %v5093_v18 = vunpack.i.l.bf16 %v6953_v5  ;;  %v1443_v17 = vsel %vm1414_vm6, %v1410_v46, %v5108_v31  ;;  %v1444_v58 = vsel %vm1414_vm6, %v1411_v14, %v5109_v13 }
 0x18a   : > { %v5237_v56 = vpop.permute.xlu2 %5236  ;;  %v1441_v34 = vsel %vm1414_vm6, %v1408_v59, %v5103_v41  ;;  %v1442_v7 = vsel %vm1414_vm6, %v1409_v1, %v5104_v24  ;;  %v5174_v5 = vunpack.i.h.bf16 %v7100_v44  ;;  %v5173_v38 = vunpack.i.l.bf16 %v7100_v44  ;;  %v9660_v59 = vld [vmem:[#allocation12_spill] sm:$0xff] }
 0x18b   : > { %v5239_v20 = vunpack.i.h.bf16 %v5237_v56  ;;  %v5238_v15 = vunpack.i.l.bf16 %v5237_v56  ;;  %v1371_v6 = vsel %vm1348_vm4, %v7072_v25, %v4933_v28  ;;  %v1372_v50 = vsel %vm1348_vm4, %v7068_v32, %v4934_v3  ;;  %v5911_v56 = vld [vmem:[%s6094_s9 + $0x68] sm:$0xff] }
 0x18c   : > { %v5187_v62 = vpop.permute.xlu1 %5186  ;;  %v4819_v1 = vunpack.i.h.bf16 %v9660_v59  ;;  %v4818_v44 = vunpack.i.l.bf16 %v9660_v59  ;;  %v1404_v13 = vsel %vm1381_vm5, %v1371_v6, %v5013_v23  ;;  %v1405_v31 = vsel %vm1381_vm5, %v1372_v50, %v5014_v45  ;;  %v4640_v6 = vld [vmem:[%s9509_s1 + $0x8] sm:$0x30] }
 0x18d   : > { %v7139_v63 = vsel %vm1480_vm8, %v1464_v2, %v5238_v15  ;;  %v7142_v9 = vsel %vm1480_vm8, %v1465_v16, %v5239_v20  ;;  %v5189_v33 = vunpack.i.h.bf16 %v5187_v62  ;;  %v5188_v0 = vunpack.i.l.bf16 %v5187_v62  ;;  %v5182_v12 = vpop.permute.xlu0 %5181  ;;  %v5912_v20 = vld [vmem:[%s6094_s9 + $0x60] sm:$0xff] }
 0x18e   : > { %v5184_v48 = vunpack.i.h.bf16 %v5182_v12  ;;  %v5183_v55 = vunpack.i.l.bf16 %v5182_v12  ;;  %v1437_v30 = vsel %vm1414_vm6, %v1404_v13, %v5093_v18  ;;  %v1438_v28 = vsel %vm1414_vm6, %v1405_v31, %v5094_v42  ;;  %v9664_v18 = vld [vmem:[#allocation8_spill] sm:$0xff] }
 0x18f   : > { %v7149_v19 = vsel %vm1447_vm7, %v1443_v17, %v5188_v0  ;;  %v7152_v49 = vsel %vm1447_vm7, %v1444_v58, %v5189_v33  ;;  %v9661_v39 = vunpack.i.h.bf16 %v6541_v57  ;;  %v9662_v15 = vunpack.i.l.bf16 %v6541_v57  ;;  %v9663_v0 = vld [vmem:[#allocation18_spill] sm:$0xff] }
 0x190   : > { %v7167_v46 = vsel %vm1447_vm7, %v1441_v34, %v5183_v55  ;;  %v7170_v14 = vsel %vm1447_vm7, %v1442_v7, %v5184_v48  ;;  %v1470_v23 = vsel %vm1447_vm7, %v1437_v30, %v5173_v38  ;;  %v1471_v45 = vsel %vm1447_vm7, %v1438_v28, %v5174_v5  ;;  %v4528_v38 = vld [vmem:[%s9509_s1 + $0x8] sm:$0xf] }
 0x191   : > { %v1292_v36 = vsel %vm1282_vm2, %v5911_v56, %v9661_v39  ;;  %v1291_v24 = vsel %vm1282_vm2, %v5912_v20, %v9662_v15  ;;  %v4899_v2 = vunpack.i.h.bf16 %v6782_v10  ;;  %v4898_v16 = vunpack.i.l.bf16 %v6782_v10  ;;  %v9665_v39 = vld [vmem:[#allocation6_spill] sm:$0xff] }
 0x192   : > { %v5252_v25 = vpop.permute.xlu2 %5251  ;;  %v4719_v57 = vunpack.i.h.bf16 %v9663_v0  ;;  %v4718_v42 = vunpack.i.l.bf16 %v9663_v0  ;;  %v4769_v17 = vunpack.i.h.bf16 %v9664_v18  ;;  %v4978_v58 = vunpack.i.l.bf16 %v6847_v51  ;;  %v9666_v0 = vld [vmem:[#allocation11_spill] sm:$0xff] }
 0x193   : > { %v5254_v32 = vunpack.i.h.bf16 %v5252_v25  ;;  %v5253_v3 = vunpack.i.l.bf16 %v5252_v25  ;;  %v4768_v48 = vunpack.i.l.bf16 %v9664_v18  ;;  %v1325_v10 = vsel %vm1315_vm3, %v1292_v36, %v4819_v1 }
 0x194   : > { %v7188_v41 = vpop.permute.xlu1 %5201  ;;  %v1324_v55 = vsel %vm1315_vm3, %v1291_v24, %v4818_v44  ;;  %v4979_v34 = vunpack.i.h.bf16 %v6847_v51  ;;  %v5059_v7 = vunpack.i.h.bf16 %v6867_v26  ;;  %v5058_v5 = vunpack.i.l.bf16 %v6867_v26 }
 0x195   : > { %v7193_v62 = vsel %vm1480_vm8, %v1470_v23, %v5253_v3  ;;  %v7196_v33 = vsel %vm1480_vm8, %v1471_v45, %v5254_v32  ;;  %v7202_v12 = vpop.permute.xlu0 %5196  ;;  %v1358_v50 = vsel %vm1348_vm4, %v1325_v10, %v4899_v2  ;;  %v1357_v59 = vsel %vm1348_vm4, %v1324_v55, %v4898_v16 }
 0x196   : > { %v4529_v1 = vor.u32 %v4640_v6, %v4528_v38  ;;  %v6004_v44 = vmov 65535   ;;  %v1390_v13 = vsel %vm1381_vm5, %v1357_v59, %v4978_v58  ;;  %v5139_v26 = vunpack.i.h.bf16 %v7030_v54  ;;  %v4639_v6 = vld [vmem:[%s9509_s1] sm:$0xff] }
 0x197   : > { %v1631_v51 = vsel %vm1630_vm9, 4294967295, %v6004_v44  ;;  %v5138_v31 = vunpack.i.l.bf16 %v7030_v54  ;;  %v1391_v28 = vsel %vm1381_vm5, %v1358_v50, %v4979_v34  ;;  %v4764_v36 = vunpack.i.h.bf16 %v9665_v39  ;;  %v9667_v34 = vld [vmem:[#allocation13_spill] sm:$0xff] }
 0x198   : > { %v1632_v30 = vsel %vm407_vm1, %v1631_v51, 0  ;;  %v4763_v20 = vunpack.i.l.bf16 %v9665_v39  ;;  %v1423_v15 = vsel %vm1414_vm6, %v1390_v13, %v5058_v5  ;;  %v1424_v24 = vsel %vm1414_vm6, %v1391_v28, %v5059_v7  ;;  %v5913_v50 = vld [vmem:[%s6094_s9 + $0x8] sm:$0xff]  ;;  %v5915_v51 = vld [vmem:[%s6094_s9 + $0xf8] sm:$0xff] }
 0x199   : > { %v1634_v56 = vand.u32 %v4529_v1, %v1632_v30  ;;  %v4779_v18 = vunpack.i.h.bf16 %v9666_v0  ;;  %v4778_v58 = vunpack.i.l.bf16 %v9666_v0  ;;  %v1456_v10 = vsel %vm1447_vm7, %v1423_v15, %v5138_v31  ;;  %v5914_v1 = vld [vmem:[%s6094_s9] sm:$0xff]  ;;  %v9668_v28 = vld [vmem:[#allocation27_spill] sm:$0xff] }
 0x19a   : > { %v5267_v25 = vpop.permute.xlu2 %5266  ;;  %v4848_v7 = vunpack.i.l.bf16 %v9667_v34  ;;  %v7254_v59 = vsel %vm1282_vm2, %v5913_v50, %v4719_v57  ;;  %v7258_v44 = vsel %vm1282_vm2, %v5914_v1, %v4718_v42  ;;  %v1304_v13 = vsel %vm1282_vm2, %v5915_v51, %v4769_v17  ;;  %v5920_v42 = vld [vmem:[%s6094_s9 + $0x120] sm:$0xff]  ;;  %v9671_v1 = vld [vmem:[#allocation30_spill] sm:$0xff] }
 0x19b   : > { %v5269_v32 = vunpack.i.h.bf16 %v5267_v25  ;;  %v5268_v3 = vunpack.i.l.bf16 %v5267_v25  ;;  %1642 = vmatpush.bf16.msra.mxu0 %v1634_v56  ;;  %v5917_v25 = vld [vmem:[%s6094_s9 + $0xe0] sm:$0xff]  ;;  %v5919_v56 = vld [vmem:[%s6094_s9 + $0x128] sm:$0xff]  ;;  %v7275_v15 = vsel %vm1282_vm2, %v5920_v42, %v4778_v58  ;;  %v4844_v17 = vunpack.i.h.bf16 %v9668_v28 }
 0x19c   : > { %v5217_v23 = vpop.permute.xlu1 %5216  ;;  %v1302_v30 = vsel %vm1282_vm2, %v5917_v25, %v4764_v36  ;;  %v7271_v39 = vsel %vm1282_vm2, %v5919_v56, %v4779_v18  ;;  %v4928_v58 = vunpack.i.l.bf16 %v6806_v35  ;;  %v4859_v51 = vunpack.i.h.bf16 %v9671_v1 }
 0x19d   : > { %v7229_v54 = vsel %vm1480_vm8, %v7149_v19, %v5268_v3  ;;  %v7233_v45 = vsel %vm1480_vm8, %v7152_v49, %v5269_v32  ;;  %v5219_v2 = vunpack.i.h.bf16 %v5217_v23  ;;  %v5218_v16 = vunpack.i.l.bf16 %v5217_v23  ;;  %v7239_v55 = vpop.permute.xlu0 %5211  ;;  %v5918_v3 = vld [vmem:[%s6094_s9 + $0xd8] sm:$0xff]  ;;  %v9669_v23 = vld [vmem:[#allocation32_spill] sm:$0xff] }
 0x19e   : > { %v1457_v19 = vsel %vm1447_vm7, %v1424_v24, %v5139_v26  ;;  %v4849_v49 = vunpack.i.h.bf16 %v9667_v34  ;;  %v5916_v26 = vld [vmem:[%s6094_s9 + $0xf0] sm:$0xff]  ;;  %v4843_v32 = vunpack.i.l.bf16 %v9668_v28  ;;  %v1301_v57 = vsel %vm1282_vm2, %v5918_v3, %v4763_v20 }
 0x19f   : > { %v7244_v5 = vsel %vm1480_vm8, %v1456_v10, %v5218_v16  ;;  %v7247_v38 = vsel %vm1480_vm8, %v1457_v19, %v5219_v2  ;;  %v1303_v31 = vsel %vm1282_vm2, %v5916_v26, %v4768_v48  ;;  %1643 = vmatpush.bf16.msra.mxu0 %v4639_v6  ;;  %v4924_v2 = vunpack.i.h.bf16 %v9669_v23  ;;  %v9670_v16 = vld [vmem:[#allocation14_spill] sm:$0xff] }
 0x1a0   : > { %v1337_v36 = vsel %vm1315_vm3, %v1304_v13, %v4849_v49  ;;  %v1336_v24 = vsel %vm1315_vm3, %v1303_v31, %v4848_v7  ;;  %v4923_v20 = vunpack.i.l.bf16 %v9669_v23  ;;  %v4799_v0 = vunpack.i.h.bf16 %v9670_v16 }
 0x1a1   : > { %v4798_v18 = vunpack.i.l.bf16 %v9670_v16  ;;  %v4929_v10 = vunpack.i.h.bf16 %v6806_v35  ;;  %v1334_v34 = vsel %vm1315_vm3, %v1301_v57, %v4843_v32  ;;  %v5009_v49 = vunpack.i.h.bf16 %v6871_v60 }
 0x1a2   : > { %v7278_v48 = vpop.permute.xlu2 %5281  ;;  %v5008_v7 = vunpack.i.l.bf16 %v6871_v60  ;;  %v5003_v6 = vunpack.i.l.bf16 %v6873_v47  ;;  %v1335_v50 = vsel %vm1315_vm3, %v1302_v30, %v4844_v17  ;;  %v4858_v13 = vunpack.i.l.bf16 %v9671_v1 }
 0x1a3   : > { %v5004_v26 = vunpack.i.h.bf16 %v6873_v47  ;;  %v1367_v35 = vsel %vm1348_vm4, %v1334_v34, %v4923_v20  ;;  %v1368_v25 = vsel %vm1348_vm4, %v1335_v50, %v4924_v2  ;;  %v5089_v28 = vunpack.i.h.bf16 %v6891_v27 }
 0x1a4   : > { %v7288_v19 = vpop.permute.xlu1 %5231  ;;  %v5088_v60 = vunpack.i.l.bf16 %v6891_v27  ;;  %v4939_v32 = vunpack.i.h.bf16 %v6760_v37  ;;  %v1370_v30 = vsel %vm1348_vm4, %v1337_v36, %v4929_v10  ;;  %v1369_v3 = vsel %vm1348_vm4, %v1336_v24, %v4928_v58 }
 0x1a5   : > { %v7298_v31 = vpop.permute.xlu0 %5226  ;;  %v5083_v57 = vunpack.i.l.bf16 %v6939_v43  ;;  %v4938_v47 = vunpack.i.l.bf16 %v6760_v37  ;;  %v1402_v56 = vsel %vm1381_vm5, %v1369_v3, %v5008_v7  ;;  %v1403_v42 = vsel %vm1381_vm5, %v1370_v30, %v5009_v49 }
 0x1a6   : > { %v1400_v17 = vsel %vm1381_vm5, %v1367_v35, %v5003_v6  ;;  %v1401_v23 = vsel %vm1381_vm5, %v1368_v25, %v5004_v26  ;;  %v5084_v27 = vunpack.i.h.bf16 %v6939_v43  ;;  %v5169_v2 = vunpack.i.h.bf16 %v7114_v40 }
 0x1a7   : > { %v5168_v36 = vunpack.i.l.bf16 %v7114_v40  ;;  %v1435_v24 = vsel %vm1414_vm6, %v1402_v56, %v5088_v60  ;;  %v1436_v16 = vsel %vm1414_vm6, %v1403_v42, %v5089_v28  ;;  %v1433_v58 = vsel %vm1414_vm6, %v1400_v17, %v5083_v57 }
 0x1a8   : > { %v5164_v34 = vunpack.i.h.bf16 %v6959_v11  ;;  %v5163_v49 = vunpack.i.l.bf16 %v6959_v11  ;;  %v1434_v1 = vsel %vm1414_vm6, %v1401_v23, %v5084_v27  ;;  %v1469_v35 = vsel %vm1447_vm7, %v1436_v16, %v5169_v2 }
 0x1a9   : > { %v1468_v26 = vsel %vm1447_vm7, %v1435_v24, %v5168_v36  ;;  %v1317_v3 = vsel %vm1315_vm3, %v7254_v59, %v4799_v0  ;;  %v5019_v42 = vunpack.i.h.bf16 %v6885_v52  ;;  %v5018_v17 = vunpack.i.l.bf16 %v6885_v52  ;;  %v9672_v36 = vld [vmem:[#allocation24_spill] sm:$0xff] }
 0x1aa   : > { %v5297_v20 = vpop.permute.xlu2 %5296  ;;  %v1466_v57 = vsel %vm1447_vm7, %v1433_v58, %v5163_v49  ;;  %v1467_v56 = vsel %vm1447_vm7, %v1434_v1, %v5164_v34  ;;  %v1341_v59 = vsel %vm1315_vm3, %v7271_v39, %v4859_v51  ;;  %v5099_v0 = vunpack.i.h.bf16 %v6951_v4 }
 0x1ab   : > { %v5299_v37 = vunpack.i.h.bf16 %v5297_v20  ;;  %v5298_v10 = vunpack.i.l.bf16 %v5297_v20  ;;  %v4879_v52 = vunpack.i.h.bf16 %v9672_v36  ;;  %v4878_v20 = vunpack.i.l.bf16 %v9672_v36 }
 0x1ac   : > { %v5247_v7 = vpop.permute.xlu1 %5246  ;;  %v1374_v16 = vsel %vm1348_vm4, %v1341_v59, %v4939_v32  ;;  %v5179_v39 = vunpack.i.h.bf16 %v6969_v29  ;;  %v5178_v51 = vunpack.i.l.bf16 %v6969_v29  ;;  %v5039_v49 = vunpack.i.h.bf16 %v6895_v21 }
 0x1ad   : > { %v5249_v43 = vunpack.i.h.bf16 %v5247_v7  ;;  %v5248_v6 = vunpack.i.l.bf16 %v5247_v7  ;;  %v7323_v40 = vsel %vm1513_vm10, %v7244_v5, %v5298_v10  ;;  %v7327_v50 = vsel %vm1513_vm10, %v7247_v38, %v5299_v37  ;;  %v5242_v25 = vpop.permute.xlu0 %5241 }
 0x1ae   : > { %v1550_v11 = vpack.c.bf16 %v7327_v50, %v7323_v40  ;;  %v5244_v5 = vunpack.i.h.bf16 %v5242_v25  ;;  %v5243_v30 = vunpack.i.l.bf16 %v5242_v25  ;;  %v1316_v38 = vsel %vm1315_vm3, %v7258_v44, %v4798_v18  ;;  %v9698_v40 = vld [vmem:[#allocation42_spill] sm:$0xff] }
 0x1af   : > { %v1501_v28 = vsel %vm1480_vm8, %v1468_v26, %v5248_v6  ;;  %v1502_v60 = vsel %vm1480_vm8, %v1469_v35, %v5249_v43  ;;  %v1340_v44 = vsel %vm1315_vm3, %v7275_v15, %v4858_v13  ;;  %v5098_v18 = vunpack.i.l.bf16 %v6951_v4  ;;  %v9673_v26 = vld [vmem:[#allocation46_spill] sm:$0xff] }
 0x1b0   : > { %v7345_v23 = vsel %vm1480_vm8, %v1466_v57, %v5243_v30  ;;  %v7348_v27 = vsel %vm1480_vm8, %v1467_v56, %v5244_v5  ;;  %v1373_v24 = vsel %vm1348_vm4, %v1340_v44, %v4938_v47  ;;  %v4959_v37 = vunpack.i.h.bf16 %v6838_v22 }
 0x1b1   : > { %v4958_v15 = vunpack.i.l.bf16 %v6838_v22  ;;  %v1406_v4 = vsel %vm1381_vm5, %v1373_v24, %v5018_v17  ;;  %v1407_v10 = vsel %vm1381_vm5, %v1374_v16, %v5019_v42  ;;  %v5038_v47 = vunpack.i.l.bf16 %v6895_v21 }
 0x1b2   : > { %v7356_v2 = vpop.permute.xlu2 %5311  ;;  %v1439_v32 = vsel %vm1414_vm6, %v1406_v4, %v5098_v18  ;;  %v1440_v7 = vsel %vm1414_vm6, %v1407_v10, %v5099_v0  ;;  %v5119_v35 = vunpack.i.h.bf16 %v9673_v26  ;;  %v5118_v25 = vunpack.i.l.bf16 %v9673_v26  ;;  %v9677_v26 = vld [vmem:[#allocation7_spill] sm:$0xff] }
 0x1b3   : > { %v1472_v5 = vsel %vm1447_vm7, %v1439_v32, %v5178_v51  ;;  %v1473_v21 = vsel %vm1447_vm7, %v1440_v7, %v5179_v39  ;;  %v1349_v30 = vsel %vm1348_vm4, %v1316_v38, %v4878_v20  ;;  %v1350_v57 = vsel %vm1348_vm4, %v1317_v3, %v4879_v52  ;;  %v9675_v32 = vld [vmem:[#allocation10_spill] sm:$0xff] }
 0x1b4   : > { %v5262_v13 = vpop.permute.xlu1 %5261  ;;  %v1383_v42 = vsel %vm1381_vm5, %v1350_v57, %v4959_v37  ;;  %v5199_v17 = vunpack.i.h.bf16 %v7202_v12  ;;  %v5198_v44 = vunpack.i.l.bf16 %v7202_v12  ;;  %v4989_v50 = vunpack.i.h.bf16 %v9698_v40 }
 0x1b5   : > { %v5264_v58 = vunpack.i.h.bf16 %v5262_v13  ;;  %v5263_v34 = vunpack.i.l.bf16 %v5262_v13  ;;  %v5257_v22 = vpop.permute.xlu0 %5256  ;;  %v1416_v38 = vsel %vm1414_vm6, %v1383_v42, %v5039_v49 }
 0x1b6   : > { %v5259_v6 = vunpack.i.h.bf16 %v5257_v22  ;;  %v5258_v1 = vunpack.i.l.bf16 %v5257_v22  ;;  %v1449_v52 = vsel %vm1447_vm7, %v1416_v38, %v5119_v35  ;;  %v9676_v22 = vld [vmem:[#allocation52_spill] sm:$0xff]  ;;  %v4804_v35 = vunpack.i.h.bf16 %v9677_v26  ;;  %v9679_v38 = vld [vmem:[#allocation38_spill] sm:$0xff] }
 0x1b7   : > { %v1507_v43 = vsel %vm1480_vm8, %v7167_v46, %v5263_v34  ;;  %v1508_v29 = vsel %vm1480_vm8, %v7170_v14, %v5264_v58  ;;  %v1382_v14 = vsel %vm1381_vm5, %v1349_v30, %v4958_v15  ;;  %v1482_v39 = vsel %vm1480_vm8, %v1449_v52, %v5199_v17  ;;  %v9674_v34 = vld [vmem:[#allocation20_spill] sm:$0xff]  ;;  %v9678_v17 = vld [vmem:[#allocation35_spill] sm:$0xff] }
 0x1b8   : > { %v7383_v56 = vsel %vm1480_vm8, %v1472_v5, %v5258_v1  ;;  %v7386_v46 = vsel %vm1480_vm8, %v1473_v21, %v5259_v6  ;;  %v1415_v0 = vsel %vm1414_vm6, %v1382_v14, %v5038_v47  ;;  %v4723_v49 = vunpack.i.l.bf16 %v9674_v34  ;;  %v5921_v30 = vld [vmem:[%s6094_s9 + $0x20] sm:$0xff]  ;;  %v5922_v14 = vld [vmem:[%s6094_s9 + $0x18] sm:$0xff] }
 0x1b9   : > { %v1448_v36 = vsel %vm1447_vm7, %v1415_v0, %v5118_v25  ;;  %v4803_v25 = vunpack.i.l.bf16 %v9677_v26 }
 0x1ba   : > { %v5327_v59 = vpop.permute.xlu2 %5326  ;;  %v1481_v12 = vsel %vm1480_vm8, %v1448_v36, %v5198_v44  ;;  %v1285_v42 = vsel %vm1282_vm2, %v5922_v14, %v4723_v49  ;;  %v4884_v44 = vunpack.i.h.bf16 %v9678_v17 }
 0x1bb   : > { %v5329_v3 = vunpack.i.h.bf16 %v5327_v59  ;;  %v5328_v18 = vunpack.i.l.bf16 %v5327_v59  ;;  %v4883_v59 = vunpack.i.l.bf16 %v9678_v17 }
 0x1bc   : > { %v5277_v20 = vpop.permute.xlu1 %5276 }
 0x1bd   : > { %v5279_v24 = vunpack.i.h.bf16 %v5277_v20  ;;  %v5278_v16 = vunpack.i.l.bf16 %v5277_v20  ;;  %v7397_v37 = vsel %vm1513_vm10, %v1501_v28, %v5328_v18  ;;  %v7400_v15 = vsel %vm1513_vm10, %v1502_v60, %v5329_v3  ;;  %v5272_v51 = vpop.permute.xlu0 %5271  ;;  %v9680_v20 = vld [vmem:[#allocation40_spill] sm:$0xff] }
 0x1be   : > { %v1556_v13 = vpack.c.bf16 %v7400_v15, %v7397_v37  ;;  %v5274_v4 = vunpack.i.h.bf16 %v5272_v51  ;;  %v5273_v10 = vunpack.i.l.bf16 %v5272_v51  ;;  %v4724_v60 = vunpack.i.h.bf16 %v9674_v34 }
 0x1bf   : > { %v1514_v58 = vsel %vm1513_vm10, %v1481_v12, %v5278_v16  ;;  %v1515_v28 = vsel %vm1513_vm10, %v1482_v39, %v5279_v24  ;;  %v4964_v3 = vunpack.i.h.bf16 %v9679_v38  ;;  %v4963_v18 = vunpack.i.l.bf16 %v9679_v38 }
 0x1c0   : > { %v1546_v47 = vpack.c.bf16 %v1515_v28, %v1514_v58  ;;  %v7412_v7 = vsel %vm1480_vm8, %v9675_v32, %v5273_v10  ;;  %v7416_v6 = vsel %vm1480_vm8, %v9676_v22, %v5274_v4  ;;  %v1286_v57 = vsel %vm1282_vm2, %v5921_v30, %v4724_v60  ;;  %v9681_v10 = vld [vmem:[#allocation51_spill] sm:$0xff] }
 0x1c1   : > { %v5044_v24 = vunpack.i.h.bf16 %v9680_v20  ;;  %v5043_v16 = vunpack.i.l.bf16 %v9680_v20  ;;  %v1318_v51 = vsel %vm1315_vm3, %v1285_v42, %v4803_v25  ;;  %v1319_v4 = vsel %vm1315_vm3, %v1286_v57, %v4804_v35  ;;  %v9684_v20 = vld [vmem:[#allocation34_spill] sm:$0xff] }
 0x1c2   : > { %4530 = vmatmul.msk.bf16.vlgmr.msra.gmra.mxu0 %vm1581_vm11, %v1546_v47  ;;  %v5342_v1 = vpop.permute.xlu2 %5341  ;;  %v5124_v58 = vunpack.i.h.bf16 %v9681_v10  ;;  %v1352_v28 = vsel %vm1348_vm4, %v1319_v4, %v4884_v44  ;;  %v5204_v34 = vunpack.i.h.bf16 %v7188_v41  ;;  %v5203_v60 = vunpack.i.l.bf16 %v7188_v41  ;;  %v9683_v44 = vld [vmem:[#allocation23_spill] sm:$0xff]  ;;  %v9685_v4 = vld [vmem:[#allocation36_spill] sm:$0xff] }
 0x1c3   : > { %v5344_v5 = vunpack.i.h.bf16 %v5342_v1  ;;  %v5343_v21 = vunpack.i.l.bf16 %v5342_v1  ;;  %v1385_v47 = vsel %vm1381_vm5, %v1352_v28, %v4964_v3  ;;  %v5284_v32 = vunpack.i.h.bf16 %v7278_v48 }
 0x1c4   : > { %v7427_v0 = vpop.permute.xlu1 %5291  ;;  %v5283_v22 = vunpack.i.l.bf16 %v7278_v48  ;;  %v1418_v26 = vsel %vm1414_vm6, %v1385_v47, %v5044_v24  ;;  %v9682_v48 = vld [vmem:[#allocation17_spill] sm:$0xff]  ;;  %v4888_v24 = vunpack.i.l.bf16 %v9684_v20 }
 0x1c5   : > { %v7432_v36 = vsel %vm1513_vm10, %v1507_v43, %v5343_v21  ;;  %v7435_v52 = vsel %vm1513_vm10, %v1508_v29, %v5344_v5  ;;  %v7441_v39 = vpop.permute.xlu0 %5286  ;;  %v5123_v43 = vunpack.i.l.bf16 %v9681_v10  ;;  %v1351_v29 = vsel %vm1348_vm4, %v1318_v51, %v4883_v59 }
 0x1c6   : > { %v1559_v12 = vpack.c.bf16 %v7435_v52, %v7432_v36  ;;  %v1384_v49 = vsel %vm1381_vm5, %v1351_v29, %v4963_v18  ;;  %v1451_v25 = vsel %vm1447_vm7, %v1418_v26, %v5124_v58  ;;  %v4728_v14 = vunpack.i.l.bf16 %v9682_v48  ;;  %v5923_v29 = vld [vmem:[%s6094_s9 + $0x30] sm:$0xff] }
 0x1c7   : > { %v1417_v1 = vsel %vm1414_vm6, %v1384_v49, %v5043_v16  ;;  %v1484_v41 = vsel %vm1480_vm8, %v1451_v25, %v5204_v34  ;;  %v4729_v17 = vunpack.i.h.bf16 %v9682_v48  ;;  %v4808_v59 = vunpack.i.l.bf16 %v9683_v44 }
 0x1c8   : > { %v1450_v35 = vsel %vm1447_vm7, %v1417_v1, %v5123_v43  ;;  %v1517_v57 = vsel %vm1513_vm10, %v1484_v41, %v5284_v32  ;;  %v4809_v18 = vunpack.i.h.bf16 %v9683_v44  ;;  %v4889_v51 = vunpack.i.h.bf16 %v9684_v20 }
 0x1c9   : > { %v1483_v5 = vsel %vm1480_vm8, %v1450_v35, %v5203_v60  ;;  %v4968_v10 = vunpack.i.l.bf16 %v9685_v4  ;;  %v1287_v28 = vsel %vm1282_vm2, %v5923_v29, %v4728_v14  ;;  %v5924_v60 = vld [vmem:[%s6094_s9 + $0x38] sm:$0xff] }
 0x1ca   : > { %v1516_v30 = vsel %vm1513_vm10, %v1483_v5, %v5283_v22  ;;  %v1288_v49 = vsel %vm1282_vm2, %v5924_v60, %v4729_v17  ;;  %v1320_v47 = vsel %vm1315_vm3, %v1287_v28, %v4808_v59  ;;  %v9686_v5 = vld [vmem:[#allocation45_spill] sm:$0xff] }
 0x1cb   : > { %v1547_v16 = vpack.c.bf16 %v1517_v57, %v1516_v30  ;;  %v1353_v32 = vsel %vm1348_vm4, %v1320_v47, %v4888_v24  ;;  %v5049_v41 = vunpack.i.h.bf16 %v9686_v5  ;;  %v5048_v30 = vunpack.i.l.bf16 %v9686_v5  ;;  %v9687_v57 = vld [vmem:[#allocation50_spill] sm:$0xff] }
 0x1cc   : > { %v7461_v21 = vpop.permute.xlu1 %5306  ;;  %v1386_v26 = vsel %vm1381_vm5, %v1353_v32, %v4968_v10  ;;  %v5129_v48 = vunpack.i.h.bf16 %v9687_v57  ;;  %v5128_v14 = vunpack.i.l.bf16 %v9687_v57 }
 0x1cd   : > { %v5302_v42 = vpop.permute.xlu0 %5301  ;;  %v1419_v10 = vsel %vm1414_vm6, %v1386_v26, %v5048_v30 }
 0x1ce   : > { %v5304_v38 = vunpack.i.h.bf16 %v5302_v42  ;;  %v5303_v3 = vunpack.i.l.bf16 %v5302_v42  ;;  %v1452_v60 = vsel %vm1447_vm7, %v1419_v10, %v5128_v14 }
 0x1d0   : > { %v7474_v58 = vsel %vm1513_vm10, %v7105_v53, %v5303_v3  ;;  %v7478_v43 = vsel %vm1513_vm10, %v7108_v61, %v5304_v38  ;;  %v1321_v53 = vsel %vm1315_vm3, %v1288_v49, %v4809_v18  ;;  %v4969_v61 = vunpack.i.h.bf16 %v9685_v4  ;;  %v9688_v18 = vld [vmem:[#allocation22_spill] sm:$0xff] }
 0x1d1   : > { %v1551_v34 = vpack.c.bf16 %v7478_v43, %v7474_v58  ;;  %v1354_v1 = vsel %vm1348_vm4, %v1321_v53, %v4889_v51  ;;  %v5209_v20 = vunpack.i.h.bf16 %v9688_v18  ;;  %v5208_v24 = vunpack.i.l.bf16 %v9688_v18  ;;  %v9699_v43 = vld [vmem:[#allocation47_spill] sm:$0xff] }
 0x1d2   : > { %4531 = vmatmul.msk.bf16.gmra.mxu0 %vm1581_vm11, %v1547_v16  ;;  %v1387_v3 = vsel %vm1381_vm5, %v1354_v1, %v4969_v61  ;;  %v5289_v51 = vunpack.i.h.bf16 %v7441_v39  ;;  %v5288_v4 = vunpack.i.l.bf16 %v7441_v39 }
 0x1d3   : > { %v1420_v29 = vsel %vm1414_vm6, %v1387_v3, %v5049_v41  ;;  %v1485_v39 = vsel %vm1480_vm8, %v1452_v60, %v5208_v24 }
 0x1d4   : > { %v5322_v22 = vpop.permute.xlu1 %5321  ;;  %v1453_v49 = vsel %vm1447_vm7, %v1420_v29, %v5129_v48  ;;  %v5926_v29 = vld [vmem:[%s6094_s9 + $0x48] sm:$0xff] }
 0x1d5   : > { %v5324_v35 = vunpack.i.h.bf16 %v5322_v22  ;;  %v5323_v25 = vunpack.i.l.bf16 %v5322_v22  ;;  %v5317_v42 = vpop.permute.xlu0 %5316  ;;  %v9689_v22 = vld [vmem:[#allocation19_spill] sm:$0xff] }
 0x1d6   : > { %v5319_v17 = vunpack.i.h.bf16 %v5317_v42  ;;  %v5318_v44 = vunpack.i.l.bf16 %v5317_v42  ;;  %v4734_v1 = vunpack.i.h.bf16 %v9689_v22  ;;  %v4733_v26 = vunpack.i.l.bf16 %v9689_v22  ;;  %v9691_v42 = vld [vmem:[#allocation26_spill] sm:$0xff] }
 0x1d7   : > { %v7499_v59 = vsel %vm1513_vm10, %v7345_v23, %v5323_v25  ;;  %v7503_v38 = vsel %vm1513_vm10, %v7348_v27, %v5324_v35  ;;  %v9690_v35 = vld [vmem:[#allocation16_spill] sm:$0xff]  ;;  %v4893_v18 = vunpack.i.l.bf16 %v9691_v42 }
 0x1d8   : > { %v1555_v16 = vpack.c.bf16 %v7503_v38, %v7499_v59  ;;  %v7514_v23 = vsel %vm1513_vm10, %v7139_v63, %v5318_v44  ;;  %v7518_v27 = vsel %vm1513_vm10, %v7142_v9, %v5319_v17  ;;  %v1486_v63 = vsel %vm1480_vm8, %v1453_v49, %v5209_v20  ;;  %v9692_v20 = vld [vmem:[#allocation39_spill] sm:$0xff] }
 0x1d9   : > { %v1554_v28 = vpack.c.bf16 %v7518_v27, %v7514_v23  ;;  %v1518_v9 = vsel %vm1513_vm10, %v1485_v39, %v5288_v4  ;;  %v1519_v61 = vsel %vm1513_vm10, %v1486_v63, %v5289_v51  ;;  %v4814_v25 = vunpack.i.h.bf16 %v9690_v35  ;;  %v5925_v51 = vld [vmem:[%s6094_s9 + $0x50] sm:$0xff] }
 0x1da   : > { %v4813_v14 = vunpack.i.l.bf16 %v9690_v35  ;;  %v4894_v17 = vunpack.i.h.bf16 %v9691_v42  ;;  %v1548_v3 = vpack.c.bf16 %v1519_v61, %v1518_v9  ;;  %v1290_v4 = vsel %vm1282_vm2, %v5925_v51, %v4734_v1  ;;  %v9693_v61 = vld [vmem:[#allocation44_spill] sm:$0xff] }
 0x1db   : > { %v1289_v60 = vsel %vm1282_vm2, %v5926_v29, %v4733_v26  ;;  %v1323_v49 = vsel %vm1315_vm3, %v1290_v4, %v4814_v25  ;;  %v5054_v22 = vunpack.i.h.bf16 %v9693_v61  ;;  %v5053_v1 = vunpack.i.l.bf16 %v9693_v61  ;;  %v9694_v26 = vld [vmem:[#allocation48_spill] sm:$0xff]  ;;  %v9697_v61 = vld [vmem:[#allocation29_spill] sm:$0xff] }
 0x1dc   : > { %v5337_v47 = vpop.permute.xlu1 %5336  ;;  %v1356_v39 = vsel %vm1348_vm4, %v1323_v49, %v4894_v17  ;;  %v5134_v35 = vunpack.i.h.bf16 %v9694_v26  ;;  %v5133_v25 = vunpack.i.l.bf16 %v9694_v26  ;;  %v5927_v26 = vld [vmem:[%s6094_s9 + $0x98] sm:$0xff] }
 0x1dd   : > { %v5339_v53 = vunpack.i.h.bf16 %v5337_v47  ;;  %v5338_v32 = vunpack.i.l.bf16 %v5337_v47  ;;  %v5332_v5 = vpop.permute.xlu0 %5331 }
 0x1de   : > { %v5334_v57 = vunpack.i.h.bf16 %v5332_v5  ;;  %v5333_v48 = vunpack.i.l.bf16 %v5332_v5 }
 0x1df   : > { %v7535_v41 = vsel %vm1513_vm10, %v7383_v56, %v5338_v32  ;;  %v7539_v30 = vsel %vm1513_vm10, %v7386_v46, %v5339_v53  ;;  %v4974_v56 = vunpack.i.h.bf16 %v9692_v20 }
 0x1e0   : > { %v1558_v44 = vpack.c.bf16 %v7539_v30, %v7535_v41  ;;  %v7549_v24 = vsel %vm1513_vm10, %v7193_v62, %v5333_v48  ;;  %v7553_v46 = vsel %vm1513_vm10, %v7196_v33, %v5334_v57  ;;  %v1322_v62 = vsel %vm1315_vm3, %v1289_v60, %v4813_v14 }
 0x1e1   : > { %v1557_v10 = vpack.c.bf16 %v7553_v46, %v7549_v24  ;;  %v4973_v33 = vunpack.i.l.bf16 %v9692_v20  ;;  %v1355_v47 = vsel %vm1348_vm4, %v1322_v62, %v4893_v18  ;;  %v1389_v53 = vsel %vm1381_vm5, %v1356_v39, %v4974_v56 }
 0x1e2   : > { %4532 = vmatmul.msk.bf16.gmra.mxu0 %vm1581_vm11, %v1548_v3  ;;  %v5214_v3 = vunpack.i.h.bf16 %v7239_v55  ;;  %v5213_v18 = vunpack.i.l.bf16 %v7239_v55  ;;  %v5294_v56 = vunpack.i.h.bf16 %v7427_v0  ;;  %v1422_v29 = vsel %vm1414_vm6, %v1389_v53, %v5054_v22  ;;  %v9696_v53 = vld [vmem:[#allocation25_spill] sm:$0xff] }
 0x1e3   : > { %v1388_v17 = vsel %vm1381_vm5, %v1355_v47, %v4973_v33  ;;  %v1455_v49 = vsel %vm1447_vm7, %v1422_v29, %v5134_v35  ;;  %v9695_v33 = vld [vmem:[#allocation21_spill] sm:$0xff]  ;;  %v4909_v22 = vunpack.i.h.bf16 %v9697_v61  ;;  %v5228_v29 = vunpack.i.l.bf16 %v7298_v31 }
 0x1e4   : > { %v5352_v63 = vpop.permute.xlu1 %5351  ;;  %v1421_v4 = vsel %vm1414_vm6, %v1388_v17, %v5053_v1  ;;  %v4748_v47 = vunpack.i.l.bf16 %v9695_v33  ;;  %v4908_v1 = vunpack.i.l.bf16 %v9697_v61  ;;  %v9700_v17 = vld [vmem:[#allocation49_spill] sm:$0xff] }
 0x1e5   : > { %v5354_v32 = vunpack.i.h.bf16 %v5352_v63  ;;  %v5353_v9 = vunpack.i.l.bf16 %v5352_v63  ;;  %v5347_v5 = vpop.permute.xlu0 %5346  ;;  %v1454_v60 = vsel %vm1447_vm7, %v1421_v4, %v5133_v25  ;;  %v4749_v63 = vunpack.i.h.bf16 %v9695_v33  ;;  %v5928_v25 = vld [vmem:[%s6094_s9 + $0x90] sm:$0xff] }
 0x1e6   : > { %v5349_v14 = vunpack.i.h.bf16 %v5347_v5  ;;  %v5348_v42 = vunpack.i.l.bf16 %v5347_v5  ;;  %v1295_v58 = vsel %vm1282_vm2, %v5928_v25, %v4748_v47  ;;  %v5068_v5 = vunpack.i.l.bf16 %v9699_v43 }
 0x1e7   : > { %v7574_v57 = vsel %vm1513_vm10, %v7412_v7, %v5353_v9  ;;  %v7578_v48 = vsel %vm1513_vm10, %v7416_v6, %v5354_v32  ;;  %v5293_v7 = vunpack.i.l.bf16 %v7427_v0  ;;  %v1487_v0 = vsel %vm1480_vm8, %v1454_v60, %v5213_v18 }
 0x1e8   : > { %v1561_v20 = vpack.c.bf16 %v7578_v48, %v7574_v57  ;;  %v7589_v51 = vsel %vm1513_vm10, %v7229_v54, %v5348_v42  ;;  %v7593_v6 = vsel %vm1513_vm10, %v7233_v45, %v5349_v14  ;;  %v1488_v54 = vsel %vm1480_vm8, %v1455_v49, %v5214_v3 }
 0x1e9   : > { %v1560_v55 = vpack.c.bf16 %v7593_v6, %v7589_v51  ;;  %v1520_v62 = vsel %vm1513_vm10, %v1487_v0, %v5293_v7  ;;  %v1521_v45 = vsel %vm1513_vm10, %v1488_v54, %v5294_v56  ;;  %v4829_v32 = vunpack.i.h.bf16 %v9696_v53 }
 0x1ea   : > { %v1549_v39 = vpack.c.bf16 %v1521_v45, %v1520_v62  ;;  %v4828_v9 = vunpack.i.l.bf16 %v9696_v53  ;;  %v1296_v35 = vsel %vm1282_vm2, %v5927_v26, %v4749_v63  ;;  %v5149_v3 = vunpack.i.h.bf16 %v9700_v17  ;;  %v9703_v26 = vld [vmem:[#allocation37_spill] sm:$0xff] }
 0x1eb   : > { %v1329_v42 = vsel %vm1315_vm3, %v1296_v35, %v4829_v32  ;;  %v5148_v18 = vunpack.i.l.bf16 %v9700_v17  ;;  %v5229_v4 = vunpack.i.h.bf16 %v7298_v31  ;;  %v5309_v0 = vunpack.i.h.bf16 %v7461_v21  ;;  %v9701_v32 = vld [vmem:[#allocation9_spill] sm:$0xff] }
 0x1ec   : > { %v1328_v14 = vsel %vm1315_vm3, %v1295_v58, %v4828_v9  ;;  %v1362_v7 = vsel %vm1348_vm4, %v1329_v42, %v4909_v22  ;;  %v5308_v54 = vunpack.i.l.bf16 %v7461_v21  ;;  %v4754_v9 = vunpack.i.h.bf16 %v9701_v32  ;;  %v9702_v22 = vld [vmem:[#allocation15_spill] sm:$0xff]  ;;  %v9704_v58 = vld [vmem:[#allocation41_spill] sm:$0xff] }
 0x1ed   : > { %v1361_v56 = vsel %vm1348_vm4, %v1328_v14, %v4908_v1  ;;  %v1395_v49 = vsel %vm1381_vm5, %v1362_v7, %v4989_v50  ;;  %v4753_v61 = vunpack.i.l.bf16 %v9701_v32  ;;  %v4834_v1 = vunpack.i.h.bf16 %v9702_v22  ;;  %v5929_v50 = vld [vmem:[%s6094_s9 + $0xb0] sm:$0xff]  ;;  %v9705_v42 = vld [vmem:[#allocation43_spill] sm:$0xff] }
 0x1ee   : > { %v4914_v35 = vunpack.i.h.bf16 %v9703_v26  ;;  %v4913_v25 = vunpack.i.l.bf16 %v9703_v26  ;;  %v5074_v17 = vunpack.i.h.bf16 %v9705_v42 }
 0x1f2   : > { %4533 = vmatmul.msk.bf16.gmra.mxu0 %vm1581_vm11, %v1549_v39 }
 0x202   : > { %4534 = vmatmul.msk.bf16.gmra.mxu0 %vm1581_vm11, %v1550_v11  ;;  %v4988_v11 = vunpack.i.l.bf16 %v9698_v40  ;;  %v4833_v40 = vunpack.i.l.bf16 %v9702_v22  ;;  %v4658_v22 = vld [vmem:[%s9511_s3 + $0x88] sm:$0xff] }
 0x203   : > { %3515 = vmatpush.bf16.msra.mxu3 %v4658_v22 }
 0x204   : > { %v1394_v60 = vsel %vm1381_vm5, %v1361_v56, %v4988_v11  ;;  %v1298_v11 = vsel %vm1282_vm2, %v5929_v50, %v4754_v9  ;;  %v4657_v50 = vld [vmem:[%s9511_s3 + $0x80] sm:$0xff] }
 0x205   : > { %v1427_v62 = vsel %vm1414_vm6, %v1394_v60, %v5068_v5  ;;  %v5930_v5 = vld [vmem:[%s6094_s9 + $0xa8] sm:$0xff]  ;;  %v1331_v56 = vsel %vm1315_vm3, %v1298_v11, %v4834_v1  ;;  %s4520_s9 = sshll.u32 %s215_s8, 6 }
 0x206   : > { %v1460_v39 = vsel %vm1447_vm7, %v1427_v62, %v5148_v18  ;;  %v1297_v14 = vsel %vm1282_vm2, %v5930_v5, %v4753_v61  ;;  %v6005_v18 = vmov 0.0   ;;  %v1364_v60 = vsel %vm1348_vm4, %v1331_v56, %v4914_v35  ;;  %s217_s10 = scalar_lea.vmem [#allocation3], %s4520_s9 }
 0x207   : > { %v1493_v63 = vsel %vm1480_vm8, %v1460_v39, %v5228_v29  ;;  %1787 = vst.msk [vmem:[#allocation2 + $0x41] sm:$0x1] %vm1766_vm12, %v6005_v18  ;;  %v1330_v7 = vsel %vm1315_vm3, %v1297_v14, %v4833_v40  ;;  %v5153_v29 = vunpack.i.l.bf16 %v7077_v8  ;;  %v5313_v39 = vunpack.i.l.bf16 %v7356_v2  ;;  %3516 = vmatpush.bf16.msra.mxu3 %v4657_v50  ;;  %s4451_s23 = sshll.u32 %s217_s10, 4  ;;  %s4452_s23 = int_to_ptr.vmem [resolvable:$true] %s4451_s23 }
 0x208   : > { %v1526_v47 = vsel %vm1513_vm10, %v1493_v63, %v5308_v54  ;;  %1758 = vst.msk [vmem:[#allocation2] sm:$0xff] %vm1757_vm13, %v6005_v18  ;;  %v5233_v54 = vunpack.i.l.bf16 %v7288_v19 }
 0x209   : > { %1759 = vst.msk [vmem:[#allocation2 + $0x8] sm:$0xff] %vm1757_vm13, %v6005_v18 }
 0x20a   : > { %1763 = vst.msk [vmem:[#allocation2 + $0x198] sm:$0xff] %vm1757_vm13, %v6005_v18 }
 0x20b   : > { %1764 = vst.msk [vmem:[#allocation2 + $0x1a0] sm:$0xff] %vm1757_vm13, %v6005_v18 }
 0x20c   : > { %1768 = vst.msk [vmem:[#allocation2 + $0x18] sm:$0x1] %vm1766_vm12, %v6005_v18 }
 0x20d   : > { %1769 = vst.msk [vmem:[#allocation2 + $0x30] sm:$0x1] %vm1766_vm12, %v6005_v18 }
 0x20e   : > { %1770 = vst.msk [vmem:[#allocation2 + $0x48] sm:$0x1] %vm1766_vm12, %v6005_v18 }
 0x20f   : > { %1771 = vst.msk [vmem:[#allocation2 + $0x60] sm:$0x1] %vm1766_vm12, %v6005_v18 }
 0x210   : > { %1772 = vst.msk [vmem:[#allocation2 + $0x78] sm:$0x1] %vm1766_vm12, %v6005_v18  ;;  %v1900_v50 = vld [vmem:[#allocation2 + $0x2] sm:$0xff] }
 0x211   : > { %1773 = vst.msk [vmem:[#allocation2 + $0x90] sm:$0x1] %vm1766_vm12, %v6005_v18 }
 0x212   : > { %4535 = vmatmul.msk.bf16.gmra.mxu0 %vm1581_vm11, %v1551_v34  ;;  %v5069_v34 = vunpack.i.h.bf16 %v9699_v43  ;;  %v4994_v43 = vunpack.i.h.bf16 %v9704_v58  ;;  %1774 = vst.msk [vmem:[#allocation2 + $0xa8] sm:$0x1] %vm1766_vm12, %v6005_v18 }
 0x213   : > { %1775 = vst.msk [vmem:[#allocation2 + $0xc0] sm:$0x1] %vm1766_vm12, %v6005_v18 }
 0x214   : > { %v1428_v45 = vsel %vm1414_vm6, %v1395_v49, %v5069_v34  ;;  %v4993_v34 = vunpack.i.l.bf16 %v9704_v58  ;;  %v1363_v49 = vsel %vm1348_vm4, %v1330_v7, %v4913_v25  ;;  %1776 = vst.msk [vmem:[#allocation2 + $0xd8] sm:$0x1] %vm1766_vm12, %v6005_v18 }
 0x215   : > { %v1461_v33 = vsel %vm1447_vm7, %v1428_v45, %v5149_v3  ;;  %v5073_v3 = vunpack.i.l.bf16 %v9705_v42  ;;  %v1397_v45 = vsel %vm1381_vm5, %v1364_v60, %v4994_v43  ;;  %1777 = vst.msk [vmem:[#allocation2 + $0xf0] sm:$0x1] %vm1766_vm12, %v6005_v18  ;;  %v1868_v43 = vld [vmem:[#allocation2 + $0x1] sm:$0xff] }
 0x216   : > { %v1494_v31 = vsel %vm1480_vm8, %v1461_v33, %v5229_v4  ;;  %v5154_v4 = vunpack.i.h.bf16 %v7077_v8  ;;  %v1396_v62 = vsel %vm1381_vm5, %v1363_v49, %v4993_v34  ;;  %v5314_v8 = vunpack.i.h.bf16 %v7356_v2  ;;  %1778 = vst.msk [vmem:[#allocation2 + $0x108] sm:$0x1] %vm1766_vm12, %v6005_v18 }
 0x217   : > { %v1527_v53 = vsel %vm1513_vm10, %v1494_v31, %v5309_v0  ;;  %v5234_v0 = vunpack.i.h.bf16 %v7288_v19  ;;  %v1429_v33 = vsel %vm1414_vm6, %v1396_v62, %v5073_v3  ;;  %v1430_v63 = vsel %vm1414_vm6, %v1397_v45, %v5074_v17  ;;  %1779 = vst.msk [vmem:[#allocation2 + $0x120] sm:$0x1] %vm1766_vm12, %v6005_v18 }
 0x218   : > { %v1552_v21 = vpack.c.bf16 %v1527_v53, %v1526_v47  ;;  %v1462_v19 = vsel %vm1447_vm7, %v1429_v33, %v5153_v29  ;;  %v1463_v31 = vsel %vm1447_vm7, %v1430_v63, %v5154_v4  ;;  %1780 = vst.msk [vmem:[#allocation2 + $0x138] sm:$0x1] %vm1766_vm12, %v6005_v18 }
 0x219   : > { %v1495_v47 = vsel %vm1480_vm8, %v1462_v19, %v5233_v54  ;;  %v1496_v2 = vsel %vm1480_vm8, %v1463_v31, %v5234_v0  ;;  %1781 = vst.msk [vmem:[#allocation2 + $0x150] sm:$0x1] %vm1766_vm12, %v6005_v18 }
 0x21a   : > { %v1528_v53 = vsel %vm1513_vm10, %v1495_v47, %v5313_v39  ;;  %v1529_v32 = vsel %vm1513_vm10, %v1496_v2, %v5314_v8  ;;  %1782 = vst.msk [vmem:[#allocation2 + $0x168] sm:$0x1] %vm1766_vm12, %v6005_v18 }
 0x21b   : > { %v1553_v9 = vpack.c.bf16 %v1529_v32, %v1528_v53  ;;  %1783 = vst.msk [vmem:[#allocation2 + $0x180] sm:$0x1] %vm1766_vm12, %v6005_v18 }
 0x21c   : > { %1786 = vst.msk [vmem:[#allocation2 + $0x29] sm:$0x1] %vm1766_vm12, %v6005_v18 }
 0x21d   : > { %1788 = vst.msk [vmem:[#allocation2 + $0x59] sm:$0x1] %vm1766_vm12, %v6005_v18 }
 0x21e   : > { %1789 = vst.msk [vmem:[#allocation2 + $0x71] sm:$0x1] %vm1766_vm12, %v6005_v18 }
 0x21f   : > { %1790 = vst.msk [vmem:[#allocation2 + $0x89] sm:$0x1] %vm1766_vm12, %v6005_v18 }
 0x220   : > { %1791 = vst.msk [vmem:[#allocation2 + $0xa1] sm:$0x1] %vm1766_vm12, %v6005_v18 }
 0x221   : > { %1792 = vst.msk [vmem:[#allocation2 + $0xb9] sm:$0x1] %vm1766_vm12, %v6005_v18 }
 0x222   : > { %4536 = vmatmul.msk.bf16.gmra.mxu0 %vm1581_vm11, %v1552_v21  ;;  %v7731_v21 = vld [vmem:[%s9510_s2] ss:$0 sm:$0xff]  ;;  %1793 = vst.msk [vmem:[#allocation2 + $0xd1] sm:$0x1] %vm1766_vm12, %v6005_v18 }
 0x223   : > { %1794 = vst.msk [vmem:[#allocation2 + $0xe9] sm:$0x1] %vm1766_vm12, %v6005_v18 }
 0x224   : > { %1795 = vst.msk [vmem:[#allocation2 + $0x101] sm:$0x1] %vm1766_vm12, %v6005_v18 }
 0x225   : > { %1796 = vst.msk [vmem:[#allocation2 + $0x119] sm:$0x1] %vm1766_vm12, %v6005_v18 }
 0x226   : > { %1797 = vst.msk [vmem:[#allocation2 + $0x131] sm:$0x1] %vm1766_vm12, %v6005_v18 }
 0x227   : > { %1798 = vst.msk [vmem:[#allocation2 + $0x149] sm:$0x1] %vm1766_vm12, %v6005_v18 }
 0x228   : > { %1799 = vst.msk [vmem:[#allocation2 + $0x161] sm:$0x1] %vm1766_vm12, %v6005_v18 }
 0x229   : > { %1800 = vst.msk [vmem:[#allocation2 + $0x179] sm:$0x1] %vm1766_vm12, %v6005_v18 }
 0x22a   : > { %1801 = vst.msk [vmem:[#allocation2 + $0x191] sm:$0x1] %vm1766_vm12, %v6005_v18 }
 0x22b   : > { %1767 = vst.msk [vmem:[#allocation2] sm:$0x1] %vm1766_vm12, %v6005_v18 }
 0x22c   : > { %1784 = vst.msk [vmem:[#allocation2 + $0x198] sm:$0x1] %vm1766_vm12, %v6005_v18 }
 0x22d   : > { %1761 = vst.msk [vmem:[#allocation2 + $0x10] sm:$0x3] %vm1760_vm14, %v6005_v18 }
 0x22e   : > { %1765 = vst.msk [vmem:[#allocation2 + $0x1a8] sm:$0x3] %vm1760_vm14, %v6005_v18 }
 0x22f   : > { %1785 = vst.msk [vmem:[#allocation2 + $0x11] sm:$0x1] %vm1766_vm12, %v6005_v18 }
 0x230   : > { %1802 = vst.msk [vmem:[#allocation2 + $0x1a9] sm:$0x1] %vm1766_vm12, %v6005_v18 }
 0x232   : > { %4537 = vmatmul.msk.bf16.gmra.mxu0 %vm1581_vm11, %v1553_v9 }
 0x234   : > { %v1869_v5 = vld [vmem:[#allocation2 + $0x9] sm:$0xff] }
 0x235   : > { %v5355_v14 = vpack.i.bf16 %v1869_v5, %v1868_v43 }
 0x237   : > { %5356 = vrot.lane.b32.xlu2 %v5355_v14, %s6006_s14 }
 0x23f   : > { %v1645_v61 = vpop.f32.mrf.mxu0 }
 0x240   : > { %v1646_v1 = vadd.f32 %v7731_v21, %v1645_v61 }
 0x242   : > { %v1725_v40 = vmax.f32 %v1646_v1, 0.0  ;;  %4538 = vmatmul.msk.bf16.gmra.mxu0 %vm1581_vm11, %v1554_v28 }
 0x244   : > { %1804 = vst.msk [vmem:[#allocation2 + $0x19] sm:$0xff] %vm1757_vm13, %v1725_v40 }
 0x247   : > { %v1647_v23 = vpop.f32.mrf.mxu0 }
 0x248   : > { %v1648_v27 = vadd.f32 %v7731_v21, %v1647_v23  ;;  %v1901_v23 = vld [vmem:[#allocation2 + $0xa] sm:$0xff] }
 0x24a   : > { %v1726_v28 = vmax.f32 %v1648_v27, 0.0 }
 0x24b   : > { %v1870_v25 = vld [vmem:[#allocation2 + $0x19] sm:$0xff] }
 0x24c   : > { %1805 = vst.msk [vmem:[#allocation2 + $0x21] sm:$0xff] %vm1757_vm13, %v1726_v28 }
 0x24f   : > { %v1650_v11 = vpop.f32.mrf.mxu0 }
 0x250   : > { %v1651_v26 = vadd.f32 %v7731_v21, %v1650_v11 }
 0x252   : > { %v1727_v35 = vmax.f32 %v1651_v26, 0.0  ;;  %4539 = vmatmul.msk.bf16.gmra.mxu0 %vm1581_vm11, %v1555_v16 }
 0x253   : > { %v1871_v58 = vld [vmem:[#allocation2 + $0x21] sm:$0xff] }
 0x254   : > { %1806 = vst.msk [vmem:[#allocation2 + $0x31] sm:$0xff] %vm1757_vm13, %v1727_v35  ;;  %v5360_v34 = vpack.i.bf16 %v1871_v58, %v1870_v25  ;;  %v1903_v14 = vld [vmem:[#allocation2 + $0x22] sm:$0xff] }
 0x256   : > { %5361 = vrot.lane.b32.xlu0 %v5360_v34, %s6006_s14 }
 0x257   : > { %v1652_v42 = vpop.f32.mrf.mxu0 }
 0x258   : > { %v1653_v17 = vadd.f32 %v7731_v21, %v1652_v42 }
 0x25a   : > { %v1728_v3 = vmax.f32 %v1653_v17, 0.0 }
 0x25b   : > { %v1872_v18 = vld [vmem:[#allocation2 + $0x31] sm:$0xff] }
 0x25c   : > { %1807 = vst.msk [vmem:[#allocation2 + $0x39] sm:$0xff] %vm1757_vm13, %v1728_v3 }
 0x25f   : > { %v1655_v59 = vpop.f32.mrf.mxu0 }
 0x260   : > { %v1656_v38 = vadd.f32 %v7731_v21, %v1655_v59 }
 0x262   : > { %v1729_v16 = vmax.f32 %v1656_v38, 0.0  ;;  %4540 = vmatmul.msk.bf16.gmra.mxu0 %vm1581_vm11, %v1556_v13 }
 0x263   : > { %v2093_v56 = vld [vmem:[#allocation2 + $0x32] sm:$0xff]  ;;  %v2094_v7 = vld [vmem:[#allocation2 + $0x3a] sm:$0xff] }
 0x264   : > { %v1873_v4 = vld [vmem:[#allocation2 + $0x39] sm:$0xff]  ;;  %1808 = vst.msk [vmem:[#allocation2 + $0x49] sm:$0xff] %vm1757_vm13, %v1729_v16  ;;  %v3089_v29 = vpack.c.bf16 %v2094_v7, %v2093_v56  ;;  %v7821_v46 = vpack.i.bf16 %v2094_v7, %v2093_v56 }
 0x265   : > { %v7801_v60 = vpack.i.bf16 %v1873_v4, %v1872_v18 }
 0x266   : > { %4618 = vmatmul.msk.bf16.vlgmr.msra.gmra.mxu3 %vm1757_vm13, %v3089_v29 }
 0x267   : > { %5366 = vrot.lane.b32.xlu1 %v7801_v60, %s6006_s14  ;;  %v1657_v49 = vpop.f32.mrf.mxu0 }
 0x268   : > { %v1658_v0 = vadd.f32 %v7731_v21, %v1657_v49 }
 0x26a   : > { %v1730_v37 = vmax.f32 %v1658_v0, 0.0 }
 0x26b   : > { %v1874_v62 = vld [vmem:[#allocation2 + $0x49] sm:$0xff] }
 0x26c   : > { %1809 = vst.msk [vmem:[#allocation2 + $0x51] sm:$0xff] %vm1757_vm13, %v1730_v37 }
 0x26f   : > { %v1660_v15 = vpop.f32.mrf.mxu0 }
 0x270   : > { %v1661_v13 = vadd.f32 %v7731_v21, %v1660_v15 }
 0x272   : > { %v1731_v54 = vmax.f32 %v1661_v13, 0.0  ;;  %4541 = vmatmul.msk.bf16.gmra.mxu0 %vm1581_vm11, %v1557_v10 }
 0x273   : > { %v1875_v45 = vld [vmem:[#allocation2 + $0x51] sm:$0xff] }
 0x274   : > { %v2095_v8 = vld [vmem:[#allocation2 + $0x4a] sm:$0xff]  ;;  %v2096_v39 = vld [vmem:[#allocation2 + $0x52] sm:$0xff]  ;;  %1810 = vst.msk [vmem:[#allocation2 + $0x61] sm:$0xff] %vm1757_vm13, %v1731_v54  ;;  %v7814_v33 = vpack.i.bf16 %v1875_v45, %v1874_v62 }
 0x275   : > { %v3092_v63 = vpack.c.bf16 %v2096_v39, %v2095_v8  ;;  %v7847_v5 = vpack.i.bf16 %v2096_v39, %v2095_v8 }
 0x276   : > { %5371 = vrot.lane.b32.xlu2 %v7814_v33, %s6006_s14 }
 0x277   : > { %4619 = vmatmul.msk.bf16.gmra.mxu3 %vm1757_vm13, %v3092_v63  ;;  %v1662_v19 = vpop.f32.mrf.mxu0 }
 0x278   : > { %v1663_v31 = vadd.f32 %v7731_v21, %v1662_v19 }
 0x27a   : > { %v1732_v24 = vmax.f32 %v1663_v31, 0.0 }
 0x27b   : > { %v1876_v53 = vld [vmem:[#allocation2 + $0x61] sm:$0xff] }
 0x27c   : > { %1811 = vst.msk [vmem:[#allocation2 + $0x69] sm:$0xff] %vm1757_vm13, %v1732_v24  ;;  %v7901_v24 = vld [vmem:[#allocation2 + $0x48] sm:$0xff] }
 0x27e   : > { %5396 = vrot.lane.b32.xlu2 %v7821_v46, %s6007_s15 }
 0x27f   : > { %v1665_v10 = vpop.f32.mrf.mxu0 }
 0x280   : > { %v1666_v47 = vadd.f32 %v7731_v21, %v1665_v10  ;;  %v7903_v10 = vld [vmem:[#allocation2 + $0x50] sm:$0xff] }
 0x282   : > { %v1733_v2 = vmax.f32 %v1666_v47, 0.0  ;;  %4542 = vmatmul.msk.bf16.gmra.mxu0 %vm1581_vm11, %v1558_v44  ;;  %v5385_v44 = vpack.i.bf16 %v1901_v23, %v1900_v50  ;;  %v2030_v47 = vld [vmem:[#allocation2 + $0x38] sm:$0xff] }
 0x283   : > { %v2097_v32 = vld [vmem:[#allocation2 + $0x62] sm:$0xff]  ;;  %v2098_v9 = vld [vmem:[#allocation2 + $0x6a] sm:$0xff] }
 0x284   : > { %v1877_v61 = vld [vmem:[#allocation2 + $0x69] sm:$0xff]  ;;  %1812 = vst.msk [vmem:[#allocation2 + $0x79] sm:$0xff] %vm1757_vm13, %v1733_v2  ;;  %v3095_v22 = vpack.c.bf16 %v2098_v9, %v2097_v32  ;;  %v7868_v49 = vpack.i.bf16 %v2098_v9, %v2097_v32  ;;  %v5440_v2 = vpack.i.bf16 %v7901_v24, %v2030_v47 }
 0x285   : > { %v7831_v1 = vpack.i.bf16 %v1877_v61, %v1876_v53 }
 0x287   : > { %4620 = vmatmul.msk.bf16.gmra.mxu3 %vm1757_vm13, %v3095_v22  ;;  %5376 = vrot.lane.b32.xlu0 %v7831_v1, %s6006_s14  ;;  %v1667_v40 = vpop.f32.mrf.mxu0 }
 0x288   : > { %v1668_v41 = vadd.f32 %v7731_v21, %v1667_v40 }
 0x28a   : > { %v1734_v30 = vmax.f32 %v1668_v41, 0.0 }
 0x28b   : > { %v1878_v26 = vld [vmem:[#allocation2 + $0x79] sm:$0xff] }
 0x28c   : > { %1813 = vst.msk [vmem:[#allocation2 + $0x81] sm:$0xff] %vm1757_vm13, %v1734_v30 }
 0x28f   : > { %5386 = vrot.lane.b32.xlu0 %v5385_v44, %s6007_s15  ;;  %v1670_v27 = vpop.f32.mrf.mxu0 }
 0x290   : > { %v1671_v28 = vadd.f32 %v7731_v21, %v1670_v27 }
 0x291   : > { %v7924_v27 = vpop.permute.xlu2 %5356 }
 0x292   : > { %v1735_v11 = vmax.f32 %v1671_v28, 0.0  ;;  %4543 = vmatmul.msk.bf16.gmra.mxu0 %vm1581_vm11, %v1559_v12  ;;  %v1902_v12 = vld [vmem:[#allocation2 + $0x1a] sm:$0xff] }
 0x293   : > { %v2099_v35 = vld [vmem:[#allocation2 + $0x7a] sm:$0xff]  ;;  %v2100_v25 = vld [vmem:[#allocation2 + $0x82] sm:$0xff]  ;;  %v7856_v17 = vpack.i.bf16 %v1903_v14, %v1902_v12 }
 0x294   : > { %v1879_v58 = vld [vmem:[#allocation2 + $0x81] sm:$0xff]  ;;  %1814 = vst.msk [vmem:[#allocation2 + $0x91] sm:$0xff] %vm1757_vm13, %v1735_v11  ;;  %v3098_v43 = vpack.c.bf16 %v2100_v25, %v2099_v35  ;;  %v7877_v0 = vpack.i.bf16 %v2100_v25, %v2099_v35  ;;  %v7934_v25 = vld [vmem:[#allocation2 + $0x18] sm:$0xff] }
 0x295   : > { %v7845_v34 = vpack.i.bf16 %v1879_v58, %v1878_v26  ;;  %v7931_v35 = vld [vmem:[#allocation2 + $0x20] sm:$0xff] }
 0x296   : > { %v5450_v58 = vpack.i.bf16 %v7931_v35, %v7934_v25 }
 0x297   : > { %4621 = vmatmul.msk.bf16.gmra.mxu3 %vm1757_vm13, %v3098_v43  ;;  %5381 = vrot.lane.b32.xlu1 %v7845_v34, %s6006_s14  ;;  %v1672_v36 = vpop.f32.mrf.mxu0 }
 0x298   : > { %5401 = vrot.lane.b32.xlu0 %v7847_v5, %s6007_s15  ;;  %v1673_v52 = vadd.f32 %v7731_v21, %v1672_v36 }
 0x29a   : > { %v1736_v42 = vmax.f32 %v1673_v52, 0.0 }
 0x29b   : > { %v1880_v16 = vld [vmem:[#allocation2 + $0x91] sm:$0xff] }
 0x29c   : > { %1815 = vst.msk [vmem:[#allocation2 + $0x99] sm:$0xff] %vm1757_vm13, %v1736_v42 }
 0x29f   : > { %5391 = vrot.lane.b32.xlu1 %v7856_v17, %s6007_s15  ;;  %v1675_v3 = vpop.f32.mrf.mxu0 }
 0x2a0   : > { %v1676_v59 = vadd.f32 %v7731_v21, %v1675_v3 }
 0x2a2   : > { %v1737_v38 = vmax.f32 %v1676_v59, 0.0  ;;  %4544 = vmatmul.msk.bf16.gmra.mxu0 %vm1581_vm11, %v1560_v55 }
 0x2a3   : > { %v2101_v18 = vld [vmem:[#allocation2 + $0x92] sm:$0xff]  ;;  %v2102_v56 = vld [vmem:[#allocation2 + $0x9a] sm:$0xff] }
 0x2a4   : > { %v1881_v7 = vld [vmem:[#allocation2 + $0x99] sm:$0xff]  ;;  %1816 = vst.msk [vmem:[#allocation2 + $0xa9] sm:$0xff] %vm1757_vm13, %v1737_v38  ;;  %v3101_v4 = vpack.c.bf16 %v2102_v56, %v2101_v18  ;;  %v7909_v53 = vpack.i.bf16 %v2102_v56, %v2101_v18 }
 0x2a5   : > { %v7866_v29 = vpack.i.bf16 %v1881_v7, %v1880_v16  ;;  %v7947_v16 = vld [vmem:[#allocation2 + $0x30] sm:$0xff] }
 0x2a6   : > { %v5490_v18 = vpack.i.bf16 %v2030_v47, %v7947_v16 }
 0x2a7   : > { %4622 = vmatmul.msk.bf16.gmra.mxu3 %vm1757_vm13, %v3101_v4  ;;  %5411 = vrot.lane.b32.xlu2 %v7866_v29, %s6006_s14  ;;  %v1677_v51 = vpop.f32.mrf.mxu0 }
 0x2a8   : > { %5406 = vrot.lane.b32.xlu1 %v7868_v49, %s6007_s15  ;;  %v1678_v6 = vadd.f32 %v7731_v21, %v1677_v51 }
 0x2aa   : > { %v1738_v55 = vmax.f32 %v1678_v6, 0.0 }
 0x2ab   : > { %v1882_v54 = vld [vmem:[#allocation2 + $0xa9] sm:$0xff] }
 0x2ac   : > { %1817 = vst.msk [vmem:[#allocation2 + $0xb1] sm:$0xff] %vm1757_vm13, %v1738_v55 }
 0x2af   : > { %5416 = vrot.lane.b32.xlu2 %v7877_v0, %s6007_s15  ;;  %v1680_v37 = vpop.f32.mrf.mxu0 }
 0x2b0   : > { %v1681_v15 = vadd.f32 %v7731_v21, %v1680_v37 }
 0x2b2   : > { %v1739_v13 = vmax.f32 %v1681_v15, 0.0  ;;  %4545 = vmatmul.msk.bf16.gmra.mxu0 %vm1581_vm11, %v1561_v20  ;;  %v7899_v20 = vld [vmem:[#allocation2 + $0x60] sm:$0xff] }
 0x2b3   : > { %v2103_v62 = vld [vmem:[#allocation2 + $0xaa] sm:$0xff]  ;;  %v2104_v45 = vld [vmem:[#allocation2 + $0xb2] sm:$0xff] }
 0x2b4   : > { %v1883_v8 = vld [vmem:[#allocation2 + $0xb1] sm:$0xff]  ;;  %1818 = vst.msk [vmem:[#allocation2 + $0xc1] sm:$0xff] %vm1757_vm13, %v1739_v13  ;;  %v3104_v39 = vpack.c.bf16 %v2104_v45, %v2103_v62  ;;  %v7887_v63 = vpack.i.bf16 %v2104_v45, %v2103_v62 }
 0x2b5   : > { %v7889_v19 = vpack.i.bf16 %v1883_v8, %v1882_v54 }
 0x2b6   : > { %5436 = vrot.lane.b32.xlu1 %v7887_v63, %s6007_s15 }
 0x2b7   : > { %4623 = vmatmul.msk.bf16.gmra.mxu3 %vm1757_vm13, %v3104_v39  ;;  %5446 = vrot.lane.b32.xlu2 %v7801_v60, %s6008_s16  ;;  %v1682_v57 = vpop.f32.mrf.mxu0  ;;  %v5465_v60 = vpack.i.bf16 %v7899_v20, %v7903_v10 }
 0x2b8   : > { %5421 = vrot.lane.b32.xlu0 %v7889_v19, %s6006_s14  ;;  %v1683_v48 = vadd.f32 %v7731_v21, %v1682_v57 }
 0x2ba   : > { %v1740_v31 = vmax.f32 %v1683_v48, 0.0 }
 0x2bb   : > { %v1884_v22 = vld [vmem:[#allocation2 + $0xc1] sm:$0xff] }
 0x2bc   : > { %1819 = vst.msk [vmem:[#allocation2 + $0xc9] sm:$0xff] %vm1757_vm13, %v1740_v31 }
 0x2be   : > { %5441 = vrot.lane.b32.xlu1 %v5440_v2, %s6007_s15 }
 0x2bf   : > { %5466 = vrot.lane.b32.xlu2 %v5465_v60, %s6007_s15  ;;  %v1685_v32 = vpop.f32.mrf.mxu0 }
 0x2c0   : > { %5426 = vrot.lane.b32.xlu0 %v7909_v53, %s6007_s15  ;;  %v1686_v9 = vadd.f32 %v7731_v21, %v1685_v32 }
 0x2c2   : > { %v1741_v61 = vmax.f32 %v1686_v9, 0.0 }
 0x2c3   : > { %v2105_v40 = vld [vmem:[#allocation2 + $0xc2] sm:$0xff]  ;;  %v2106_v50 = vld [vmem:[#allocation2 + $0xca] sm:$0xff] }
 0x2c4   : > { %v1885_v23 = vld [vmem:[#allocation2 + $0xc9] sm:$0xff]  ;;  %1820 = vst.msk [vmem:[#allocation2 + $0xd9] sm:$0xff] %vm1757_vm13, %v1741_v61  ;;  %v3107_v41 = vpack.c.bf16 %v2106_v50, %v2105_v40  ;;  %v7917_v30 = vpack.i.bf16 %v2106_v50, %v2105_v40  ;;  %v7992_v50 = vld [vmem:[#allocation2 + $0x78] sm:$0xff] }
 0x2c5   : > { %v7919_v44 = vpack.i.bf16 %v1885_v23, %v1884_v22  ;;  %v7990_v40 = vld [vmem:[#allocation2 + $0x90] sm:$0xff]  ;;  %v7995_v23 = vld [vmem:[#allocation2 + $0x80] sm:$0xff] }
 0x2c7   : > { %4624 = vmatmul.msk.bf16.gmra.mxu3 %vm1757_vm13, %v3107_v41  ;;  %5471 = vrot.lane.b32.xlu2 %v7917_v30, %s6007_s15  ;;  %v1687_v28 = vpop.f32.mrf.mxu0  ;;  %v7997_v41 = vld [vmem:[#allocation2 + $0x68] sm:$0xff] }
 0x2c8   : > { %5456 = vrot.lane.b32.xlu1 %v7919_v44, %s6006_s14  ;;  %5431 = vrot.lane.b32.xlu0 %v7856_v17, %s6006_s14  ;;  %v1688_v11 = vadd.f32 %v7731_v21, %v1687_v28  ;;  %v5530_v28 = vpack.i.bf16 %v7990_v40, %v7995_v23 }
 0x2ca   : > { %v1742_v26 = vmax.f32 %v1688_v11, 0.0  ;;  %v5505_v11 = vpack.i.bf16 %v7992_v50, %v7997_v41 }
 0x2cb   : > { %v1886_v14 = vld [vmem:[#allocation2 + $0xd9] sm:$0xff] }
 0x2cc   : > { %1821 = vst.msk [vmem:[#allocation2 + $0xe1] sm:$0xff] %vm1757_vm13, %v1742_v26 }
 0x2cf   : > { %v1690_v43 = vpop.f32.mrf.mxu0 }
 0x2d0   : > { %5461 = vrot.lane.b32.xlu1 %v7821_v46, %s6006_s14  ;;  %5451 = vrot.lane.b32.xlu0 %v5450_v58, %s6008_s16  ;;  %v1691_v36 = vadd.f32 %v7731_v21, %v1690_v43  ;;  %v7942_v52 = vpop.permute.xlu2 %5371  ;;  %v8007_v58 = vpop.permute.xlu0 %5361 }
 0x2d2   : > { %v1743_v12 = vmax.f32 %v1691_v36, 0.0  ;;  %v8010_v36 = vld [vmem:[#allocation2 + $0xa8] sm:$0xff] }
 0x2d3   : > { %v2107_v42 = vld [vmem:[#allocation2 + $0xda] sm:$0xff]  ;;  %v2108_v17 = vld [vmem:[#allocation2 + $0xe2] sm:$0xff] }
 0x2d4   : > { %v1887_v3 = vld [vmem:[#allocation2 + $0xe1] sm:$0xff]  ;;  %1822 = vst.msk [vmem:[#allocation2 + $0xf1] sm:$0xff] %vm1757_vm13, %v1743_v12  ;;  %v3110_v59 = vpack.c.bf16 %v2108_v17, %v2107_v42  ;;  %v7949_v46 = vpack.i.bf16 %v2108_v17, %v2107_v42 }
 0x2d5   : > { %v7945_v38 = vpack.i.bf16 %v1887_v3, %v1886_v14  ;;  %v8012_v14 = vld [vmem:[#allocation2 + $0x98] sm:$0xff] }
 0x2d7   : > { %4625 = vmatmul.msk.bf16.gmra.mxu3 %vm1757_vm13, %v3110_v59  ;;  %5476 = vrot.lane.b32.xlu2 %v7945_v38, %s6006_s14  ;;  %v1692_v56 = vpop.f32.mrf.mxu0 }
 0x2d8   : > { %5491 = vrot.lane.b32.xlu1 %v5490_v18, %s6008_s16  ;;  %5481 = vrot.lane.b32.xlu0 %v7949_v46, %s6007_s15  ;;  %v1693_v7 = vadd.f32 %v7731_v21, %v1692_v56  ;;  %v5397_v4 = vpop.permute.xlu2 %5396  ;;  %v5555_v18 = vpack.i.bf16 %v8010_v36, %v8012_v14 }
 0x2d9   : > { %v5367_v51 = vpop.permute.xlu1 %5366  ;;  %v5399_v6 = vunpack.i.h.bf16 %v5397_v4  ;;  %v5398_v55 = vunpack.i.l.bf16 %v5397_v4 }
 0x2da   : > { %v5369_v37 = vunpack.i.h.bf16 %v5367_v51  ;;  %v5368_v15 = vunpack.i.l.bf16 %v5367_v51  ;;  %v1744_v13 = vmax.f32 %v1693_v7, 0.0 }
 0x2db   : > { %v1888_v31 = vld [vmem:[#allocation2 + $0xf1] sm:$0xff] }
 0x2dc   : > { %v2897_v54 = vsel %vm1757_vm13, %v7947_v16, %v5368_v15  ;;  %v2898_v62 = vsel %vm1757_vm13, %v2030_v47, %v5369_v37  ;;  %1823 = vst.msk [vmem:[#allocation2 + $0xf9] sm:$0xff] %vm1757_vm13, %v1744_v13  ;;  %v5540_v37 = vpack.i.bf16 %v7997_v41, %v7899_v20 }
 0x2dd   : > { %v7964_v45 = vsel %vm2925_vm15, %v2897_v54, %v5398_v55  ;;  %v7967_v8 = vsel %vm2925_vm15, %v2898_v62, %v5399_v6 }
 0x2df   : > { %5496 = vrot.lane.b32.xlu2 %v7847_v5, %s6006_s14  ;;  %v1695_v39 = vpop.f32.mrf.mxu0  ;;  %v5515_v5 = vpack.i.bf16 %v7903_v10, %v7901_v24 }
 0x2e0   : > { %5511 = vrot.lane.b32.xlu1 %v7831_v1, %s6008_s16  ;;  %5486 = vrot.lane.b32.xlu0 %v7814_v33, %s6008_s16  ;;  %v1696_v57 = vadd.f32 %v7731_v21, %v1695_v39 }
 0x2e2   : > { %v1745_v48 = vmax.f32 %v1696_v57, 0.0 }
 0x2e3   : > { %v2109_v60 = vld [vmem:[#allocation2 + $0xf2] sm:$0xff]  ;;  %v2110_v47 = vld [vmem:[#allocation2 + $0xfa] sm:$0xff] }
 0x2e4   : > { %v1889_v2 = vld [vmem:[#allocation2 + $0xf9] sm:$0xff]  ;;  %1824 = vst.msk [vmem:[#allocation2 + $0x109] sm:$0xff] %vm1757_vm13, %v1745_v48  ;;  %v3113_v32 = vpack.c.bf16 %v2110_v47, %v2109_v60  ;;  %v7979_v9 = vpack.i.bf16 %v2110_v47, %v2109_v60 }
 0x2e5   : > { %v7981_v1 = vpack.i.bf16 %v1889_v2, %v1888_v31  ;;  %v5580_v2 = vpack.i.bf16 %v7995_v23, %v7992_v50 }
 0x2e7   : > { %4626 = vmatmul.msk.bf16.gmra.mxu3 %vm1757_vm13, %v3113_v32  ;;  %5516 = vrot.lane.b32.xlu2 %v5515_v5, %s6008_s16  ;;  %v1697_v33 = vpop.f32.mrf.mxu0  ;;  %v5374_v32 = vunpack.i.h.bf16 %v7942_v52  ;;  %v5373_v5 = vunpack.i.l.bf16 %v7942_v52 }
 0x2e8   : > { %5526 = vrot.lane.b32.xlu1 %v7979_v9, %s6007_s15  ;;  %5501 = vrot.lane.b32.xlu0 %v7981_v1, %s6006_s14  ;;  %v1698_v61 = vadd.f32 %v7731_v21, %v1697_v33 }
 0x2ea   : > { %v1746_v22 = vmax.f32 %v1698_v61, 0.0  ;;  %v4648_v61 = vld [vmem:[%s9511_s3 + $0x38] sm:$0xff] }
 0x2eb   : > { %v1890_v42 = vld [vmem:[#allocation2 + $0x109] sm:$0xff]  ;;  %3331 = vmatpush.bf16.msra.mxu1 %v4648_v61 }
 0x2ec   : > { %1825 = vst.msk [vmem:[#allocation2 + $0x111] sm:$0xff] %vm1757_vm13, %v1746_v22 }
 0x2ef   : > { %5536 = vrot.lane.b32.xlu2 %v7845_v34, %s6008_s16  ;;  %v1700_v26 = vpop.f32.mrf.mxu0 }
 0x2f0   : > { %5531 = vrot.lane.b32.xlu1 %v5530_v28, %s6007_s15  ;;  %5506 = vrot.lane.b32.xlu0 %v5505_v11, %s6007_s15  ;;  %v1701_v43 = vadd.f32 %v7731_v21, %v1700_v26 }
 0x2f2   : > { %v1747_v12 = vmax.f32 %v1701_v43, 0.0 }
 0x2f3   : > { %v2111_v17 = vld [vmem:[#allocation2 + $0x10a] sm:$0xff]  ;;  %v2112_v3 = vld [vmem:[#allocation2 + $0x112] sm:$0xff] }
 0x2f4   : > { %v1891_v59 = vld [vmem:[#allocation2 + $0x111] sm:$0xff]  ;;  %1826 = vst.msk [vmem:[#allocation2 + $0x121] sm:$0xff] %vm1757_vm13, %v1747_v12  ;;  %v3116_v34 = vpack.c.bf16 %v2112_v3, %v2111_v17  ;;  %v8029_v55 = vpack.i.bf16 %v2112_v3, %v2111_v17 }
 0x2f5   : > { %v8017_v56 = vpack.i.bf16 %v1891_v59, %v1890_v42 }
 0x2f7   : > { %4627 = vmatmul.msk.bf16.gmra.mxu3 %vm1757_vm13, %v3116_v34  ;;  %5556 = vrot.lane.b32.xlu2 %v5555_v18, %s6007_s15  ;;  %v1702_v7 = vpop.f32.mrf.mxu0  ;;  %v2899_v34 = vsel %vm1757_vm13, %v7901_v24, %v5373_v5  ;;  %v2900_v18 = vsel %vm1757_vm13, %v7903_v10, %v5374_v32 }
 0x2f8   : > { %5546 = vrot.lane.b32.xlu1 %v8017_v56, %s6006_s14  ;;  %5521 = vrot.lane.b32.xlu0 %v7868_v49, %s6006_s14  ;;  %v1703_v4 = vadd.f32 %v7731_v21, %v1702_v7 }
 0x2f9   : > { %v8026_v51 = vpop.permute.xlu0 %5376 }
 0x2fa   : > { %v1748_v6 = vmax.f32 %v1703_v4, 0.0  ;;  %v5379_v61 = vunpack.i.h.bf16 %v8026_v51 }
 0x2fb   : > { %v1892_v39 = vld [vmem:[#allocation2 + $0x121] sm:$0xff] }
 0x2fc   : > { %1827 = vst.msk [vmem:[#allocation2 + $0x129] sm:$0xff] %vm1757_vm13, %v1748_v6  ;;  %v4647_v6 = vld [vmem:[%s9511_s3 + $0x30] sm:$0xff] }
 0x2fd   : > { %3332 = vmatpush.bf16.msra.mxu1 %v4647_v6 }
 0x2ff   : > { %5561 = vrot.lane.b32.xlu2 %v8029_v55, %s6007_s15  ;;  %v1705_v49 = vpop.f32.mrf.mxu0 }
 0x300   : > { %5551 = vrot.lane.b32.xlu1 %v7877_v0, %s6006_s14  ;;  %5541 = vrot.lane.b32.xlu0 %v5540_v37, %s6008_s16  ;;  %v1706_v15 = vadd.f32 %v7731_v21, %v1705_v49  ;;  %v4646_v49 = vld [vmem:[%s9511_s3 + $0x28] sm:$0xff] }
 0x301   : > { %v8039_v13 = vpop.permute.xlu2 %5411  ;;  %v8041_v54 = vpop.permute.xlu0 %5386  ;;  %3333 = vmatpush.bf16.msra.mxu1 %v4646_v49 }
 0x302   : > { %v1749_v62 = vmax.f32 %v1706_v15, 0.0 }
 0x303   : > { %v2113_v57 = vld [vmem:[#allocation2 + $0x122] sm:$0xff]  ;;  %v2114_v48 = vld [vmem:[#allocation2 + $0x12a] sm:$0xff] }
 0x304   : > { %v1893_v31 = vld [vmem:[#allocation2 + $0x129] sm:$0xff]  ;;  %1828 = vst.msk [vmem:[#allocation2 + $0x139] sm:$0xff] %vm1757_vm13, %v1749_v62  ;;  %v3119_v60 = vpack.c.bf16 %v2114_v48, %v2113_v57  ;;  %v8046_v0 = vpack.i.bf16 %v2114_v48, %v2113_v57 }
 0x305   : > { %v8044_v47 = vpack.i.bf16 %v1893_v31, %v1892_v39 }
 0x307   : > { %4628 = vmatmul.msk.bf16.gmra.mxu3 %vm1757_vm13, %v3119_v60  ;;  %5566 = vrot.lane.b32.xlu2 %v8044_v47, %s6006_s14  ;;  %v1707_v33 = vpop.f32.mrf.mxu0  ;;  %v8098_v60 = vpop.f32.mrf.mxu3 }
 0x308   : > { %5581 = vrot.lane.b32.xlu1 %v5580_v2, %s6008_s16  ;;  %5571 = vrot.lane.b32.xlu0 %v8046_v0, %s6007_s15  ;;  %v1708_v22 = vadd.f32 %v7731_v21, %v1707_v33  ;;  %9706 = vst [vmem:[#allocation28_spill] sm:$0xff] %v8098_v60  ;;  %v5605_v2 = vpack.i.bf16 %v8012_v14, %v7990_v40  ;;  %v4645_v33 = vld [vmem:[%s9511_s3 + $0x20] sm:$0xff] }
 0x309   : > { %v5417_v28 = vpop.permute.xlu2 %5416  ;;  %v5382_v11 = vpop.permute.xlu1 %5381  ;;  %3334 = vmatpush.bf16.msra.mxu1 %v4645_v33 }
 0x30a   : > { %v5419_v26 = vunpack.i.h.bf16 %v5417_v28  ;;  %v5418_v43 = vunpack.i.l.bf16 %v5417_v28  ;;  %v5384_v12 = vunpack.i.h.bf16 %v5382_v11  ;;  %v5383_v42 = vunpack.i.l.bf16 %v5382_v11  ;;  %v5402_v17 = vpop.permute.xlu0 %5401 }
 0x30b   : > { %v1750_v52 = vmax.f32 %v1708_v22, 0.0  ;;  %v5404_v3 = vunpack.i.h.bf16 %v5402_v17  ;;  %v5403_v59 = vunpack.i.l.bf16 %v5402_v17  ;;  %v1894_v57 = vld [vmem:[#allocation2 + $0x139] sm:$0xff]  ;;  %v5378_v22 = vunpack.i.l.bf16 %v8026_v51 }
 0x30c   : > { %v2904_v7 = vsel %vm1757_vm13, %v7995_v23, %v5384_v12  ;;  %v2903_v4 = vsel %vm1757_vm13, %v7992_v50, %v5383_v42  ;;  %v8126_v51 = vld [vmem:[#allocation2 + $0xc0] sm:$0xff] }
 0x30d   : > { %1829 = vst.msk [vmem:[#allocation2 + $0x141] sm:$0xff] %vm1757_vm13, %v1750_v52  ;;  %v8075_v37 = vsel %vm2925_vm15, %v2899_v34, %v5403_v59  ;;  %v8078_v24 = vsel %vm2925_vm15, %v2900_v18, %v5404_v3  ;;  %v8081_v10 = vsel %vm2925_vm15, %v2903_v4, %v5418_v43  ;;  %v8084_v23 = vsel %vm2925_vm15, %v2904_v7, %v5419_v26  ;;  %v4644_v26 = vld [vmem:[%s9511_s3 + $0x18] sm:$0xff]  ;;  %v8133_v34 = vld [vmem:[#allocation2 + $0xc8] sm:$0xff]  ;;  %v2040_v18 = vld [vmem:[#allocation2 + $0xb0] sm:$0xff] }
 0x30e   : > { %v8124_v52 = vld [vmem:[#allocation2 + $0xd8] sm:$0xff]  ;;  %v2902_v3 = vsel %vm1757_vm13, %v7997_v41, %v5379_v61  ;;  %v2901_v59 = vsel %vm1757_vm13, %v7899_v20, %v5378_v22  ;;  %3335 = vmatpush.bf16.msra.mxu1 %v4644_v26  ;;  %v4643_v7 = vld [vmem:[%s9511_s3 + $0x10] sm:$0xff]  ;;  %v5595_v20 = vpack.i.bf16 %v8126_v51, %v2040_v18 }
 0x30f   : > { %5586 = vrot.lane.b32.xlu2 %v7909_v53, %s6006_s14  ;;  %v1710_v50 = vpop.f32.mrf.mxu0  ;;  %v5620_v41 = vpack.i.bf16 %v8124_v52, %v8133_v34 }
 0x310   : > { %5601 = vrot.lane.b32.xlu1 %v7889_v19, %s6008_s16  ;;  %5576 = vrot.lane.b32.xlu0 %v7866_v29, %s6008_s16  ;;  %v1711_v15 = vadd.f32 %v7731_v21, %v1710_v50  ;;  %v8147_v50 = vpop.f32.mrf.mxu3 }
 0x311   : > { %v8096_v62 = vpop.permute.xlu1 %5391  ;;  %v8101_v29 = vpop.permute.xlu2 %5446  ;;  %9707 = vst [vmem:[#allocation31_spill] sm:$0xff] %v8147_v50 }
 0x312   : > { %v1751_v39 = vmax.f32 %v1711_v15, 0.0  ;;  %3336 = vmatpush.bf16.msra.mxu1 %v4643_v7 }
 0x314   : > { %v2115_v48 = vld [vmem:[#allocation2 + $0x13a] sm:$0xff]  ;;  %v2116_v53 = vld [vmem:[#allocation2 + $0x142] sm:$0xff]  ;;  %1830 = vst.msk [vmem:[#allocation2 + $0x151] sm:$0xff] %vm1757_vm13, %v1751_v39 }
 0x315   : > { %v1895_v31 = vld [vmem:[#allocation2 + $0x141] sm:$0xff]  ;;  %v3122_v19 = vpack.c.bf16 %v2116_v53, %v2115_v48  ;;  %v8105_v32 = vpack.i.bf16 %v2116_v53, %v2115_v48  ;;  %v8159_v48 = vld [vmem:[#allocation2 + $0xf0] sm:$0xff] }
 0x316   : > { %v8107_v5 = vpack.i.bf16 %v1895_v31, %v1894_v57  ;;  %v4642_v57 = vld [vmem:[%s9511_s3 + $0x8] sm:$0xff]  ;;  %v8161_v31 = vld [vmem:[#allocation2 + $0xe0] sm:$0xff] }
 0x317   : > { %4629 = vmatmul.msk.bf16.gmra.mxu3 %vm1757_vm13, %v3122_v19  ;;  %5606 = vrot.lane.b32.xlu2 %v5605_v2, %s6008_s16  ;;  %v1712_v28 = vpop.f32.mrf.mxu0  ;;  %v5645_v22 = vpack.i.bf16 %v8159_v48, %v8161_v31 }
 0x318   : > { %5616 = vrot.lane.b32.xlu1 %v8105_v32, %s6007_s15  ;;  %5591 = vrot.lane.b32.xlu0 %v8107_v5, %s6006_s14  ;;  %v1713_v11 = vadd.f32 %v7731_v21, %v1712_v28 }
 0x319   : > { %v8149_v49 = vpop.permute.xlu2 %5466  ;;  %3337 = vmatpush.bf16.msra.mxu1 %v4642_v57 }
 0x31a   : > { %v5407_v43 = vpop.permute.xlu1 %5406  ;;  %v1752_v12 = vmax.f32 %v1713_v11, 0.0  ;;  %v4641_v11 = vld [vmem:[%s9511_s3] sm:$0xff] }
 0x31b   : > { %v5409_v42 = vunpack.i.h.bf16 %v5407_v43  ;;  %v5408_v17 = vunpack.i.l.bf16 %v5407_v43  ;;  %v1896_v19 = vld [vmem:[#allocation2 + $0x151] sm:$0xff]  ;;  %v8183_v43 = vpop.f32.mrf.mxu3 }
 0x31c   : > { %1831 = vst.msk [vmem:[#allocation2 + $0x159] sm:$0xff] %vm1757_vm13, %v1752_v12 }
 0x31d   : > { %v8139_v4 = vsel %vm2925_vm15, %v2901_v59, %v5408_v17  ;;  %v8142_v6 = vsel %vm2925_vm15, %v2902_v3, %v5409_v42  ;;  %9708 = vst [vmem:[#allocation33_spill] sm:$0xff] %v8183_v43  ;;  %3338 = vmatpush.bf16.msra.mxu1 %v4641_v11 }
 0x31f   : > { %5626 = vrot.lane.b32.xlu2 %v7919_v44, %s6008_s16  ;;  %v1715_v15 = vpop.f32.mrf.mxu0 }
 0x320   : > { %5621 = vrot.lane.b32.xlu1 %v5620_v41, %s6007_s15  ;;  %5596 = vrot.lane.b32.xlu0 %v5595_v20, %s6007_s15  ;;  %v1716_v39 = vadd.f32 %v7731_v21, %v1715_v15 }
 0x321   : > { %v8185_v12 = vpop.permute.xlu2 %5471 }
 0x322   : > { %v1753_v53 = vmax.f32 %v1716_v39, 0.0 }
 0x323   : > { %v8163_v2 = vld [vmem:[#allocation2 + $0x152] sm:$0xff]  ;;  %v8165_v44 = vld [vmem:[#allocation2 + $0x15a] sm:$0xff] }
 0x324   : > { %v1897_v33 = vld [vmem:[#allocation2 + $0x159] sm:$0xff]  ;;  %1832 = vst.msk [vmem:[#allocation2 + $0x169] sm:$0xff] %vm1757_vm13, %v1753_v53  ;;  %v3125_v61 = vpack.c.bf16 %v8165_v44, %v8163_v2  ;;  %v5630_v53 = vpack.i.bf16 %v2040_v18, %v8010_v36 }
 0x325   : > { %v8172_v28 = vpack.i.bf16 %v1897_v33, %v1896_v19 }
 0x327   : > { %4630 = vmatmul.msk.bf16.gmra.mxu3 %vm1757_vm13, %v3125_v61  ;;  %5646 = vrot.lane.b32.xlu2 %v5645_v22, %s6007_s15  ;;  %v1717_v26 = vpop.f32.mrf.mxu0  ;;  %v5414_v61 = vunpack.i.h.bf16 %v8039_v13  ;;  %v5413_v22 = vunpack.i.l.bf16 %v8039_v13 }
 0x328   : > { %5636 = vrot.lane.b32.xlu1 %v8172_v28, %s6006_s14  ;;  %5611 = vrot.lane.b32.xlu0 %v7887_v63, %s6006_s14  ;;  %v1718_v42 = vadd.f32 %v7731_v21, %v1717_v26  ;;  %v5437_v17 = vpop.permute.xlu1 %5436  ;;  %v5660_v63 = vpack.i.bf16 %v7947_v16, %v8163_v2 }
 0x329   : > { %v5439_v7 = vunpack.i.h.bf16 %v5437_v17  ;;  %v5438_v41 = vunpack.i.l.bf16 %v5437_v17  ;;  %v2905_v13 = vsel %vm1757_vm13, %v7990_v40, %v5413_v22  ;;  %v5469_v22 = vunpack.i.h.bf16 %v8149_v49 }
 0x32a   : > { %v5422_v3 = vpop.permute.xlu0 %5421  ;;  %v1754_v59 = vmax.f32 %v1718_v42, 0.0  ;;  %v8212_v42 = vpop.f32.mrf.mxu3 }
 0x32b   : > { %v5424_v20 = vunpack.i.h.bf16 %v5422_v3  ;;  %v5423_v15 = vunpack.i.l.bf16 %v5422_v3  ;;  %9711 = vst [vmem:[#allocation8_spill] sm:$0xff] %v8212_v42  ;;  %v1965_v42 = vld [vmem:[#allocation2 + $0x21] sm:$0xff]  ;;  %v1898_v43 = vld [vmem:[#allocation2 + $0x169] sm:$0xff] }
 0x32c   : > { %1833 = vst.msk [vmem:[#allocation2 + $0x171] sm:$0xff] %vm1757_vm13, %v1754_v59  ;;  %v2906_v59 = vsel %vm1757_vm13, %v8012_v14, %v5414_v61 }
 0x32d   : > { %v2908_v39 = vsel %vm1757_vm13, %v2040_v18, %v5424_v20  ;;  %v2907_v57 = vsel %vm1757_vm13, %v8010_v36, %v5423_v15 }
 0x32e   : > { %v8196_v19 = vsel %vm2925_vm15, %v2908_v39, %v5439_v7  ;;  %v8200_v33 = vsel %vm2925_vm15, %v2907_v57, %v5438_v41  ;;  %v5655_v39 = vpack.i.bf16 %v8133_v34, %v8126_v51  ;;  %v5358_v57 = vunpack.i.l.bf16 %v7924_v27 }
 0x32f   : > { %9709 = vst [vmem:[#allocation12_spill] sm:$0xff] %v8196_v19  ;;  %5661 = vrot.lane.b32.xlu2 %v5660_v63, %s6007_s15  ;;  %v1720_v16 = vpop.f32.mrf.mxu0  ;;  %v5359_v63 = vunpack.i.h.bf16 %v7924_v27 }
 0x330   : > { %9710 = vst [vmem:[#allocation18_spill] sm:$0xff] %v8200_v33  ;;  %5641 = vrot.lane.b32.xlu1 %v7917_v30, %s6006_s14  ;;  %5631 = vrot.lane.b32.xlu0 %v5630_v53, %s6008_s16  ;;  %v1721_v36 = vadd.f32 %v7731_v21, %v1720_v16  ;;  %v8210_v11 = vpop.permute.xlu1 %5441  ;;  %v5449_v16 = vunpack.i.h.bf16 %v8101_v29  ;;  %v1836_v33 = vld [vmem:[#allocation2] sm:$0xff] }
 0x331   : > { %v8208_v18 = vpop.permute.xlu2 %5476 }
 0x332   : > { %v5427_v26 = vpop.permute.xlu0 %5426  ;;  %v1755_v17 = vmax.f32 %v1721_v36, 0.0  ;;  %v8256_v50 = vpop.f32.mrf.mxu3 }
 0x333   : > { %v5429_v3 = vunpack.i.h.bf16 %v5427_v26  ;;  %v5428_v30 = vunpack.i.l.bf16 %v5427_v26  ;;  %v8216_v7 = vld [vmem:[#allocation2 + $0x16a] sm:$0xff]  ;;  %v8218_v41 = vld [vmem:[#allocation2 + $0x172] sm:$0xff]  ;;  %9714 = vst [vmem:[#allocation13_spill] sm:$0xff] %v8256_v50 }
 0x334   : > { %1834 = vst.msk [vmem:[#allocation2 + $0x181] sm:$0xff] %vm1757_vm13, %v1755_v17  ;;  %v3128_v20 = vpack.c.bf16 %v8218_v41, %v8216_v7  ;;  %v1899_v17 = vld [vmem:[#allocation2 + $0x171] sm:$0xff] }
 0x335   : > { %v8226_v15 = vsel %vm2925_vm15, %v2906_v59, %v5429_v3  ;;  %v8231_v14 = vsel %vm2925_vm15, %v2905_v13, %v5428_v30  ;;  %v1968_v3 = vld [vmem:[#allocation2 + $0x49] sm:$0xff]  ;;  %v5474_v13 = vunpack.i.h.bf16 %v8185_v12  ;;  %v8264_v19 = vpack.i.bf16 %v1899_v17, %v1898_v43 }
 0x336   : > { %9712 = vst [vmem:[#allocation6_spill] sm:$0xff] %v8226_v15  ;;  %v5389_v17 = vunpack.i.h.bf16 %v8041_v54 }
 0x337   : > { %9713 = vst [vmem:[#allocation11_spill] sm:$0xff] %v8231_v14  ;;  %4631 = vmatmul.msk.bf16.gmra.mxu3 %vm1757_vm13, %v3128_v20  ;;  %5666 = vrot.lane.b32.xlu2 %v7949_v46, %s6006_s14  ;;  %v1722_v40 = vpop.f32.mrf.mxu0  ;;  %v5473_v20 = vunpack.i.l.bf16 %v8185_v12  ;;  %v8266_v12 = vld [vmem:[#allocation2 + $0xf8] sm:$0xff] }
 0x338   : > { %5656 = vrot.lane.b32.xlu1 %v5655_v39, %s6008_s16  ;;  %5651 = vrot.lane.b32.xlu0 %v7945_v38, %s6008_s16  ;;  %v1723_v53 = vadd.f32 %v7731_v21, %v1722_v40  ;;  %v8250_v21 = vld [vmem:[#allocation2 + $0x108] sm:$0xff]  ;;  %v5443_v39 = vunpack.i.l.bf16 %v8210_v11 }
 0x339   : > { %v8242_v61 = vpop.permute.xlu2 %5496 }
 0x33a   : > { %v5498_v46 = vunpack.i.l.bf16 %v8242_v61  ;;  %v5457_v36 = vpop.permute.xlu1 %5456  ;;  %v8247_v26 = vpop.permute.xlu0 %5431  ;;  %v1756_v38 = vmax.f32 %v1723_v53, 0.0 }
 0x33b   : > { %v5459_v59 = vunpack.i.h.bf16 %v5457_v36  ;;  %v5458_v30 = vunpack.i.l.bf16 %v5457_v36  ;;  %v5434_v27 = vunpack.i.h.bf16 %v8247_v26 }
 0x33c   : > { %v2995_v40 = vsel %vm1757_vm13, %v1968_v3, %v5498_v46  ;;  %1835 = vst.msk [vmem:[#allocation2 + $0x189] sm:$0xff] %vm1757_vm13, %v1756_v38  ;;  %v1837_v46 = vld [vmem:[#allocation2 + $0x8] sm:$0xff]  ;;  %v5670_v3 = vpack.i.bf16 %v8250_v21, %v8266_v12 }
 0x33d   : > { %v2910_v53 = vsel %vm1757_vm13, %v8133_v34, %v5459_v59  ;;  %v2909_v36 = vsel %vm1757_vm13, %v8126_v51, %v5458_v30  ;;  %v2992_v60 = vsel %vm1757_vm13, %v1965_v42, %v5434_v27  ;;  %v8272_v38 = vsel %vm2925_vm15, %v2995_v40, %v5469_v22  ;;  %v8279_v51 = vld [vmem:[#allocation2 + $0x120] sm:$0xff]  ;;  %v8294_v27 = vld [vmem:[#allocation2 + $0x110] sm:$0xff] }
 0x33e   : > { %v3024_v50 = vsel %vm2925_vm15, %v2992_v60, %v5443_v39  ;;  %v8275_v34 = vsel %vm2925_vm15, %v2909_v36, %v5473_v20  ;;  %v8285_v42 = vsel %vm2925_vm15, %v2910_v53, %v5474_v13  ;;  %v5388_v60 = vunpack.i.l.bf16 %v8041_v54 }
 0x33f   : > { %9715 = vst [vmem:[#allocation27_spill] sm:$0xff] %v8275_v34  ;;  %5681 = vrot.lane.b32.xlu2 %v8264_v19, %s6006_s14  ;;  %v8282_v43 = vsel %vm2958_vm0, %v3024_v50, %v5449_v16  ;;  %v2894_v22 = vsel %vm1757_vm13, %v1837_v46, %v5359_v63  ;;  %v2893_v59 = vsel %vm1757_vm13, %v1836_v33, %v5358_v57  ;;  %v1967_v46 = vld [vmem:[#allocation2 + $0x39] sm:$0xff] }
 0x340   : > { %9716 = vst [vmem:[#allocation32_spill] sm:$0xff] %v8285_v42  ;;  %5676 = vrot.lane.b32.xlu1 %v7981_v1, %s6008_s16  ;;  %5671 = vrot.lane.b32.xlu0 %v5670_v3, %s6007_s15  ;;  %v5685_v39 = vpack.i.bf16 %v8161_v31, %v8124_v52  ;;  %v5695_v54 = vpack.i.bf16 %v8279_v51, %v8294_v27  ;;  %v1966_v1 = vld [vmem:[#allocation2 + $0x31] sm:$0xff] }
 0x341   : > { %v5517_v30 = vpop.permute.xlu2 %5516  ;;  %v2926_v3 = vsel %vm2925_vm15, %v2893_v59, %v5388_v60  ;;  %v5468_v60 = vunpack.i.l.bf16 %v8149_v49 }
 0x342   : > { %v5519_v50 = vunpack.i.h.bf16 %v5517_v30  ;;  %v5518_v16 = vunpack.i.l.bf16 %v5517_v30  ;;  %v5462_v13 = vpop.permute.xlu1 %5461  ;;  %v5452_v20 = vpop.permute.xlu0 %5451  ;;  %v2927_v30 = vsel %vm2925_vm15, %v2894_v22, %v5389_v17  ;;  %v5444_v17 = vunpack.i.h.bf16 %v8210_v11 }
 0x343   : > { %v5464_v40 = vunpack.i.h.bf16 %v5462_v13  ;;  %v5463_v53 = vunpack.i.l.bf16 %v5462_v13  ;;  %v5454_v36 = vunpack.i.h.bf16 %v5452_v20  ;;  %v5453_v63 = vunpack.i.l.bf16 %v5452_v20  ;;  %v8300_v33 = vld [vmem:[#allocation2 + $0x182] sm:$0xff]  ;;  %v8302_v57 = vld [vmem:[#allocation2 + $0x18a] sm:$0xff] }
 0x344   : > { %v8308_v15 = vsel %vm2958_vm0, %v7964_v45, %v5518_v16  ;;  %v8312_v14 = vsel %vm2958_vm0, %v7967_v8, %v5519_v50  ;;  %v3131_v42 = vpack.c.bf16 %v8302_v57, %v8300_v33  ;;  %v8324_v8 = vpop.f32.mrf.mxu3  ;;  %v5479_v50 = vunpack.i.h.bf16 %v8208_v18 }
 0x345   : > { %v2994_v13 = vsel %vm1757_vm13, %v1967_v46, %v5464_v40  ;;  %v2993_v20 = vsel %vm1757_vm13, %v1966_v1, %v5463_v53  ;;  %v2959_v34 = vsel %vm2958_vm0, %v2926_v3, %v5453_v63  ;;  %v2960_v45 = vsel %vm2958_vm0, %v2927_v30, %v5454_v36 }
 0x346   : > { %v3093_v22 = vpack.c.bf16 %v8312_v14, %v8308_v15  ;;  %v3087_v59 = vpack.c.bf16 %v2960_v45, %v2959_v34  ;;  %v5478_v16 = vunpack.i.l.bf16 %v8208_v18  ;;  %v3025_v49 = vsel %vm2925_vm15, %v2993_v20, %v5444_v17  ;;  %v8369_v17 = vld [vmem:[#allocation2 + $0x138] sm:$0xff] }
 0x347   : > { %4632 = vmatmul.msk.bf16.gmra.mxu3 %vm1757_vm13, %v3131_v42  ;;  %5686 = vrot.lane.b32.xlu2 %v5685_v39, %s6008_s16  ;;  %v3026_v11 = vsel %vm2925_vm15, %v2994_v13, %v5468_v60  ;;  %v2912_v53 = vsel %vm1757_vm13, %v8161_v31, %v5479_v50  ;;  %v5364_v63 = vunpack.i.h.bf16 %v8007_v58  ;;  %v5393_v46 = vunpack.i.l.bf16 %v8096_v62 }
 0x348   : > { %5696 = vrot.lane.b32.xlu1 %v5695_v54, %s6007_s15  ;;  %5691 = vrot.lane.b32.xlu0 %v7979_v9, %s6006_s14  ;;  %v2911_v18 = vsel %vm1757_vm13, %v8124_v52, %v5478_v16  ;;  %v5363_v54 = vunpack.i.l.bf16 %v8007_v58  ;;  %v5705_v3 = vpack.i.bf16 %v8266_v12, %v8159_v48  ;;  %v5394_v31 = vunpack.i.h.bf16 %v8096_v62  ;;  %v4656_v58 = vld [vmem:[%s9511_s3 + $0x78] sm:$0xff] }
 0x349   : > { %3339 = vmatmul.bf16.vlgmr.msra.gmra.mxu1 %v3087_v59  ;;  %v8335_v1 = vpop.permute.xlu2 %5536  ;;  %v2896_v62 = vsel %vm1757_vm13, %v7931_v35, %v5364_v63  ;;  %3420 = vmatpush.bf16.msra.mxu2 %v4656_v58 }
 0x34a   : > { %v5492_v42 = vpop.permute.xlu1 %5491  ;;  %v5482_v40 = vpop.permute.xlu0 %5481  ;;  %v2895_v13 = vsel %vm1757_vm13, %v7934_v25, %v5363_v54  ;;  %v2929_v16 = vsel %vm2925_vm15, %v2896_v62, %v5394_v31  ;;  %v8374_v25 = vld [vmem:[#allocation2 + $0x128] sm:$0xff]  ;;  %v5725_v54 = vpack.i.bf16 %v8294_v27, %v8250_v21 }
 0x34b   : > { %v5484_v39 = vunpack.i.h.bf16 %v5482_v40  ;;  %v5483_v34 = vunpack.i.l.bf16 %v5482_v40  ;;  %v5494_v52 = vunpack.i.h.bf16 %v5492_v42  ;;  %v5493_v30 = vunpack.i.l.bf16 %v5492_v42 }
 0x34c   : > { %v5715_v40 = vpack.i.bf16 %v8369_v17, %v8374_v25 }
 0x34d   : > { %v8343_v9 = vsel %vm2925_vm15, %v2911_v18, %v5483_v34  ;;  %v8346_v36 = vsel %vm2925_vm15, %v2912_v53, %v5484_v39  ;;  %v2962_v35 = vsel %vm2958_vm0, %v2929_v16, %v5494_v52  ;;  %v4655_v39 = vld [vmem:[%s9511_s3 + $0x70] sm:$0xff] }
 0x34e   : > { %3421 = vmatpush.bf16.msra.mxu2 %v4655_v39 }
 0x34f   : > { %5701 = vrot.lane.b32.xlu2 %v8017_v56, %s6008_s16 }
 0x350   : > { %5711 = vrot.lane.b32.xlu1 %v8029_v55, %s6006_s14  ;;  %5706 = vrot.lane.b32.xlu0 %v5705_v3, %s6008_s16  ;;  %v2928_v55 = vsel %vm2925_vm15, %v2895_v13, %v5393_v46  ;;  %v8406_v13 = vld [vmem:[#allocation2 + $0x150] sm:$0xff] }
 0x351   : > { %v8363_v20 = vpop.permute.xlu2 %5556  ;;  %v2961_v42 = vsel %vm2958_vm0, %v2928_v55, %v5493_v30  ;;  %v4653_v55 = vld [vmem:[%s9511_s3 + $0x60] sm:$0xff] }
 0x352   : > { %v8367_v56 = vpop.permute.xlu1 %5511  ;;  %v5487_v60 = vpop.permute.xlu0 %5486  ;;  %v3090_v46 = vpack.c.bf16 %v2962_v35, %v2961_v42 }
 0x353   : > { %v5513_v45 = vunpack.i.l.bf16 %v8367_v56  ;;  %v5489_v59 = vunpack.i.h.bf16 %v5487_v60  ;;  %v5488_v50 = vunpack.i.l.bf16 %v5487_v60  ;;  %v8412_v60 = vld [vmem:[#allocation2 + $0x140] sm:$0xff] }
 0x355   : > { %v8384_v34 = vsel %vm2958_vm0, %v3025_v49, %v5488_v50  ;;  %v8387_v53 = vsel %vm2958_vm0, %v3026_v11, %v5489_v59  ;;  %v8391_v18 = vsel %vm2958_vm0, %v8272_v38, %v5513_v45  ;;  %v4654_v38 = vld [vmem:[%s9511_s3 + $0x68] sm:$0xff]  ;;  %v5735_v45 = vpack.i.bf16 %v8406_v13, %v8412_v60 }
 0x356   : > { %v3091_v63 = vpack.c.bf16 %v8387_v53, %v8384_v34  ;;  %3422 = vmatpush.bf16.msra.mxu2 %v4654_v38  ;;  %v8447_v38 = vld [vmem:[#allocation2 + $0x158] sm:$0xff]  ;;  %v9718_v34 = vld [vmem:[#allocation32_spill] sm:$0xff] }
 0x357   : > { %5716 = vrot.lane.b32.xlu2 %v5715_v40, %s6007_s15  ;;  %v1969_v40 = vld [vmem:[#allocation2 + $0x51] sm:$0xff] }
 0x358   : > { %5726 = vrot.lane.b32.xlu1 %v5725_v54, %s6008_s16  ;;  %5721 = vrot.lane.b32.xlu0 %v8044_v47, %s6008_s16  ;;  %v5514_v54 = vunpack.i.h.bf16 %v8367_v56  ;;  %v5539_v56 = vunpack.i.h.bf16 %v8335_v1 }
 0x359   : > { %3344 = vmatmul.bf16.gmra.mxu1 %v3090_v46  ;;  %v8401_v49 = vpop.permute.xlu2 %5561  ;;  %v5745_v46 = vpack.i.bf16 %v8374_v25, %v8279_v51 }
 0x35a   : > { %v5527_v11 = vpop.permute.xlu1 %5526  ;;  %v5502_v3 = vpop.permute.xlu0 %5501  ;;  %3423 = vmatpush.bf16.msra.mxu2 %v4653_v55  ;;  %v5559_v55 = vunpack.i.h.bf16 %v8363_v20 }
 0x35b   : > { %v5529_v31 = vunpack.i.h.bf16 %v5527_v11  ;;  %v5528_v52 = vunpack.i.l.bf16 %v5527_v11  ;;  %v5504_v30 = vunpack.i.h.bf16 %v5502_v3  ;;  %v5503_v58 = vunpack.i.l.bf16 %v5502_v3 }
 0x35d   : > { %v2914_v62 = vsel %vm1757_vm13, %v8266_v12, %v5504_v30  ;;  %v2913_v47 = vsel %vm1757_vm13, %v8159_v48, %v5503_v58  ;;  %v5499_v48 = vunpack.i.h.bf16 %v8242_v61  ;;  %v4652_v12 = vld [vmem:[%s9511_s3 + $0x58] sm:$0xff]  ;;  %v5770_v58 = vpack.i.bf16 %v8165_v44, %v8163_v2 }
 0x35e   : > { %v8420_v59 = vsel %vm2925_vm15, %v2913_v47, %v5528_v52  ;;  %v8423_v50 = vsel %vm2925_vm15, %v2914_v62, %v5529_v31  ;;  %3424 = vmatpush.bf16.msra.mxu2 %v4652_v12  ;;  %v5765_v62 = vpack.i.bf16 %v8412_v60, %v8369_v17  ;;  %v4650_v47 = vld [vmem:[%s9511_s3 + $0x48] sm:$0xff] }
 0x35f   : > { %5731 = vrot.lane.b32.xlu2 %v8046_v0, %s6006_s14  ;;  %v8438_v0 = vld [vmem:[#allocation2 + $0x168] sm:$0xff]  ;;  %v2996_v61 = vsel %vm1757_vm13, %v1969_v40, %v5499_v48  ;;  %v1974_v48 = vld [vmem:[#allocation2 + $0x91] sm:$0xff] }
 0x360   : > { %5741 = vrot.lane.b32.xlu1 %v8107_v5, %s6008_s16  ;;  %5736 = vrot.lane.b32.xlu0 %v5735_v45, %s6007_s15  ;;  %v4651_v5 = vld [vmem:[%s9511_s3 + $0x50] sm:$0xff]  ;;  %v5755_v3 = vpack.i.bf16 %v8438_v0, %v8447_v38  ;;  %v5564_v45 = vunpack.i.h.bf16 %v8401_v49 }
 0x361   : > { %v8434_v16 = vpop.permute.xlu2 %5566 }
 0x362   : > { %v8436_v42 = vpop.permute.xlu1 %5531  ;;  %v5507_v35 = vpop.permute.xlu0 %5506  ;;  %3425 = vmatpush.bf16.msra.mxu2 %v4651_v5  ;;  %v5563_v5 = vunpack.i.l.bf16 %v8401_v49  ;;  %v4649_v49 = vld [vmem:[%s9511_s3 + $0x40] sm:$0xff] }
 0x363   : > { %v5508_v39 = vunpack.i.l.bf16 %v5507_v35 }
 0x365   : > { %v3028_v11 = vsel %vm2925_vm15, %v2996_v61, %v5508_v39  ;;  %v5533_v61 = vunpack.i.l.bf16 %v8436_v42 }
 0x366   : > { %v8453_v31 = vsel %vm2958_vm0, %v3028_v11, %v5514_v54  ;;  %3426 = vmatpush.bf16.msra.mxu2 %v4650_v47  ;;  %v5509_v54 = vunpack.i.h.bf16 %v5507_v35  ;;  %v1971_v11 = vld [vmem:[#allocation2 + $0x69] sm:$0xff] }
 0x367   : > { %5746 = vrot.lane.b32.xlu2 %v5745_v46, %s6008_s16  ;;  %v1970_v46 = vld [vmem:[#allocation2 + $0x61] sm:$0xff] }
 0x368   : > { %5756 = vrot.lane.b32.xlu1 %v5755_v3, %s6007_s15  ;;  %5751 = vrot.lane.b32.xlu0 %v8105_v32, %s6006_s14  ;;  %v5538_v32 = vunpack.i.l.bf16 %v8335_v1 }
 0x369   : > { %3349 = vmatmul.bf16.gmra.mxu1 %v3093_v22  ;;  %v8465_v30 = vpop.permute.xlu2 %5586 }
 0x36a   : > { %v5588_v15 = vunpack.i.l.bf16 %v8465_v30  ;;  %v5547_v14 = vpop.permute.xlu1 %5546  ;;  %v5522_v22 = vpop.permute.xlu0 %5521  ;;  %3427 = vmatpush.bf16.msra.mxu2 %v4649_v49 }
 0x36b   : > { %v5549_v12 = vunpack.i.h.bf16 %v5547_v14  ;;  %v5548_v2 = vunpack.i.l.bf16 %v5547_v14  ;;  %v5524_v40 = vunpack.i.h.bf16 %v5522_v22  ;;  %v5523_v39 = vunpack.i.l.bf16 %v5522_v22 }
 0x36c   : > { %v3001_v1 = vsel %vm1757_vm13, %v1974_v48, %v5588_v15 }
 0x36d   : > { %v2916_v3 = vsel %vm1757_vm13, %v8294_v27, %v5549_v12  ;;  %v2915_v52 = vsel %vm1757_vm13, %v8250_v21, %v5548_v2  ;;  %v2998_v14 = vsel %vm1757_vm13, %v1971_v11, %v5524_v40  ;;  %v2997_v22 = vsel %vm1757_vm13, %v1970_v46, %v5523_v39  ;;  %v8500_v21 = vld [vmem:[#allocation2 + $0x180] sm:$0xff] }
 0x36e   : > { %v3029_v35 = vsel %vm2925_vm15, %v2997_v22, %v5509_v54  ;;  %v3030_v47 = vsel %vm2925_vm15, %v2998_v14, %v5533_v61  ;;  %v8493_v15 = vsel %vm2925_vm15, %v3001_v1, %v5559_v55  ;;  %v8496_v27 = vsel %vm2925_vm15, %v2915_v52, %v5563_v5  ;;  %v8515_v55 = vld [vmem:[#allocation2 + $0x170] sm:$0xff]  ;;  %v1972_v11 = vld [vmem:[#allocation2 + $0x79] sm:$0xff] }
 0x36f   : > { %5761 = vrot.lane.b32.xlu2 %v8172_v28, %s6008_s16  ;;  %v8503_v48 = vsel %vm2958_vm0, %v3029_v35, %v5538_v32  ;;  %v8506_v12 = vsel %vm2958_vm0, %v3030_v47, %v5539_v56  ;;  %v8509_v2 = vsel %vm2925_vm15, %v2916_v3, %v5564_v45  ;;  %v5775_v56 = vpack.i.bf16 %v8500_v21, %v8515_v55  ;;  %v1973_v3 = vld [vmem:[#allocation2 + $0x81] sm:$0xff] }
 0x370   : > { %5771 = vrot.lane.b32.xlu1 %v5770_v58, %s6006_s14  ;;  %5766 = vrot.lane.b32.xlu0 %v5765_v62, %s6008_s16  ;;  %v3097_v52 = vpack.c.bf16 %v8506_v12, %v8503_v48  ;;  %v5785_v45 = vpack.i.bf16 %v8447_v38, %v8406_v13  ;;  %v5558_v1 = vunpack.i.l.bf16 %v8363_v20  ;;  %v5534_v46 = vunpack.i.h.bf16 %v8436_v42 }
 0x371   : > { %v5607_v28 = vpop.permute.xlu2 %5606 }
 0x372   : > { %v5609_v40 = vunpack.i.h.bf16 %v5607_v28  ;;  %v5608_v39 = vunpack.i.l.bf16 %v5607_v28  ;;  %v5552_v32 = vpop.permute.xlu1 %5551  ;;  %v5542_v5 = vpop.permute.xlu0 %5541 }
 0x373   : > { %v5554_v61 = vunpack.i.h.bf16 %v5552_v32  ;;  %v5553_v58 = vunpack.i.l.bf16 %v5552_v32  ;;  %v5544_v54 = vunpack.i.h.bf16 %v5542_v5  ;;  %v5543_v62 = vunpack.i.l.bf16 %v5542_v5 }
 0x374   : > { %v8525_v14 = vsel %vm2958_vm0, %v8081_v10, %v5608_v39  ;;  %v8529_v22 = vsel %vm2958_vm0, %v8084_v23, %v5609_v40  ;;  %v5569_v23 = vunpack.i.h.bf16 %v8434_v16  ;;  %v5568_v40 = vunpack.i.l.bf16 %v8434_v16 }
 0x375   : > { %v3000_v49 = vsel %vm1757_vm13, %v1973_v3, %v5554_v61  ;;  %v2999_v35 = vsel %vm1757_vm13, %v1972_v11, %v5553_v58  ;;  %v2965_v47 = vsel %vm2958_vm0, %v8075_v37, %v5543_v62  ;;  %v2966_v20 = vsel %vm2958_vm0, %v8078_v24, %v5544_v54  ;;  %v8549_v62 = vld [vmem:[#allocation2 + $0x189] sm:$0xff]  ;;  %v8563_v11 = vld [vmem:[#allocation2 + $0x181] sm:$0xff] }
 0x376   : > { %v3096_v42 = vpack.c.bf16 %v2966_v20, %v2965_v47  ;;  %v3102_v28 = vpack.c.bf16 %v8529_v22, %v8525_v14  ;;  %v3031_v10 = vsel %vm2925_vm15, %v2999_v35, %v5534_v46  ;;  %v3032_v39 = vsel %vm2925_vm15, %v3000_v49, %v5558_v1  ;;  %v2059_v35 = vld [vmem:[#allocation2 + $0x198] sm:$0xff]  ;;  %v2060_v47 = vld [vmem:[#allocation2 + $0x1a0] sm:$0xff] }
 0x377   : > { %5776 = vrot.lane.b32.xlu2 %v5775_v56, %s6007_s15  ;;  %v2058_v56 = vld [vmem:[#allocation2 + $0x188] sm:$0xff]  ;;  %v2918_v16 = vsel %vm1757_vm13, %v8374_v25, %v5569_v23 }
 0x378   : > { %5786 = vrot.lane.b32.xlu1 %v5785_v45, %s6008_s16  ;;  %5781 = vrot.lane.b32.xlu0 %v8264_v19, %s6008_s16  ;;  %v2917_v45 = vsel %vm1757_vm13, %v8279_v51, %v5568_v40  ;;  %v5790_v19 = vpack.i.bf16 %v8218_v41, %v8216_v7  ;;  %v5800_v51 = vpack.i.bf16 %v8549_v62, %v8563_v11 }
 0x379   : > { %3354 = vmatmul.bf16.gmra.mxu1 %v3096_v42  ;;  %v8547_v37 = vpop.permute.xlu2 %5626  ;;  %v5795_v49 = vpack.i.bf16 %v8165_v44, %v2058_v56  ;;  %v5815_v40 = vpack.i.bf16 %v2060_v47, %v2059_v35  ;;  %v5805_v44 = vpack.i.bf16 %v8515_v55, %v8438_v0 }
 0x37a   : > { %v5582_v24 = vpop.permute.xlu1 %5581  ;;  %v5572_v32 = vpop.permute.xlu0 %5571 }
 0x37b   : > { %v5584_v5 = vunpack.i.h.bf16 %v5582_v24  ;;  %v5583_v61 = vunpack.i.l.bf16 %v5582_v24  ;;  %v5574_v58 = vunpack.i.h.bf16 %v5572_v32  ;;  %v5573_v54 = vunpack.i.l.bf16 %v5572_v32 }
 0x37d   : > { %v8558_v1 = vsel %vm2925_vm15, %v2918_v16, %v5574_v58  ;;  %v8561_v46 = vsel %vm2925_vm15, %v2917_v45, %v5573_v54  ;;  %v2967_v3 = vsel %vm2958_vm0, %v8139_v4, %v5583_v61  ;;  %v2968_v25 = vsel %vm2958_vm0, %v8142_v6, %v5584_v5  ;;  %v2091_v16 = vld [vmem:[#allocation2 + $0x199] sm:$0xff] }
 0x37e   : > { %v3099_v7 = vpack.c.bf16 %v2968_v25, %v2967_v3  ;;  %v5433_v61 = vunpack.i.l.bf16 %v8247_v26  ;;  %v5810_v58 = vpack.i.bf16 %v8302_v57, %v8300_v33  ;;  %v5448_v45 = vunpack.i.l.bf16 %v8101_v29 }
 0x37f   : > { %5791 = vrot.lane.b32.xlu2 %v5790_v19, %s6006_s14 }
 0x380   : > { %5801 = vrot.lane.b32.xlu1 %v5800_v51, %s6008_s16  ;;  %5796 = vrot.lane.b32.xlu0 %v5795_v49, %s6007_s15 }
 0x381   : > { %v8575_v41 = vpop.permute.xlu2 %5646 }
 0x382   : > { %v5602_v4 = vpop.permute.xlu1 %5601  ;;  %v5577_v20 = vpop.permute.xlu0 %5576 }
 0x383   : > { %v5603_v42 = vunpack.i.l.bf16 %v5602_v4  ;;  %v5579_v6 = vunpack.i.h.bf16 %v5577_v20  ;;  %v5578_v23 = vunpack.i.l.bf16 %v5577_v20 }
 0x385   : > { %v8580_v24 = vsel %vm2958_vm0, %v3031_v10, %v5578_v23  ;;  %v8583_v32 = vsel %vm2958_vm0, %v3032_v39, %v5579_v6  ;;  %v8587_v5 = vsel %vm2958_vm0, %v8493_v15, %v5603_v42  ;;  %v2092_v10 = vld [vmem:[#allocation2 + $0x1a1] sm:$0xff]  ;;  %v1964_v39 = vld [vmem:[#allocation2 + $0x19] sm:$0xff]  ;;  %v5830_v6 = vpack.i.bf16 %v2058_v56, %v8500_v21 }
 0x386   : > { %v3100_v54 = vpack.c.bf16 %v8583_v32, %v8580_v24  ;;  %v2991_v26 = vsel %vm1757_vm13, %v1964_v39, %v5433_v61  ;;  %v5820_v25 = vpack.i.bf16 %v2092_v10, %v2091_v16  ;;  %v5589_v61 = vunpack.i.h.bf16 %v8465_v30  ;;  %v1975_v56 = vld [vmem:[#allocation2 + $0x99] sm:$0xff] }
 0x387   : > { %5806 = vrot.lane.b32.xlu2 %v5805_v44, %s6008_s16  ;;  %v1980_v16 = vld [vmem:[#allocation2 + $0xd9] sm:$0xff] }
 0x388   : > { %5816 = vrot.lane.b32.xlu1 %v5815_v40, %s6007_s15  ;;  %5811 = vrot.lane.b32.xlu0 %v5810_v58, %s6006_s14  ;;  %v5649_v58 = vunpack.i.h.bf16 %v8575_v41  ;;  %v3002_v39 = vsel %vm1757_vm13, %v1975_v56, %v5589_v61 }
 0x389   : > { %3359 = vmatmul.bf16.gmra.mxu1 %v3099_v7  ;;  %v5662_v15 = vpop.permute.xlu2 %5661 }
 0x38a   : > { %v5664_v3 = vunpack.i.h.bf16 %v5662_v15  ;;  %v5617_v33 = vpop.permute.xlu1 %5616  ;;  %v5592_v57 = vpop.permute.xlu0 %5591 }
 0x38b   : > { %v5619_v51 = vunpack.i.h.bf16 %v5617_v33  ;;  %v5618_v49 = vunpack.i.l.bf16 %v5617_v33  ;;  %v5594_v35 = vunpack.i.h.bf16 %v5592_v57  ;;  %v5593_v47 = vunpack.i.l.bf16 %v5592_v57 }
 0x38c   : > { %v3023_v20 = vsel %vm2925_vm15, %v2991_v26, %v5664_v3 }
 0x38d   : > { %v2920_v42 = vsel %vm1757_vm13, %v8412_v60, %v5594_v35  ;;  %v2919_v7 = vsel %vm1757_vm13, %v8369_v17, %v5593_v47  ;;  %v3055_v29 = vsel %vm2958_vm0, %v3023_v20, %v5448_v45  ;;  %v5604_v45 = vunpack.i.h.bf16 %v5602_v4 }
 0x38e   : > { %v3088_v23 = vpack.c.bf16 %v8282_v43, %v3055_v29  ;;  %v8608_v40 = vsel %vm2925_vm15, %v2919_v7, %v5618_v49  ;;  %v8611_v44 = vsel %vm2925_vm15, %v2920_v42, %v5619_v51  ;;  %v5629_v47 = vunpack.i.h.bf16 %v8547_v37  ;;  %v1976_v29 = vld [vmem:[#allocation2 + $0xa9] sm:$0xff] }
 0x38f   : > { %5821 = vrot.lane.b32.xlu2 %v5820_v25, %s6008_s16  ;;  %v5663_v20 = vunpack.i.l.bf16 %v5662_v15 }
 0x390   : > { %5831 = vrot.lane.b32.xlu1 %v5830_v6, %s6008_s16  ;;  %5826 = vrot.lane.b32.xlu0 %v5790_v19, %s6007_s15  ;;  %v1977_v6 = vld [vmem:[#allocation2 + $0xb1] sm:$0xff]  ;;  %s5952_s15 = scalar_lea.hbm %s9513_s5, 128 }
 0x391   : > { %3428 = vmatmul.bf16.vlgmr.msra.gmra.mxu2 %v3088_v23  ;;  %v8617_v17 = vpop.permute.xlu2 %5666  ;;  %v5628_v23 = vunpack.i.l.bf16 %v8547_v37  ;;  %p5954_p1 = scmp.lt.s32.totalorder %s5952_s15, %s5948_s6 }
 0x392   : > { %v5668_v60 = vunpack.i.l.bf16 %v8617_v17  ;;  %v5622_v43 = vpop.permute.xlu1 %5621  ;;  %v5597_v21 = vpop.permute.xlu0 %5596 }
 0x393   : > { %v5598_v10 = vunpack.i.l.bf16 %v5597_v21  ;;  %v5623_v42 = vunpack.i.l.bf16 %v5622_v43  ;;  %v5599_v7 = vunpack.i.h.bf16 %v5597_v21  ;;  %p5955_p2 = por %p5954_p1, %p5953_p0 }
 0x394   : > { %v3007_v30 = vsel %vm1757_vm13, %v1980_v16, %v5668_v60 }
 0x395   : > { %v3034_v26 = vsel %vm2925_vm15, %v3002_v39, %v5598_v10  ;;  %v8625_v19 = vsel %vm2925_vm15, %v3007_v30, %v5649_v58  ;;  %p5956_p3 = pnand %p5955_p2, %p5951_p13 }
 0x396   : > { %v8628_v3 = vsel %vm2958_vm0, %v3034_v26, %v5604_v45 }
 0x397   : > { %v3103_v33 = vpack.c.bf16 %v8628_v3, %v8587_v5 }
 0x399   : > { %3364 = vmatmul.bf16.gmra.mxu1 %v3102_v28  ;;  %v8635_v57 = vpop.permute.xlu2 %5681 }
 0x39a   : > { %v8637_v4 = vpop.permute.xlu1 %5636  ;;  %v5612_v25 = vpop.permute.xlu0 %5611 }
 0x39b   : > { %v5638_v51 = vunpack.i.l.bf16 %v8637_v4  ;;  %v5614_v49 = vunpack.i.h.bf16 %v5612_v25  ;;  %v5613_v35 = vunpack.i.l.bf16 %v5612_v25 }
 0x39d   : > { %v2921_v14 = vsel %vm1757_vm13, %v8406_v13, %v5638_v51  ;;  %v3004_v22 = vsel %vm1757_vm13, %v1977_v6, %v5614_v49  ;;  %v3003_v28 = vsel %vm1757_vm13, %v1976_v29, %v5613_v35  ;;  %v5648_v51 = vunpack.i.l.bf16 %v8575_v41  ;;  %v1978_v35 = vld [vmem:[#allocation2 + $0xc1] sm:$0xff]  ;;  %v9719_v29 = vld [vmem:[#allocation11_spill] sm:$0xff] }
 0x39e   : > { %v3035_v61 = vsel %vm2925_vm15, %v3003_v28, %v5599_v7  ;;  %v3036_v60 = vsel %vm2925_vm15, %v3004_v22, %v5623_v42  ;;  %v8649_v56 = vsel %vm2925_vm15, %v2921_v14, %v5663_v20  ;;  %v5624_v49 = vunpack.i.h.bf16 %v5622_v43  ;;  %v9717_v20 = vld [vmem:[#allocation27_spill] sm:$0xff] }
 0x39f   : > { %v8652_v15 = vsel %vm2958_vm0, %v3035_v61, %v5628_v23  ;;  %v8655_v21 = vsel %vm2958_vm0, %v3036_v60, %v5629_v47  ;;  %v1979_v47 = vld [vmem:[#allocation2 + $0xc9] sm:$0xff] }
 0x3a0   : > { %v3106_v13 = vpack.c.bf16 %v8655_v21, %v8652_v15  ;;  %v9720_v23 = vld [vmem:[#allocation6_spill] sm:$0xff] }
 0x3a1   : > { %3433 = vmatmul.bf16.gmra.mxu2 %v3091_v63  ;;  %v5687_v37 = vpop.permute.xlu2 %5686 }
 0x3a2   : > { %v5689_v58 = vunpack.i.h.bf16 %v5687_v37  ;;  %v5688_v16 = vunpack.i.l.bf16 %v5687_v37  ;;  %v5642_v10 = vpop.permute.xlu1 %5641  ;;  %v5632_v39 = vpop.permute.xlu0 %5631 }
 0x3a3   : > { %v5644_v45 = vunpack.i.h.bf16 %v5642_v10  ;;  %v5643_v30 = vunpack.i.l.bf16 %v5642_v10  ;;  %v5634_v26 = vunpack.i.h.bf16 %v5632_v39  ;;  %v5633_v25 = vunpack.i.l.bf16 %v5632_v39 }
 0x3a4   : > { %v8665_v42 = vsel %vm2958_vm0, %v9717_v20, %v5688_v16  ;;  %v8669_v53 = vsel %vm2958_vm0, %v9718_v34, %v5689_v58  ;;  %v5669_v20 = vunpack.i.h.bf16 %v8617_v17  ;;  %v9723_v34 = vpack.c.bf16 %v8453_v31, %v8391_v18 }
 0x3a5   : > { %v3006_v63 = vsel %vm1757_vm13, %v1979_v47, %v5644_v45  ;;  %v3005_v7 = vsel %vm1757_vm13, %v1978_v35, %v5643_v30  ;;  %v2971_v6 = vsel %vm2958_vm0, %v9719_v29, %v5633_v25  ;;  %v2972_v41 = vsel %vm2958_vm0, %v9720_v23, %v5634_v26  ;;  %v9721_v45 = vld [vmem:[#allocation18_spill] sm:$0xff]  ;;  %v9722_v26 = vld [vmem:[#allocation12_spill] sm:$0xff] }
 0x3a6   : > { %v3105_v43 = vpack.c.bf16 %v2972_v41, %v2971_v6  ;;  %v3111_v14 = vpack.c.bf16 %v8669_v53, %v8665_v42  ;;  %v3037_v22 = vsel %vm2925_vm15, %v3005_v7, %v5624_v49  ;;  %v3038_v28 = vsel %vm2925_vm15, %v3006_v63, %v5648_v51  ;;  %v1981_v6 = vld [vmem:[#allocation2 + $0xe1] sm:$0xff] }
 0x3a9   : > { %3369 = vmatmul.bf16.gmra.mxu1 %v3105_v43  ;;  %v5702_v61 = vpop.permute.xlu2 %5701 }
 0x3aa   : > { %v5657_v60 = vpop.permute.xlu1 %5656  ;;  %v5652_v37 = vpop.permute.xlu0 %5651 }
 0x3ab   : > { %v5659_v58 = vunpack.i.h.bf16 %v5657_v60  ;;  %v5658_v16 = vunpack.i.l.bf16 %v5657_v60  ;;  %v5654_v10 = vunpack.i.h.bf16 %v5652_v37  ;;  %v5653_v39 = vunpack.i.l.bf16 %v5652_v37 }
 0x3ad   : > { %v2973_v30 = vsel %vm2958_vm0, %v9721_v45, %v5658_v16  ;;  %v2974_v25 = vsel %vm2958_vm0, %v9722_v26, %v5659_v58  ;;  %v8686_v35 = vsel %vm2958_vm0, %v3037_v22, %v5653_v39  ;;  %v8689_v49 = vsel %vm2958_vm0, %v3038_v28, %v5654_v10  ;;  %v1986_v39 = vld [vmem:[#allocation2 + $0x121] sm:$0xff] }
 0x3ae   : > { %v3108_v51 = vpack.c.bf16 %v2974_v25, %v2973_v30  ;;  %v3109_v47 = vpack.c.bf16 %v8689_v49, %v8686_v35  ;;  %v3008_v22 = vsel %vm1757_vm13, %v1981_v6, %v5669_v20  ;;  %v5703_v6 = vunpack.i.l.bf16 %v5702_v61  ;;  %v8886_v49 = vpop.f32.mrf.mxu3 }
 0x3b1   : > { %3438 = vmatmul.bf16.gmra.mxu2 %v9723_v34  ;;  %v5717_v63 = vpop.permute.xlu2 %5716  ;;  %v1982_v34 = vld [vmem:[#allocation2 + $0xf1] sm:$0xff] }
 0x3b2   : > { %v5677_v7 = vpop.permute.xlu1 %5676  ;;  %v5672_v29 = vpop.permute.xlu0 %5671  ;;  %v5719_v10 = vunpack.i.h.bf16 %v5717_v63 }
 0x3b3   : > { %v5679_v23 = vunpack.i.h.bf16 %v5677_v7  ;;  %v5678_v41 = vunpack.i.l.bf16 %v5677_v7  ;;  %v5673_v43 = vunpack.i.l.bf16 %v5672_v29  ;;  %v5674_v25 = vunpack.i.h.bf16 %v5672_v29  ;;  %v1983_v7 = vld [vmem:[#allocation2 + $0xf9] sm:$0xff] }
 0x3b5   : > { %v3040_v28 = vsel %vm2925_vm15, %v3008_v22, %v5673_v43  ;;  %v8701_v60 = vsel %vm2958_vm0, %v8625_v19, %v5678_v41  ;;  %v5704_v19 = vunpack.i.h.bf16 %v5702_v61 }
 0x3b6   : > { %v8704_v17 = vsel %vm2958_vm0, %v3040_v28, %v5679_v23 }
 0x3b7   : > { %v3112_v18 = vpack.c.bf16 %v8704_v17, %v8701_v60 }
 0x3b9   : > { %3374 = vmatmul.bf16.gmra.mxu1 %v3108_v51  ;;  %v8708_v31 = vpop.permute.xlu2 %5731 }
 0x3ba   : > { %v5733_v37 = vunpack.i.l.bf16 %v8708_v31  ;;  %v5697_v58 = vpop.permute.xlu1 %5696  ;;  %v5692_v16 = vpop.permute.xlu0 %5691 }
 0x3bb   : > { %v5698_v45 = vunpack.i.l.bf16 %v5697_v58  ;;  %v5694_v30 = vunpack.i.h.bf16 %v5692_v16  ;;  %v5693_v26 = vunpack.i.l.bf16 %v5692_v16 }
 0x3bc   : > { %v3013_v20 = vsel %vm1757_vm13, %v1986_v39, %v5733_v37 }
 0x3bd   : > { %v3010_v51 = vsel %vm1757_vm13, %v1983_v7, %v5694_v30  ;;  %v3009_v23 = vsel %vm1757_vm13, %v1982_v34, %v5693_v26  ;;  %v3045_v41 = vsel %vm2925_vm15, %v3013_v20, %v5719_v10  ;;  %v5718_v34 = vunpack.i.l.bf16 %v5717_v63 }
 0x3be   : > { %v3041_v43 = vsel %vm2925_vm15, %v3009_v23, %v5674_v25  ;;  %v3042_v22 = vsel %vm2925_vm15, %v3010_v51, %v5698_v45  ;;  %v5699_v7 = vunpack.i.h.bf16 %v5697_v58 }
 0x3bf   : > { %v8718_v28 = vsel %vm2958_vm0, %v3041_v43, %v5703_v6  ;;  %v8721_v29 = vsel %vm2958_vm0, %v3042_v22, %v5704_v19  ;;  %v1984_v19 = vld [vmem:[#allocation2 + $0x109] sm:$0xff]  ;;  %v1985_v6 = vld [vmem:[#allocation2 + $0x111] sm:$0xff] }
 0x3c0   : > { %v3115_v37 = vpack.c.bf16 %v8721_v29, %v8718_v28  ;;  %v5684_v29 = vunpack.i.h.bf16 %v8635_v57 }
 0x3c1   : > { %3443 = vmatmul.bf16.gmra.mxu2 %v3097_v52  ;;  %v5747_v61 = vpop.permute.xlu2 %5746 }
 0x3c2   : > { %v5749_v16 = vunpack.i.h.bf16 %v5747_v61  ;;  %v5748_v10 = vunpack.i.l.bf16 %v5747_v61  ;;  %v5712_v39 = vpop.permute.xlu1 %5711  ;;  %v5707_v30 = vpop.permute.xlu0 %5706 }
 0x3c3   : > { %v5714_v26 = vunpack.i.h.bf16 %v5712_v39  ;;  %v5713_v45 = vunpack.i.l.bf16 %v5712_v39  ;;  %v5709_v25 = vunpack.i.h.bf16 %v5707_v30  ;;  %v5708_v20 = vunpack.i.l.bf16 %v5707_v30 }
 0x3c4   : > { %v8730_v51 = vsel %vm2958_vm0, %v8496_v27, %v5748_v10  ;;  %v8734_v48 = vsel %vm2958_vm0, %v8509_v2, %v5749_v16 }
 0x3c5   : > { %v3012_v12 = vsel %vm1757_vm13, %v1985_v6, %v5714_v26  ;;  %v3011_v52 = vsel %vm1757_vm13, %v1984_v19, %v5713_v45  ;;  %v2977_v23 = vsel %vm2958_vm0, %v8343_v9, %v5708_v20  ;;  %v2978_v63 = vsel %vm2958_vm0, %v8346_v36, %v5709_v25 }
 0x3c6   : > { %v3114_v58 = vpack.c.bf16 %v2978_v63, %v2977_v23  ;;  %v3120_v43 = vpack.c.bf16 %v8734_v48, %v8730_v51  ;;  %v3043_v27 = vsel %vm2925_vm15, %v3011_v52, %v5699_v7  ;;  %v3044_v22 = vsel %vm2925_vm15, %v3012_v12, %v5718_v34  ;;  %v1987_v7 = vld [vmem:[#allocation2 + $0x129] sm:$0xff] }
 0x3c7   : > { %v5734_v25 = vunpack.i.h.bf16 %v8708_v31 }
 0x3c9   : > { %3379 = vmatmul.bf16.gmra.mxu1 %v3111_v14  ;;  %v5762_v2 = vpop.permute.xlu2 %5761  ;;  %v3014_v52 = vsel %vm1757_vm13, %v1987_v7, %v5734_v25  ;;  %v1988_v25 = vld [vmem:[#allocation2 + $0x139] sm:$0xff] }
 0x3ca   : > { %v5727_v61 = vpop.permute.xlu1 %5726  ;;  %v5722_v16 = vpop.permute.xlu0 %5721 }
 0x3cb   : > { %v5729_v10 = vunpack.i.h.bf16 %v5727_v61  ;;  %v5728_v9 = vunpack.i.l.bf16 %v5727_v61  ;;  %v5724_v39 = vunpack.i.h.bf16 %v5722_v16  ;;  %v5723_v30 = vunpack.i.l.bf16 %v5722_v16 }
 0x3cd   : > { %v8751_v36 = vsel %vm2958_vm0, %v8420_v59, %v5728_v9  ;;  %v8755_v26 = vsel %vm2958_vm0, %v8423_v50, %v5729_v10  ;;  %v8758_v45 = vsel %vm2958_vm0, %v3043_v27, %v5723_v30  ;;  %v8761_v42 = vsel %vm2958_vm0, %v3044_v22, %v5724_v39  ;;  %v8768_v59 = vpop.f32.mrf.mxu1  ;;  %v1992_v10 = vld [vmem:[#allocation2 + $0x169] sm:$0xff] }
 0x3ce   : > { %v3117_v53 = vpack.c.bf16 %v8755_v26, %v8751_v36  ;;  %v3118_v14 = vpack.c.bf16 %v8761_v42, %v8758_v45  ;;  %v5764_v30 = vunpack.i.h.bf16 %v5762_v2 }
 0x3d1   : > { %3448 = vmatmul.bf16.gmra.mxu2 %v3100_v54  ;;  %v5777_v50 = vpop.permute.xlu2 %5776 }
 0x3d2   : > { %v5742_v20 = vpop.permute.xlu1 %5741  ;;  %v5737_v34 = vpop.permute.xlu0 %5736  ;;  %v5779_v16 = vunpack.i.h.bf16 %v5777_v50 }
 0x3d3   : > { %v5744_v19 = vunpack.i.h.bf16 %v5742_v20  ;;  %v5743_v6 = vunpack.i.l.bf16 %v5742_v20  ;;  %v5738_v12 = vunpack.i.l.bf16 %v5737_v34  ;;  %v5739_v36 = vunpack.i.h.bf16 %v5737_v34  ;;  %v1989_v20 = vld [vmem:[#allocation2 + $0x141] sm:$0xff] }
 0x3d5   : > { %v3046_v23 = vsel %vm2925_vm15, %v3014_v52, %v5738_v12  ;;  %v8776_v63 = vsel %vm2958_vm0, %v3045_v41, %v5743_v6  ;;  %v8786_v61 = vpop.f32.mrf.mxu1 }
 0x3d6   : > { %v8779_v31 = vsel %vm2958_vm0, %v3046_v23, %v5744_v19 }
 0x3d7   : > { %v3121_v24 = vpack.c.bf16 %v8779_v31, %v8776_v63 }
 0x3d9   : > { %3384 = vmatmul.bf16.gmra.mxu1 %v3114_v58  ;;  %v8783_v32 = vpop.permute.xlu2 %5791  ;;  %v5763_v58 = vunpack.i.l.bf16 %v5762_v2 }
 0x3da   : > { %v5793_v54 = vunpack.i.l.bf16 %v8783_v32  ;;  %v5757_v27 = vpop.permute.xlu1 %5756  ;;  %v5752_v22 = vpop.permute.xlu0 %5751 }
 0x3db   : > { %v5758_v9 = vunpack.i.l.bf16 %v5757_v27  ;;  %v5754_v41 = vunpack.i.h.bf16 %v5752_v22  ;;  %v5753_v39 = vunpack.i.l.bf16 %v5752_v22 }
 0x3dc   : > { %v3019_v26 = vsel %vm1757_vm13, %v1992_v10, %v5793_v54 }
 0x3dd   : > { %v3016_v7 = vsel %vm1757_vm13, %v1989_v20, %v5754_v41  ;;  %v3015_v19 = vsel %vm1757_vm13, %v1988_v25, %v5753_v39  ;;  %v3051_v6 = vsel %vm2925_vm15, %v3019_v26, %v5779_v16  ;;  %v1990_v26 = vld [vmem:[#allocation2 + $0x151] sm:$0xff]  ;;  %v1991_v25 = vld [vmem:[#allocation2 + $0x159] sm:$0xff]  ;;  %v8805_v20 = vpop.f32.mrf.mxu1 }
 0x3de   : > { %v3047_v12 = vsel %vm2925_vm15, %v3015_v19, %v5739_v36  ;;  %v3048_v52 = vsel %vm2925_vm15, %v3016_v7, %v5758_v9  ;;  %v5778_v9 = vunpack.i.l.bf16 %v5777_v50  ;;  %v5759_v36 = vunpack.i.h.bf16 %v5757_v27 }
 0x3df   : > { %v8795_v23 = vsel %vm2958_vm0, %v3047_v12, %v5763_v58  ;;  %v8798_v34 = vsel %vm2958_vm0, %v3048_v52, %v5764_v30 }
 0x3e0   : > { %v3124_v54 = vpack.c.bf16 %v8798_v34, %v8795_v23 }
 0x3e1   : > { %3453 = vmatmul.bf16.gmra.mxu2 %v3103_v33 }
 0x3e2   : > { %v5772_v2 = vpop.permute.xlu1 %5771  ;;  %v5767_v22 = vpop.permute.xlu0 %5766 }
 0x3e3   : > { %v5774_v16 = vunpack.i.h.bf16 %v5772_v2  ;;  %v5773_v10 = vunpack.i.l.bf16 %v5772_v2  ;;  %v5769_v41 = vunpack.i.h.bf16 %v5767_v22  ;;  %v5768_v39 = vunpack.i.l.bf16 %v5767_v22 }
 0x3e5   : > { %v3018_v30 = vsel %vm1757_vm13, %v1991_v25, %v5774_v16  ;;  %v3017_v58 = vsel %vm1757_vm13, %v1990_v26, %v5773_v10  ;;  %v2983_v5 = vsel %vm2958_vm0, %v8561_v46, %v5768_v39  ;;  %v2984_v3 = vsel %vm2958_vm0, %v8558_v1, %v5769_v41  ;;  %v8827_v39 = vpop.f32.mrf.mxu1 }
 0x3e6   : > { %v3123_v33 = vpack.c.bf16 %v2984_v3, %v2983_v5  ;;  %v3049_v7 = vsel %vm2925_vm15, %v3017_v58, %v5759_v36  ;;  %v3050_v50 = vsel %vm2925_vm15, %v3018_v30, %v5778_v9  ;;  %v5807_v9 = vpop.permute.xlu2 %5806  ;;  %v5639_v36 = vunpack.i.h.bf16 %v8637_v4  ;;  %v1993_v30 = vld [vmem:[#allocation2 + $0x171] sm:$0xff] }
 0x3e7   : > { %v5809_v4 = vunpack.i.h.bf16 %v5807_v9 }
 0x3e9   : > { %3389 = vmatmul.bf16.gmra.mxu1 %v3117_v53 }
 0x3ea   : > { %v5787_v27 = vpop.permute.xlu1 %5786  ;;  %v5782_v19 = vpop.permute.xlu0 %5781 }
 0x3eb   : > { %v5789_v12 = vunpack.i.h.bf16 %v5787_v27  ;;  %v5788_v52 = vunpack.i.l.bf16 %v5787_v27  ;;  %v5784_v2 = vunpack.i.h.bf16 %v5782_v19  ;;  %v5783_v22 = vunpack.i.l.bf16 %v5782_v19 }
 0x3ed   : > { %v2985_v16 = vsel %vm2958_vm0, %v8608_v40, %v5788_v52  ;;  %v2986_v46 = vsel %vm2958_vm0, %v8611_v44, %v5789_v12  ;;  %v8820_v1 = vsel %vm2958_vm0, %v3049_v7, %v5783_v22  ;;  %v8823_v10 = vsel %vm2958_vm0, %v3050_v50, %v5784_v2  ;;  %v8850_v22 = vpop.f32.mrf.mxu1 }
 0x3ee   : > { %v3126_v41 = vpack.c.bf16 %v2986_v46, %v2985_v16  ;;  %v3127_v53 = vpack.c.bf16 %v8823_v10, %v8820_v1  ;;  %v5794_v40 = vunpack.i.h.bf16 %v8783_v32  ;;  %v5808_v44 = vunpack.i.l.bf16 %v5807_v9  ;;  %v5822_v52 = vpop.permute.xlu2 %5821 }
 0x3ef   : > { %v2922_v50 = vsel %vm1757_vm13, %v8447_v38, %v5639_v36  ;;  %v5824_v46 = vunpack.i.h.bf16 %v5822_v52 }
 0x3f0   : > { %v3020_v27 = vsel %vm1757_vm13, %v1993_v30, %v5794_v40  ;;  %v2987_v21 = vsel %vm2958_vm0, %v8649_v56, %v5808_v44  ;;  %v5823_v56 = vunpack.i.l.bf16 %v5822_v52  ;;  %v9726_v52 = vld [vmem:[#allocation33_spill] sm:$0xff] }
 0x3f1   : > { %3458 = vmatmul.bf16.gmra.mxu2 %v3106_v13 }
 0x3f2   : > { %v5802_v26 = vpop.permute.xlu1 %5801  ;;  %v5797_v25 = vpop.permute.xlu0 %5796 }
 0x3f3   : > { %v5804_v58 = vunpack.i.h.bf16 %v5802_v26  ;;  %v5803_v5 = vunpack.i.l.bf16 %v5802_v26  ;;  %v5799_v3 = vunpack.i.h.bf16 %v5797_v25  ;;  %v5798_v7 = vunpack.i.l.bf16 %v5797_v25 }
 0x3f5   : > { %v2955_v32 = vsel %vm2925_vm15, %v2922_v50, %v5799_v3  ;;  %v3052_v19 = vsel %vm2925_vm15, %v3020_v27, %v5798_v7  ;;  %v8840_v15 = vsel %vm2958_vm0, %v3051_v6, %v5803_v5  ;;  %v8879_v5 = vld [vmem:[%s9512_s4] ss:$0 sm:$0xff] }
 0x3f6   : > { %v2988_v13 = vsel %vm2958_vm0, %v2955_v32, %v5809_v4  ;;  %v8846_v12 = vsel %vm2958_vm0, %v3052_v19, %v5804_v58  ;;  %v3341_v3 = vadd.f32 %v8879_v5, %v8768_v59  ;;  %v3343_v4 = vadd.f32 %v8879_v5, %v8786_v61  ;;  %v8895_v59 = vpop.f32.mrf.mxu3 }
 0x3f7   : > { %v3129_v38 = vpack.c.bf16 %v2988_v13, %v2987_v21  ;;  %v3130_v2 = vpack.c.bf16 %v8846_v12, %v8840_v15  ;;  %v3348_v28 = vadd.f32 %v8879_v5, %v8827_v39 }
 0x3f9   : > { %3394 = vmatmul.bf16.gmra.mxu1 %v3120_v43 }
 0x3fa   : > { %v5817_v6 = vpop.permute.xlu1 %5816  ;;  %v5812_v16 = vpop.permute.xlu0 %5811 }
 0x3fb   : > { %v5819_v9 = vunpack.i.h.bf16 %v5817_v6  ;;  %v5818_v36 = vunpack.i.l.bf16 %v5817_v6  ;;  %v5814_v40 = vunpack.i.h.bf16 %v5812_v16  ;;  %v5813_v44 = vunpack.i.l.bf16 %v5812_v16 }
 0x3fd   : > { %v3022_v26 = vsel %vm1757_vm13, %v8549_v62, %v5814_v40  ;;  %v3021_v25 = vsel %vm1757_vm13, %v8563_v11, %v5813_v44  ;;  %v8872_v62 = vpop.f32.mrf.mxu1 }
 0x3fe   : > { %v3053_v30 = vsel %vm2925_vm15, %v3021_v25, %v5818_v36  ;;  %v3054_v58 = vsel %vm2925_vm15, %v3022_v26, %v5819_v9  ;;  %v9727_v25 = vld [vmem:[#allocation8_spill] sm:$0xff] }
 0x3ff   : > { %v8862_v51 = vsel %vm2958_vm0, %v3053_v30, %v5823_v56  ;;  %v8865_v48 = vsel %vm2958_vm0, %v3054_v58, %v5824_v46  ;;  %v8906_v46 = vpop.f32.mrf.mxu3  ;;  %v2924_v58 = vsel %vm1757_vm13, %v8515_v55, %v5684_v29  ;;  %v3351_v55 = vadd.f32 %v8879_v5, %v8850_v22  ;;  %v3695_v29 = vld [vmem:[#allocation2 + $0x9] sm:$0xff] }
 0x400   : > { %v3133_v43 = vpack.c.bf16 %v8865_v48, %v8862_v51 }
 0x401   : > { %3463 = vmatmul.bf16.gmra.mxu2 %v3109_v47  ;;  %v9724_v47 = vld [vmem:[#allocation28_spill] sm:$0xff] }
 0x402   : > { %v5827_v56 = vpop.permute.xlu0 %5826  ;;  %v5832_v36 = vpop.permute.xlu1 %5831 }
 0x403   : > { %v5829_v40 = vunpack.i.h.bf16 %v5827_v56  ;;  %v5828_v44 = vunpack.i.l.bf16 %v5827_v56 }
 0x405   : > { %v8874_v11 = vpop.f32.mrf.mxu1 }
 0x409   : > { %3399 = vmatmul.bf16.gmra.mxu1 %v3123_v33 }
 0x40d   : > { %v8889_v50 = vpop.f32.mrf.mxu1 }
 0x411   : > { %3468 = vmatmul.bf16.gmra.mxu2 %v3112_v18  ;;  %v9725_v18 = vld [vmem:[#allocation31_spill] sm:$0xff] }
 0x414   : > { %v3429_v7 = vpop.f32.mrf.mxu2 }
 0x415   : > { %v3430_v35 = vadd.f32 %v3429_v7, %v3341_v3  ;;  %v8900_v21 = vpop.f32.mrf.mxu1  ;;  %v5834_v3 = vunpack.i.h.bf16 %v5832_v36  ;;  %v5833_v7 = vunpack.i.l.bf16 %v5832_v36  ;;  %v3353_v36 = vadd.f32 %v8879_v5, %v8872_v62 }
 0x417   : > { %v3519_v33 = vadd.f32 %v9724_v47, %v3430_v35  ;;  %v3694_v35 = vld [vmem:[#allocation2 + $0x1] sm:$0xff]  ;;  %v2957_v47 = vsel %vm2925_vm15, %v2924_v58, %v5829_v40 }
 0x419   : > { %v3598_v27 = vmax.f32 %v3519_v33, 0.0  ;;  %3404 = vmatmul.bf16.gmra.mxu1 %v3126_v41  ;;  %v3346_v41 = vadd.f32 %v8879_v5, %v8805_v20 }
 0x41b   : > { %3630 = vst.msk [vmem:[#allocation2 + $0x19] sm:$0xff] %vm1757_vm13, %v3598_v27 }
 0x41c   : > { %v3431_v60 = vpop.f32.mrf.mxu2 }
 0x41d   : > { %v3432_v17 = vadd.f32 %v3431_v60, %v3343_v4  ;;  %v8913_v20 = vpop.f32.mrf.mxu1 }
 0x41f   : > { %v3521_v32 = vadd.f32 %v9725_v18, %v3432_v17  ;;  %v8931_v17 = vpop.f32.mrf.mxu3 }
 0x421   : > { %v3599_v19 = vmax.f32 %v3521_v32, 0.0  ;;  %3473 = vmatmul.bf16.gmra.mxu2 %v3115_v37  ;;  %v5683_v37 = vunpack.i.l.bf16 %v8635_v57 }
 0x422   : > { %v3790_v57 = vld [vmem:[#allocation2 + $0x18] sm:$0xff] }
 0x423   : > { %3631 = vst.msk [vmem:[#allocation2 + $0x21] sm:$0xff] %vm1757_vm13, %v3599_v19  ;;  %v2923_v39 = vsel %vm1757_vm13, %v8438_v0, %v5683_v37  ;;  %v2990_v19 = vsel %vm2958_vm0, %v2957_v47, %v5834_v3 }
 0x424   : > { %v3434_v61 = vpop.f32.mrf.mxu2  ;;  %v2956_v33 = vsel %vm2925_vm15, %v2923_v39, %v5828_v44 }
 0x425   : > { %v3435_v13 = vadd.f32 %v3434_v61, %v3346_v41  ;;  %v2989_v32 = vsel %vm2958_vm0, %v2956_v33, %v5833_v7  ;;  %v9728_v61 = vld [vmem:[#allocation13_spill] sm:$0xff] }
 0x427   : > { %v3524_v6 = vadd.f32 %v9726_v52, %v3435_v13  ;;  %v3132_v52 = vpack.c.bf16 %v2990_v19, %v2989_v32 }
 0x429   : > { %v3600_v16 = vmax.f32 %v3524_v6, 0.0  ;;  %3409 = vmatmul.bf16.gmra.mxu1 %v3129_v38 }
 0x42a   : > { %v3758_v38 = vld [vmem:[#allocation2 + $0x1a] sm:$0xff]  ;;  %v3759_v6 = vld [vmem:[#allocation2 + $0x22] sm:$0xff] }
 0x42b   : > { %3632 = vst.msk [vmem:[#allocation2 + $0x31] sm:$0xff] %vm1757_vm13, %v3600_v16  ;;  %v3822_v4 = vsub.f32 %v3758_v38, %v3790_v57  ;;  %v3791_v16 = vld [vmem:[#allocation2 + $0x20] sm:$0xff]  ;;  %v8947_v38 = vpop.f32.mrf.mxu3 }
 0x42c   : > { %v3436_v9 = vpop.f32.mrf.mxu2 }
 0x42d   : > { %v3437_v26 = vadd.f32 %v3436_v9, %v3348_v28  ;;  %v3886_v42 = vmul.f32 %v3822_v4, %v3822_v4  ;;  %v3823_v9 = vsub.f32 %v3759_v6, %v3791_v16 }
 0x42f   : > { %v3526_v30 = vadd.f32 %v9727_v25, %v3437_v26 }
 0x431   : > { %v3601_v27 = vmax.f32 %v3526_v30, 0.0  ;;  %3478 = vmatmul.bf16.gmra.mxu2 %v3118_v14  ;;  %v8935_v14 = vpop.f32.mrf.mxu1  ;;  %v3887_v30 = vmul.f32 %v3823_v9, %v3823_v9 }
 0x432   : > { %v8925_v60 = vld [vmem:[#allocation2 + $0x31] sm:$0xff] }
 0x433   : > { %3633 = vst.msk [vmem:[#allocation2 + $0x39] sm:$0xff] %vm1757_vm13, %v3601_v27  ;;  %v3726_v0 = vsub.f32 %v8925_v60, %v3694_v35  ;;  %v3792_v35 = vld [vmem:[#allocation2 + $0x30] sm:$0xff] }
 0x434   : > { %v3439_v18 = vpop.f32.mrf.mxu2 }
 0x435   : > { %v3440_v41 = vadd.f32 %v3439_v18, %v3351_v55  ;;  %v3854_v45 = vmul.f32 %v3726_v0, %v3726_v0  ;;  %v3696_v55 = vld [vmem:[#allocation2 + $0x19] sm:$0xff] }
 0x437   : > { %v3529_v13 = vadd.f32 %v9728_v61, %v3440_v41  ;;  %v3918_v22 = vadd.f32 %v3886_v42, %v3854_v45 }
 0x439   : > { %v3602_v56 = vmax.f32 %v3529_v13, 0.0  ;;  %3414 = vmatmul.bf16.gmra.mxu1 %v3132_v52  ;;  %v8938_v28 = vadd.f32 1e-06, %v3918_v22  ;;  %v8950_v3 = vpop.f32.mrf.mxu1  ;;  %v8966_v13 = vpop.f32.mrf.mxu3 }
 0x43a   : > { %v8940_v37 = vld [vmem:[#allocation2 + $0x39] sm:$0xff] }
 0x43b   : > { %3634 = vst.msk [vmem:[#allocation2 + $0x49] sm:$0xff] %vm1757_vm13, %v3602_v56  ;;  %5837 = vrsqrt.f32 %v8938_v28  ;;  %v3727_v44 = vsub.f32 %v8940_v37, %v3695_v29  ;;  %v3760_v58 = vld [vmem:[#allocation2 + $0x32] sm:$0xff]  ;;  %v3761_v42 = vld [vmem:[#allocation2 + $0x3a] sm:$0xff]  ;;  %vm3989_vm1 = vcmp.eq.f32.partialorder %v8938_v28, inf  ;;  %vm3991_vm2 = vcmp.eq.f32.partialorder %v8938_v28, 0.0 }
 0x43c   : > { %v3441_v40 = vpop.f32.mrf.mxu2  ;;  %v3824_v47 = vsub.f32 %v3760_v58, %v3792_v35  ;;  %v3793_v61 = vld [vmem:[#allocation2 + $0x38] sm:$0xff]  ;;  %v3992_v58 = vand.u32 2147483648, %v8938_v28 }
 0x43d   : > { %v3442_v26 = vadd.f32 %v3441_v40, %v3353_v36  ;;  %v3855_v25 = vmul.f32 %v3727_v44, %v3727_v44  ;;  %v3825_v9 = vsub.f32 %v3761_v42, %v3793_v61  ;;  %v3358_v36 = vadd.f32 %v8879_v5, %v8889_v50  ;;  %v3697_v40 = vld [vmem:[#allocation2 + $0x21] sm:$0xff] }
 0x43f   : > { %v3531_v39 = vadd.f32 %v8324_v8, %v3442_v26  ;;  %v3919_v7 = vadd.f32 %v3887_v30, %v3855_v25  ;;  %v3356_v8 = vadd.f32 %v8879_v5, %v8874_v11  ;;  %v3889_v35 = vmul.f32 %v3825_v9, %v3825_v9 }
 0x441   : > { %v5838_v62 = vpop.eup %5837  ;;  %v3603_v57 = vmax.f32 %v3531_v39, 0.0  ;;  %3483 = vmatmul.bf16.gmra.mxu2 %v3121_v24  ;;  %v8956_v27 = vadd.f32 1e-06, %v3919_v7  ;;  %v3888_v24 = vmul.f32 %v3824_v47, %v3824_v47  ;;  %v8970_v16 = vpop.f32.mrf.mxu1 }
 0x442   : > { %v3983_v33 = vmul.f32 %v5838_v62, %v8938_v28  ;;  %v8958_v4 = vld [vmem:[#allocation2 + $0x49] sm:$0xff] }
 0x443   : > { %3635 = vst.msk [vmem:[#allocation2 + $0x51] sm:$0xff] %vm1757_vm13, %v3603_v57  ;;  %v3728_v0 = vsub.f32 %v8958_v4, %v3696_v55  ;;  %5839 = vrsqrt.f32 %v8956_v27  ;;  %vm4001_vm3 = vcmp.eq.f32.partialorder %v8956_v27, inf  ;;  %vm4003_vm4 = vcmp.eq.f32.partialorder %v8956_v27, 0.0 }
 0x444   : > { %v3444_v18 = vpop.f32.mrf.mxu2  ;;  %v3984_v32 = vmul.f32 %v5838_v62, %v3983_v33 }
 0x445   : > { %v3445_v63 = vadd.f32 %v3444_v18, %v3356_v8  ;;  %v3856_v31 = vmul.f32 %v3728_v0, %v3728_v0  ;;  %v3794_v8 = vld [vmem:[#allocation2 + $0x48] sm:$0xff] }
 0x446   : > { %v3985_v19 = vmul.f32 0.5, %v3984_v32 }
 0x447   : > { %v3534_v41 = vadd.f32 %v8886_v49, %v3445_v63  ;;  %v3920_v45 = vadd.f32 %v3888_v24, %v3856_v31  ;;  %v8989_v31 = vpop.f32.mrf.mxu3 }
 0x448   : > { %v3986_v11 = vsub.f32 1.5, %v3985_v19  ;;  %v3361_v19 = vadd.f32 %v8879_v5, %v8900_v21  ;;  %v4004_v21 = vand.u32 2147483648, %v8956_v27 }
 0x449   : > { %v3604_v52 = vmax.f32 %v3534_v41, 0.0  ;;  %v8968_v22 = vadd.f32 1e-06, %v3920_v45  ;;  %v5840_v6 = vpop.eup %5839  ;;  %v9001_v34 = vpop.f32.mrf.mxu1 }
 0x44a   : > { %v3987_v56 = vmul.f32 %v5838_v62, %v3986_v11  ;;  %v8972_v29 = vld [vmem:[#allocation2 + $0x51] sm:$0xff]  ;;  %v3995_v49 = vmul.f32 %v5840_v6, %v8956_v27 }
 0x44b   : > { %3636 = vst.msk [vmem:[#allocation2 + $0x61] sm:$0xff] %vm1757_vm13, %v3604_v52  ;;  %5841 = vrsqrt.f32 %v8968_v22  ;;  %v3729_v25 = vsub.f32 %v8972_v29, %v3697_v40  ;;  %v3762_v62 = vld [vmem:[#allocation2 + $0x4a] sm:$0xff]  ;;  %vm4013_vm5 = vcmp.eq.f32.partialorder %v8968_v22, inf  ;;  %vm4015_vm6 = vcmp.eq.f32.partialorder %v8968_v22, 0.0 }
 0x44c   : > { %v3446_v44 = vpop.f32.mrf.mxu2  ;;  %v3988_v26 = vmul.f32 %v3987_v56, %v8938_v28  ;;  %v3996_v39 = vmul.f32 %v5840_v6, %v3995_v49  ;;  %v3826_v63 = vsub.f32 %v3762_v62, %v3794_v8  ;;  %v3795_v49 = vld [vmem:[#allocation2 + $0x50] sm:$0xff] }
 0x44d   : > { %v3447_v30 = vadd.f32 %v3446_v44, %v3358_v36  ;;  %v3857_v7 = vmul.f32 %v3729_v25, %v3729_v25  ;;  %v3763_v36 = vld [vmem:[#allocation2 + $0x52] sm:$0xff] }
 0x44e   : > { %v3990_v50 = vsel %vm3989_vm1, %v8938_v28, %v3988_v26  ;;  %v3997_v33 = vmul.f32 0.5, %v3996_v39  ;;  %v3890_v52 = vmul.f32 %v3826_v63, %v3826_v63 }
 0x44f   : > { %v3536_v57 = vadd.f32 %v8895_v59, %v3447_v30  ;;  %v3993_v47 = vsel %vm3991_vm2, %v3992_v58, %v3990_v50  ;;  %v3921_v55 = vadd.f32 %v3889_v35, %v3857_v7  ;;  %v3827_v50 = vsub.f32 %v3763_v36, %v3795_v49  ;;  %v2123_v7 = vld [vmem:[#allocation2 + $0x19a] sm:$0xff]  ;;  %v2124_v35 = vld [vmem:[#allocation2 + $0x1a2] sm:$0xff]  ;;  %v9019_v62 = vpop.f32.mrf.mxu3 }
 0x450   : > { %4366 = vxpose.xlu2.b32.start [1/16] (narrow) %v3993_v47, 32  ;;  %v3998_v32 = vsub.f32 1.5, %v3997_v33 }
 0x451   : > { %v5842_v0 = vpop.eup %5841  ;;  %v3605_v18 = vmax.f32 %v3536_v57, 0.0  ;;  %3488 = vmatmul.bf16.gmra.mxu2 %v3124_v54  ;;  %v8992_v24 = vadd.f32 1e-06, %v3921_v55  ;;  %v3134_v55 = vpack.c.bf16 %v2124_v35, %v2123_v7 }
 0x452   : > { %v4007_v28 = vmul.f32 %v5842_v0, %v8968_v22  ;;  %v8994_v59 = vld [vmem:[#allocation2 + $0x61] sm:$0xff]  ;;  %v3999_v41 = vmul.f32 %v5840_v6, %v3998_v32 }
 0x453   : > { %3637 = vst.msk [vmem:[#allocation2 + $0x69] sm:$0xff] %vm1757_vm13, %v3605_v18  ;;  %v3730_v23 = vsub.f32 %v8994_v59, %v8925_v60  ;;  %5843 = vrsqrt.f32 %v8992_v24  ;;  %v9026_v18 = vpop.f32.mrf.mxu1  ;;  %4633 = vmatmul.msk.bf16.gmra.mxu3 %vm1757_vm13, %v3134_v55  ;;  %vm4025_vm7 = vcmp.eq.f32.partialorder %v8992_v24, inf  ;;  %vm4027_vm8 = vcmp.eq.f32.partialorder %v8992_v24, 0.0 }
 0x454   : > { %v3449_v54 = vpop.f32.mrf.mxu2  ;;  %v4008_v45 = vmul.f32 %v5842_v0, %v4007_v28  ;;  %v4000_v61 = vmul.f32 %v3999_v41, %v8956_v27  ;;  %v3891_v28 = vmul.f32 %v3827_v50, %v3827_v50 }
 0x455   : > { %v3450_v42 = vadd.f32 %v3449_v54, %v3361_v19  ;;  %v3858_v11 = vmul.f32 %v3730_v23, %v3730_v23 }
 0x456   : > { %v4009_v56 = vmul.f32 0.5, %v4008_v45  ;;  %v4002_v60 = vsel %vm4001_vm3, %v8956_v27, %v4000_v61  ;;  %v3796_v45 = vld [vmem:[#allocation2 + $0x60] sm:$0xff] }
 0x457   : > { %v3539_v6 = vadd.f32 %v8906_v46, %v3450_v42  ;;  %v3922_v9 = vadd.f32 %v3890_v52, %v3858_v11  ;;  %v4005_v40 = vsel %vm4003_vm4, %v4004_v21, %v4002_v60  ;;  %v3363_v46 = vadd.f32 %v8879_v5, %v8913_v20 }
 0x458   : > { %v4010_v44 = vsub.f32 1.5, %v4009_v56  ;;  %4367 = vxpose.xlu2.b32.cont [2/16] (narrow) %v4005_v40, 32  ;;  %v4016_v20 = vand.u32 2147483648, %v8968_v22  ;;  %v9047_v40 = vpop.f32.mrf.mxu3 }
 0x459   : > { %v3606_v26 = vmax.f32 %v3539_v6, 0.0  ;;  %v9010_v25 = vadd.f32 1e-06, %v3922_v9  ;;  %v5844_v30 = vpop.eup %5843 }
 0x45a   : > { %v4011_v58 = vmul.f32 %v5842_v0, %v4010_v44  ;;  %v9012_v39 = vld [vmem:[#allocation2 + $0x69] sm:$0xff]  ;;  %v4019_v27 = vmul.f32 %v5844_v30, %v8992_v24 }
 0x45b   : > { %3638 = vst.msk [vmem:[#allocation2 + $0x79] sm:$0xff] %vm1757_vm13, %v3606_v26  ;;  %5845 = vrsqrt.f32 %v9010_v25  ;;  %v3731_v33 = vsub.f32 %v9012_v39, %v8940_v37  ;;  %v3764_v19 = vld [vmem:[#allocation2 + $0x62] sm:$0xff]  ;;  %vm4037_vm9 = vcmp.eq.f32.partialorder %v9010_v25, inf  ;;  %vm4039_vm10 = vcmp.eq.f32.partialorder %v9010_v25, 0.0 }
 0x45c   : > { %v3451_v57 = vpop.f32.mrf.mxu2  ;;  %v4012_v47 = vmul.f32 %v4011_v58, %v8968_v22  ;;  %v4020_v0 = vmul.f32 %v5844_v30, %v4019_v27  ;;  %v3765_v58 = vld [vmem:[#allocation2 + $0x6a] sm:$0xff] }
 0x45d   : > { %v3452_v8 = vadd.f32 %v3451_v57, %v3363_v46  ;;  %v3859_v63 = vmul.f32 %v3731_v33, %v3731_v33  ;;  %v3797_v50 = vld [vmem:[#allocation2 + $0x68] sm:$0xff]  ;;  %v9054_v46 = vpop.f32.mrf.mxu1 }
 0x45e   : > { %v4014_v32 = vsel %vm4013_vm5, %v8968_v22, %v4012_v47  ;;  %v4021_v23 = vmul.f32 0.5, %v4020_v0  ;;  %v3828_v22 = vsub.f32 %v3764_v19, %v3796_v45 }
 0x45f   : > { %v3541_v37 = vadd.f32 %v8931_v17, %v3452_v8  ;;  %v4017_v41 = vsel %vm4015_vm6, %v4016_v20, %v4014_v32  ;;  %v3923_v54 = vadd.f32 %v3891_v28, %v3859_v63  ;;  %v3366_v17 = vadd.f32 %v8879_v5, %v8935_v14 }
 0x460   : > { %4368 = vxpose.xlu2.b32.cont [3/16] (narrow) %v4017_v41, 32  ;;  %v4022_v11 = vsub.f32 1.5, %v4021_v23  ;;  %v3892_v49 = vmul.f32 %v3828_v22, %v3828_v22  ;;  %v4028_v14 = vand.u32 2147483648, %v8992_v24  ;;  %v3368_v8 = vadd.f32 %v8879_v5, %v8950_v3 }
 0x461   : > { %v5846_v42 = vpop.eup %5845  ;;  %v3607_v61 = vmax.f32 %v3541_v37, 0.0  ;;  %3493 = vmatmul.bf16.gmra.mxu2 %v3127_v53  ;;  %v9036_v21 = vadd.f32 1e-06, %v3923_v54  ;;  %v4040_v28 = vand.u32 2147483648, %v9010_v25 }
 0x462   : > { %v4031_v52 = vmul.f32 %v5846_v42, %v9010_v25  ;;  %v9038_v56 = vld [vmem:[#allocation2 + $0x79] sm:$0xff]  ;;  %v4023_v6 = vmul.f32 %v5844_v30, %v4022_v11 }
 0x463   : > { %3639 = vst.msk [vmem:[#allocation2 + $0x81] sm:$0xff] %vm1757_vm13, %v3607_v61  ;;  %v3732_v60 = vsub.f32 %v9038_v56, %v8958_v4  ;;  %5847 = vrsqrt.f32 %v9036_v21  ;;  %v9073_v61 = vpop.f32.mrf.mxu3  ;;  %v3798_v11 = vld [vmem:[#allocation2 + $0x78] sm:$0xff]  ;;  %vm4049_vm11 = vcmp.eq.f32.partialorder %v9036_v21, inf  ;;  %vm4051_vm12 = vcmp.eq.f32.partialorder %v9036_v21, 0.0 }
 0x464   : > { %v3454_v9 = vpop.f32.mrf.mxu2  ;;  %v4032_v1 = vmul.f32 %v5846_v42, %v4031_v52  ;;  %v4024_v53 = vmul.f32 %v4023_v6, %v8992_v24 }
 0x465   : > { %v3455_v10 = vadd.f32 %v3454_v9, %v3366_v17  ;;  %v3860_v36 = vmul.f32 %v3732_v60, %v3732_v60  ;;  %v9078_v6 = vpop.f32.mrf.mxu1 }
 0x466   : > { %v4033_v44 = vmul.f32 0.5, %v4032_v1  ;;  %v4026_v4 = vsel %vm4025_vm7, %v8992_v24, %v4024_v53  ;;  %v3371_v1 = vadd.f32 %v8879_v5, %v8970_v16 }
 0x467   : > { %v3544_v26 = vadd.f32 %v8947_v38, %v3455_v10  ;;  %v3924_v30 = vadd.f32 %v3892_v49, %v3860_v36  ;;  %v4029_v27 = vsel %vm4027_vm8, %v4028_v14, %v4026_v4  ;;  %v3829_v38 = vsub.f32 %v3765_v58, %v3797_v50 }
 0x468   : > { %v4034_v7 = vsub.f32 1.5, %v4033_v44  ;;  %4369 = vxpose.xlu2.b32.cont [4/16] (narrow) %v4029_v27, 32  ;;  %v4052_v44 = vand.u32 2147483648, %v9036_v21 }
 0x469   : > { %v3608_v35 = vmax.f32 %v3544_v26, 0.0  ;;  %v9056_v57 = vadd.f32 1e-06, %v3924_v30  ;;  %v5848_v47 = vpop.eup %5847  ;;  %v3893_v41 = vmul.f32 %v3829_v38, %v3829_v38 }
 0x46a   : > { %v4035_v33 = vmul.f32 %v5846_v42, %v4034_v7  ;;  %v9058_v55 = vld [vmem:[#allocation2 + $0x81] sm:$0xff]  ;;  %v4043_v24 = vmul.f32 %v5848_v47, %v9036_v21 }
 0x46b   : > { %3640 = vst.msk [vmem:[#allocation2 + $0x91] sm:$0xff] %vm1757_vm13, %v3608_v35  ;;  %5849 = vrsqrt.f32 %v9056_v57  ;;  %v3733_v32 = vsub.f32 %v9058_v55, %v8972_v29  ;;  %v3766_v23 = vld [vmem:[#allocation2 + $0x7a] sm:$0xff]  ;;  %v3767_v30 = vld [vmem:[#allocation2 + $0x82] sm:$0xff]  ;;  %vm4061_vm14 = vcmp.eq.f32.partialorder %v9056_v57, inf  ;;  %vm4063_vm15 = vcmp.eq.f32.partialorder %v9056_v57, 0.0 }
 0x46c   : > { %v3456_v20 = vpop.f32.mrf.mxu2  ;;  %v4036_v0 = vmul.f32 %v4035_v33, %v9010_v25  ;;  %v4044_v19 = vmul.f32 %v5848_v47, %v4043_v24  ;;  %v3799_v58 = vld [vmem:[#allocation2 + $0x80] sm:$0xff]  ;;  %v9099_v33 = vpop.f32.mrf.mxu3  ;;  %v3373_v24 = vadd.f32 %v8879_v5, %v9001_v34 }
 0x46d   : > { %v3457_v63 = vadd.f32 %v3456_v20, %v3368_v8  ;;  %v3861_v37 = vmul.f32 %v3733_v32, %v3733_v32  ;;  %v9108_v20 = vpop.f32.mrf.mxu1 }
 0x46e   : > { %v4038_v3 = vsel %vm4037_vm9, %v9010_v25, %v4036_v0  ;;  %v4045_v42 = vmul.f32 0.5, %v4044_v19  ;;  %v3830_v25 = vsub.f32 %v3766_v23, %v3798_v11  ;;  %v4064_v19 = vand.u32 2147483648, %v9056_v57 }
 0x46f   : > { %v3546_v54 = vadd.f32 %v8966_v13, %v3457_v63  ;;  %v4041_v45 = vsel %vm4039_vm10, %v4040_v28, %v4038_v3  ;;  %v3925_v29 = vadd.f32 %v3893_v41, %v3861_v37 }
 0x470   : > { %4370 = vxpose.xlu2.b32.cont [5/16] (narrow) %v4041_v45, 32  ;;  %v4046_v17 = vsub.f32 1.5, %v4045_v42  ;;  %v3894_v14 = vmul.f32 %v3830_v25, %v3830_v25 }
 0x471   : > { %v5850_v22 = vpop.eup %5849  ;;  %v3609_v52 = vmax.f32 %v3546_v54, 0.0  ;;  %3498 = vmatmul.bf16.gmra.mxu2 %v3130_v2  ;;  %v9081_v13 = vadd.f32 1e-06, %v3925_v29 }
 0x472   : > { %v4055_v60 = vmul.f32 %v5850_v22, %v9056_v57  ;;  %v9083_v9 = vld [vmem:[#allocation2 + $0x91] sm:$0xff]  ;;  %v4047_v10 = vmul.f32 %v5848_v47, %v4046_v17 }
 0x473   : > { %3641 = vst.msk [vmem:[#allocation2 + $0x99] sm:$0xff] %vm1757_vm13, %v3609_v52  ;;  %v3734_v15 = vsub.f32 %v9083_v9, %v8994_v59  ;;  %5851 = vrsqrt.f32 %v9081_v13  ;;  %v3800_v11 = vld [vmem:[#allocation2 + $0x90] sm:$0xff]  ;;  %vm4073_vm0 = vcmp.eq.f32.partialorder %v9081_v13, inf  ;;  %vm4075_vm1 = vcmp.eq.f32.partialorder %v9081_v13, 0.0 }
 0x474   : > { %v3459_v12 = vpop.f32.mrf.mxu2  ;;  %v4056_v2 = vmul.f32 %v5850_v22, %v4055_v60  ;;  %v4048_v36 = vmul.f32 %v4047_v10, %v9036_v21 }
 0x475   : > { %v3460_v53 = vadd.f32 %v3459_v12, %v3371_v1  ;;  %v3862_v49 = vmul.f32 %v3734_v15, %v3734_v15  ;;  %v9131_v15 = vpop.f32.mrf.mxu3 }
 0x476   : > { %v4057_v16 = vmul.f32 0.5, %v4056_v2  ;;  %v4050_v4 = vsel %vm4049_vm11, %v9036_v21, %v4048_v36  ;;  %v9135_v36 = vpop.f32.mrf.mxu1 }
 0x477   : > { %v3549_v26 = vadd.f32 %v8989_v31, %v3460_v53  ;;  %v3926_v59 = vadd.f32 %v3894_v14, %v3862_v49  ;;  %v4053_v50 = vsel %vm4051_vm12, %v4052_v44, %v4050_v4  ;;  %v3831_v31 = vsub.f32 %v3767_v30, %v3799_v58 }
 0x478   : > { %v4058_v27 = vsub.f32 1.5, %v4057_v16  ;;  %4371 = vxpose.xlu2.b32.cont [6/16] (narrow) %v4053_v50, 32 }
 0x479   : > { %v3610_v7 = vmax.f32 %v3549_v26, 0.0  ;;  %v9097_v35 = vadd.f32 1e-06, %v3926_v59  ;;  %v5852_v47 = vpop.eup %5851  ;;  %v3895_v41 = vmul.f32 %v3831_v31, %v3831_v31 }
 0x47a   : > { %v4059_v38 = vmul.f32 %v5850_v22, %v4058_v27  ;;  %v9101_v8 = vld [vmem:[#allocation2 + $0x99] sm:$0xff]  ;;  %v4067_v21 = vmul.f32 %v5852_v47, %v9081_v13 }
 0x47b   : > { %3642 = vst.msk [vmem:[#allocation2 + $0xa9] sm:$0xff] %vm1757_vm13, %v3610_v7  ;;  %5853 = vrsqrt.f32 %v9097_v35  ;;  %v3735_v63 = vsub.f32 %v9101_v8, %v9012_v39  ;;  %v3768_v23 = vld [vmem:[#allocation2 + $0x92] sm:$0xff]  ;;  %v3769_v16 = vld [vmem:[#allocation2 + $0x9a] sm:$0xff]  ;;  %vm4085_vm2 = vcmp.eq.f32.partialorder %v9097_v35, inf  ;;  %vm4087_vm3 = vcmp.eq.f32.partialorder %v9097_v35, 0.0 }
 0x47c   : > { %v3461_v0 = vpop.f32.mrf.mxu2  ;;  %v4060_v32 = vmul.f32 %v4059_v38, %v9056_v57  ;;  %v4068_v34 = vmul.f32 %v5852_v47, %v4067_v21  ;;  %v3832_v17 = vsub.f32 %v3768_v23, %v3800_v11  ;;  %v3801_v26 = vld [vmem:[#allocation2 + $0x98] sm:$0xff] }
 0x47d   : > { %v3462_v28 = vadd.f32 %v3461_v0, %v3373_v24  ;;  %v3863_v37 = vmul.f32 %v3735_v63, %v3735_v63  ;;  %v4088_v0 = vand.u32 2147483648, %v9097_v35  ;;  %v9156_v63 = vpop.f32.mrf.mxu3 }
 0x47e   : > { %v4062_v3 = vsel %vm4061_vm14, %v9056_v57, %v4060_v32  ;;  %v4069_v42 = vmul.f32 0.5, %v4068_v34  ;;  %v3896_v53 = vmul.f32 %v3832_v17, %v3832_v17 }
 0x47f   : > { %v3551_v54 = vadd.f32 %v9019_v62, %v3462_v28  ;;  %v4065_v45 = vsel %vm4063_vm15, %v4064_v19, %v4062_v3  ;;  %v3927_v29 = vadd.f32 %v3895_v41, %v3863_v37  ;;  %v3376_v62 = vadd.f32 %v8879_v5, %v9026_v18 }
 0x480   : > { %4372 = vxpose.xlu2.b32.cont [7/16] (narrow) %v4065_v45, 32  ;;  %v4070_v52 = vsub.f32 1.5, %v4069_v42  ;;  %v4076_v18 = vand.u32 2147483648, %v9081_v13 }
 0x481   : > { %v5854_v39 = vpop.eup %5853  ;;  %v3611_v22 = vmax.f32 %v3551_v54, 0.0  ;;  %3503 = vmatmul.bf16.gmra.mxu2 %v3133_v43  ;;  %v9122_v25 = vadd.f32 1e-06, %v3927_v29 }
 0x482   : > { %v4079_v57 = vmul.f32 %v5854_v39, %v9097_v35  ;;  %v9124_v60 = vld [vmem:[#allocation2 + $0xa9] sm:$0xff]  ;;  %v4071_v1 = vmul.f32 %v5852_v47, %v4070_v52  ;;  %v3833_v47 = vsub.f32 %v3769_v16, %v3801_v26 }
 0x483   : > { %3643 = vst.msk [vmem:[#allocation2 + $0xb1] sm:$0xff] %vm1757_vm13, %v3611_v22  ;;  %v3736_v10 = vsub.f32 %v9124_v60, %v9038_v56  ;;  %5855 = vrsqrt.f32 %v9122_v25  ;;  %v3802_v54 = vld [vmem:[#allocation2 + $0xa8] sm:$0xff]  ;;  %vm4097_vm4 = vcmp.eq.f32.partialorder %v9122_v25, inf  ;;  %vm4099_vm5 = vcmp.eq.f32.partialorder %v9122_v25, 0.0 }
 0x484   : > { %v3464_v51 = vpop.f32.mrf.mxu2  ;;  %v4080_v48 = vmul.f32 %v5854_v39, %v4079_v57  ;;  %v4072_v12 = vmul.f32 %v4071_v1, %v9081_v13  ;;  %v3897_v19 = vmul.f32 %v3833_v47, %v3833_v47 }
 0x485   : > { %v3465_v43 = vadd.f32 %v3464_v51, %v3376_v62  ;;  %v3864_v2 = vmul.f32 %v3736_v10, %v3736_v10 }
 0x486   : > { %v4081_v49 = vmul.f32 0.5, %v4080_v48  ;;  %v4074_v14 = vsel %vm4073_vm0, %v9081_v13, %v4072_v12 }
 0x487   : > { %v3554_v56 = vadd.f32 %v9047_v40, %v3465_v43  ;;  %v3928_v44 = vadd.f32 %v3896_v53, %v3864_v2  ;;  %v4077_v4 = vsel %vm4075_vm1, %v4076_v18, %v4074_v14  ;;  %v3378_v40 = vadd.f32 %v8879_v5, %v9054_v46 }
 0x488   : > { %v4082_v59 = vsub.f32 1.5, %v4081_v49  ;;  %4373 = vxpose.xlu2.b32.cont [8/16] (narrow) %v4077_v4, 32  ;;  %v4100_v43 = vand.u32 2147483648, %v9122_v25  ;;  %v9180_v49 = vpop.f32.mrf.mxu3 }
 0x489   : > { %v3612_v30 = vmax.f32 %v3554_v56, 0.0  ;;  %v9142_v58 = vadd.f32 1e-06, %v3928_v44  ;;  %v5856_v50 = vpop.eup %5855 }
 0x48a   : > { %v4083_v27 = vmul.f32 %v5854_v39, %v4082_v59  ;;  %v9144_v7 = vld [vmem:[#allocation2 + $0xb1] sm:$0xff]  ;;  %v4091_v13 = vmul.f32 %v5856_v50, %v9122_v25 }
 0x48b   : > { %3644 = vst.msk [vmem:[#allocation2 + $0xc1] sm:$0xff] %vm1757_vm13, %v3612_v30  ;;  %5857 = vrsqrt.f32 %v9142_v58  ;;  %v3737_v24 = vsub.f32 %v9144_v7, %v9058_v55  ;;  %v3770_v34 = vld [vmem:[#allocation2 + $0xaa] sm:$0xff]  ;;  %v9161_v55 = vpop.f32.mrf.mxu1  ;;  %v3771_v53 = vld [vmem:[#allocation2 + $0xb2] sm:$0xff]  ;;  %vm4109_vm6 = vcmp.eq.f32.partialorder %v9142_v58, inf  ;;  %vm4111_vm7 = vcmp.eq.f32.partialorder %v9142_v58, 0.0 }
 0x48c   : > { %v3466_v38 = vpop.f32.mrf.mxu2  ;;  %v4084_v31 = vmul.f32 %v4083_v27, %v9097_v35  ;;  %v4092_v32 = vmul.f32 %v5856_v50, %v4091_v13  ;;  %v3834_v11 = vsub.f32 %v3770_v34, %v3802_v54  ;;  %v3803_v18 = vld [vmem:[#allocation2 + $0xb0] sm:$0xff] }
 0x48d   : > { %v3467_v21 = vadd.f32 %v3466_v38, %v3378_v40  ;;  %v3865_v28 = vmul.f32 %v3737_v24, %v3737_v24  ;;  %v3835_v30 = vsub.f32 %v3771_v53, %v3803_v18  ;;  %v4112_v38 = vand.u32 2147483648, %v9142_v58 }
 0x48e   : > { %v4086_v46 = vsel %vm4085_vm2, %v9097_v35, %v4084_v31  ;;  %v4093_v41 = vmul.f32 0.5, %v4092_v32  ;;  %v3898_v48 = vmul.f32 %v3834_v11, %v3834_v11 }
 0x48f   : > { %v3556_v3 = vadd.f32 %v9073_v61, %v3467_v21  ;;  %v4089_v37 = vsel %vm4087_vm3, %v4088_v0, %v4086_v46  ;;  %v3929_v23 = vadd.f32 %v3897_v19, %v3865_v28  ;;  %v3381_v61 = vadd.f32 %v8879_v5, %v9078_v6 }
 0x490   : > { %4374 = vxpose.xlu2.b32.cont [9/16] (narrow) %v4089_v37, 32  ;;  %v4094_v29 = vsub.f32 1.5, %v4093_v41  ;;  %v3899_v21 = vmul.f32 %v3835_v30, %v3835_v30 }
 0x491   : > { %v5858_v45 = vpop.eup %5857  ;;  %v3613_v42 = vmax.f32 %v3556_v3, 0.0  ;;  %v9164_v22 = vadd.f32 1e-06, %v3929_v23  ;;  %v9201_v23 = vpop.f32.mrf.mxu3 }
 0x492   : > { %v4103_v39 = vmul.f32 %v5858_v45, %v9142_v58  ;;  %v9166_v35 = vld [vmem:[#allocation2 + $0xc1] sm:$0xff]  ;;  %v4095_v52 = vmul.f32 %v5856_v50, %v4094_v29 }
 0x493   : > { %3645 = vst.msk [vmem:[#allocation2 + $0xc9] sm:$0xff] %vm1757_vm13, %v3613_v42  ;;  %v3738_v17 = vsub.f32 %v9166_v35, %v9083_v9  ;;  %5859 = vrsqrt.f32 %v9164_v22  ;;  %v9184_v4 = vpop.f32.mrf.mxu1  ;;  %v3804_v34 = vld [vmem:[#allocation2 + $0xc0] sm:$0xff]  ;;  %vm4121_vm8 = vcmp.eq.f32.partialorder %v9164_v22, inf  ;;  %vm4123_vm9 = vcmp.eq.f32.partialorder %v9164_v22, 0.0 }
 0x494   : > { %v3469_v57 = vpop.f32.mrf.mxu2  ;;  %v4104_v62 = vmul.f32 %v5858_v45, %v4103_v39  ;;  %v4096_v10 = vmul.f32 %v4095_v52, %v9122_v25 }
 0x495   : > { %v3470_v1 = vadd.f32 %v3469_v57, %v3381_v61  ;;  %v3866_v51 = vmul.f32 %v3738_v17, %v3738_v17 }
 0x496   : > { %v4105_v6 = vmul.f32 0.5, %v4104_v62  ;;  %v4098_v2 = vsel %vm4097_vm4, %v9122_v25, %v4096_v10  ;;  %v3383_v25 = vadd.f32 %v8879_v5, %v9108_v20 }
 0x497   : > { %v3559_v12 = vadd.f32 %v9099_v33, %v3470_v1  ;;  %v3930_v9 = vadd.f32 %v3898_v48, %v3866_v51  ;;  %v4101_v56 = vsel %vm4099_vm5, %v4100_v43, %v4098_v2 }
 0x498   : > { %v4106_v14 = vsub.f32 1.5, %v4105_v6  ;;  %4375 = vxpose.xlu2.b32.cont [10/16] (narrow) %v4101_v56, 32 }
 0x499   : > { %v3614_v44 = vmax.f32 %v3559_v12, 0.0  ;;  %v9182_v16 = vadd.f32 1e-06, %v3930_v9  ;;  %v5860_v26 = vpop.eup %5859 }
 0x49a   : > { %v4107_v59 = vmul.f32 %v5858_v45, %v4106_v14  ;;  %v9186_v33 = vld [vmem:[#allocation2 + $0xc9] sm:$0xff]  ;;  %v4115_v50 = vmul.f32 %v5860_v26, %v9164_v22 }
 0x49b   : > { %3646 = vst.msk [vmem:[#allocation2 + $0xd9] sm:$0xff] %vm1757_vm13, %v3614_v44  ;;  %5861 = vrsqrt.f32 %v9182_v16  ;;  %v3739_v40 = vsub.f32 %v9186_v33, %v9101_v8  ;;  %v3772_v0 = vld [vmem:[#allocation2 + $0xc2] sm:$0xff]  ;;  %v9213_v11 = vpop.f32.mrf.mxu1  ;;  %v3773_v48 = vld [vmem:[#allocation2 + $0xca] sm:$0xff]  ;;  %v9231_v44 = vpop.f32.mrf.mxu3  ;;  %vm4133_vm10 = vcmp.eq.f32.partialorder %v9182_v16, inf  ;;  %vm4135_vm11 = vcmp.eq.f32.partialorder %v9182_v16, 0.0 }
 0x49c   : > { %v3471_v27 = vpop.f32.mrf.mxu2  ;;  %v4108_v47 = vmul.f32 %v4107_v59, %v9142_v58  ;;  %v4116_v31 = vmul.f32 %v5860_v26, %v4115_v50  ;;  %v3836_v41 = vsub.f32 %v3772_v0, %v3804_v34  ;;  %v3805_v43 = vld [vmem:[#allocation2 + $0xc8] sm:$0xff]  ;;  %v4136_v50 = vand.u32 2147483648, %v9182_v16 }
 0x49d   : > { %v3472_v13 = vadd.f32 %v3471_v27, %v3383_v25  ;;  %v3867_v24 = vmul.f32 %v3739_v40, %v3739_v40  ;;  %v3837_v14 = vsub.f32 %v3773_v48, %v3805_v43 }
 0x49e   : > { %v4110_v20 = vsel %vm4109_vm6, %v9142_v58, %v4108_v47  ;;  %v4117_v28 = vmul.f32 0.5, %v4116_v31  ;;  %v3900_v62 = vmul.f32 %v3836_v41, %v3836_v41 }
 0x49f   : > { %v3561_v32 = vadd.f32 %v9131_v15, %v3472_v13  ;;  %v4113_v46 = vsel %vm4111_vm7, %v4112_v38, %v4110_v20  ;;  %v3931_v19 = vadd.f32 %v3899_v21, %v3867_v24  ;;  %v3386_v15 = vadd.f32 %v8879_v5, %v9135_v36 }
 0x4a0   : > { %4376 = vxpose.xlu2.b32.cont [11/16] (narrow) %v4113_v46, 32  ;;  %v4118_v37 = vsub.f32 1.5, %v4117_v28  ;;  %v4124_v36 = vand.u32 2147483648, %v9164_v22  ;;  %v3901_v40 = vmul.f32 %v3837_v14, %v3837_v14 }
 0x4a1   : > { %v5862_v8 = vpop.eup %5861  ;;  %v3615_v3 = vmax.f32 %v3561_v32, 0.0  ;;  %v9204_v45 = vadd.f32 1e-06, %v3931_v19 }
 0x4a2   : > { %v4127_v54 = vmul.f32 %v5862_v8, %v9182_v16  ;;  %v9206_v58 = vld [vmem:[#allocation2 + $0xd9] sm:$0xff]  ;;  %v4119_v42 = vmul.f32 %v5860_v26, %v4118_v37 }
 0x4a3   : > { %3647 = vst.msk [vmem:[#allocation2 + $0xe1] sm:$0xff] %vm1757_vm13, %v3615_v3  ;;  %v3740_v29 = vsub.f32 %v9206_v58, %v9124_v60  ;;  %5863 = vrsqrt.f32 %v9204_v45  ;;  %v3806_v24 = vld [vmem:[#allocation2 + $0xd8] sm:$0xff]  ;;  %vm4145_vm12 = vcmp.eq.f32.partialorder %v9204_v45, inf  ;;  %vm4147_vm14 = vcmp.eq.f32.partialorder %v9204_v45, 0.0 }
 0x4a4   : > { %v3474_v39 = vpop.f32.mrf.mxu2  ;;  %v4128_v61 = vmul.f32 %v5862_v8, %v4127_v54  ;;  %v4120_v17 = vmul.f32 %v4119_v42, %v9164_v22 }
 0x4a5   : > { %v3475_v52 = vadd.f32 %v3474_v39, %v3386_v15  ;;  %v3868_v57 = vmul.f32 %v3740_v29, %v3740_v29  ;;  %v9260_v39 = vpop.f32.mrf.mxu3 }
 0x4a6   : > { %v4129_v1 = vmul.f32 0.5, %v4128_v61  ;;  %v4122_v60 = vsel %vm4121_vm8, %v9164_v22, %v4120_v17 }
 0x4a7   : > { %v3564_v10 = vadd.f32 %v9156_v63, %v3475_v52  ;;  %v3932_v51 = vadd.f32 %v3900_v62, %v3868_v57  ;;  %v4125_v6 = vsel %vm4123_vm9, %v4124_v36, %v4122_v60  ;;  %v3388_v63 = vadd.f32 %v8879_v5, %v9161_v55  ;;  %v9238_v55 = vpop.f32.mrf.mxu1 }
 0x4a8   : > { %v4130_v12 = vsub.f32 1.5, %v4129_v1  ;;  %4377 = vxpose.xlu2.b32.cont [12/16] (narrow) %v4125_v6, 32 }
 0x4a9   : > { %v3616_v2 = vmax.f32 %v3564_v10, 0.0  ;;  %v9222_v9 = vadd.f32 1e-06, %v3932_v51  ;;  %v5864_v53 = vpop.eup %5863 }
 0x4aa   : > { %v4131_v18 = vmul.f32 %v5862_v8, %v4130_v12  ;;  %v9224_v56 = vld [vmem:[#allocation2 + $0xe1] sm:$0xff]  ;;  %v4139_v22 = vmul.f32 %v5864_v53, %v9204_v45 }
 0x4ab   : > { %3648 = vst.msk [vmem:[#allocation2 + $0xf1] sm:$0xff] %vm1757_vm13, %v3616_v2  ;;  %5865 = vrsqrt.f32 %v9222_v9  ;;  %v3741_v30 = vsub.f32 %v9224_v56, %v9144_v7  ;;  %v3774_v13 = vld [vmem:[#allocation2 + $0xda] sm:$0xff]  ;;  %v3775_v57 = vld [vmem:[#allocation2 + $0xe2] sm:$0xff]  ;;  %vm4157_vm15 = vcmp.eq.f32.partialorder %v9222_v9, inf  ;;  %vm4159_vm0 = vcmp.eq.f32.partialorder %v9222_v9, 0.0 }
 0x4ac   : > { %v3476_v26 = vpop.f32.mrf.mxu2  ;;  %v4132_v59 = vmul.f32 %v4131_v18, %v9182_v16  ;;  %v4140_v5 = vmul.f32 %v5864_v53, %v4139_v22  ;;  %v3838_v46 = vsub.f32 %v3774_v13, %v3806_v24  ;;  %v3807_v62 = vld [vmem:[#allocation2 + $0xe0] sm:$0xff] }
 0x4ad   : > { %v3477_v25 = vadd.f32 %v3476_v26, %v3388_v63  ;;  %v3869_v47 = vmul.f32 %v3741_v30, %v3741_v30  ;;  %v4160_v63 = vand.u32 2147483648, %v9222_v9 }
 0x4ae   : > { %v4134_v27 = vsel %vm4133_vm10, %v9182_v16, %v4132_v59  ;;  %v4141_v20 = vmul.f32 0.5, %v4140_v5  ;;  %v9251_v16 = vld [vmem:[%s9512_s4] ss:$0 sm:$0xff]  ;;  %v3902_v29 = vmul.f32 %v3838_v46, %v3838_v46 }
 0x4af   : > { %v3566_v38 = vadd.f32 %v9180_v49, %v3477_v25  ;;  %v4137_v31 = vsel %vm4135_vm11, %v4136_v50, %v4134_v27  ;;  %v3933_v7 = vadd.f32 %v3901_v40, %v3869_v47  ;;  %v3391_v49 = vadd.f32 %v9251_v16, %v9184_v4  ;;  %v9267_v36 = vpop.f32.mrf.mxu1  ;;  %v3575_v27 = vpop.f32.mrf.mxu3 }
 0x4b0   : > { %4378 = vxpose.xlu2.b32.cont [13/16] (narrow) %v4137_v31, 32  ;;  %v4142_v32 = vsub.f32 1.5, %v4141_v20  ;;  %v4148_v4 = vand.u32 2147483648, %v9204_v45  ;;  %v3393_v12 = vadd.f32 %v9251_v16, %v9213_v11 }
 0x4b1   : > { %v5866_v21 = vpop.eup %5865  ;;  %v3617_v0 = vmax.f32 %v3566_v38, 0.0  ;;  %v9244_v19 = vadd.f32 1e-06, %v3933_v7 }
 0x4b2   : > { %v4151_v28 = vmul.f32 %v5866_v21, %v9222_v9  ;;  %v9246_v34 = vld [vmem:[#allocation2 + $0xf1] sm:$0xff]  ;;  %v4143_v8 = vmul.f32 %v5864_v53, %v4142_v32 }
 0x4b3   : > { %3649 = vst.msk [vmem:[#allocation2 + $0xf9] sm:$0xff] %vm1757_vm13, %v3617_v0  ;;  %v3742_v3 = vsub.f32 %v9246_v34, %v9166_v35  ;;  %5867 = vrsqrt.f32 %v9244_v19  ;;  %vm4169_vm1 = vcmp.eq.f32.partialorder %v9244_v19, inf  ;;  %vm4171_vm2 = vcmp.eq.f32.partialorder %v9244_v19, 0.0 }
 0x4b4   : > { %v3479_v37 = vpop.f32.mrf.mxu2  ;;  %v4152_v41 = vmul.f32 %v5866_v21, %v4151_v28  ;;  %v4144_v15 = vmul.f32 %v4143_v8, %v9204_v45 }
 0x4b5   : > { %v3480_v54 = vadd.f32 %v3479_v37, %v3391_v49  ;;  %v3870_v42 = vmul.f32 %v3742_v3, %v3742_v3  ;;  %v4172_v37 = vand.u32 2147483648, %v9244_v19 }
 0x4b6   : > { %v4153_v61 = vmul.f32 0.5, %v4152_v41  ;;  %v4146_v35 = vsel %vm4145_vm12, %v9204_v45, %v4144_v15 }
 0x4b7   : > { %v3569_v52 = vadd.f32 %v9201_v23, %v3480_v54  ;;  %v3934_v17 = vadd.f32 %v3902_v29, %v3870_v42  ;;  %v4149_v1 = vsel %vm4147_vm14, %v4148_v4, %v4146_v35  ;;  %v3839_v23 = vsub.f32 %v3775_v57, %v3807_v62  ;;  %v9286_v20 = vpop.f32.mrf.mxu1 }
 0x4b8   : > { %v4154_v10 = vsub.f32 1.5, %v4153_v61  ;;  %4379 = vxpose.xlu2.b32.cont [14/16] (narrow) %v4149_v1, 32 }
 0x4b9   : > { %v3618_v60 = vmax.f32 %v3569_v52, 0.0  ;;  %v9269_v51 = vadd.f32 1e-06, %v3934_v17  ;;  %v5868_v48 = vpop.eup %5867  ;;  %v3903_v59 = vmul.f32 %v3839_v23, %v3839_v23  ;;  %v3578_v17 = vpop.f32.mrf.mxu3 }
 0x4ba   : > { %v4155_v43 = vmul.f32 %v5866_v21, %v4154_v10  ;;  %v9271_v6 = vld [vmem:[#allocation2 + $0xf9] sm:$0xff]  ;;  %v4163_v45 = vmul.f32 %v5868_v48, %v9244_v19 }
 0x4bb   : > { %3650 = vst.msk [vmem:[#allocation2 + $0x109] sm:$0xff] %vm1757_vm13, %v3618_v60  ;;  %5869 = vrsqrt.f32 %v9269_v51  ;;  %v3743_v18 = vsub.f32 %v9271_v6, %v9186_v33  ;;  %v3776_v30 = vld [vmem:[#allocation2 + $0xf2] sm:$0xff]  ;;  %v3777_v15 = vld [vmem:[#allocation2 + $0xfa] sm:$0xff]  ;;  %vm4181_vm3 = vcmp.eq.f32.partialorder %v9269_v51, inf  ;;  %vm4183_vm4 = vcmp.eq.f32.partialorder %v9269_v51, 0.0 }
 0x4bc   : > { %v3481_v2 = vpop.f32.mrf.mxu2  ;;  %v4156_v53 = vmul.f32 %v4155_v43, %v9222_v9  ;;  %v4164_v22 = vmul.f32 %v5868_v48, %v4163_v45  ;;  %v3808_v33 = vld [vmem:[#allocation2 + $0xf0] sm:$0xff]  ;;  %v3809_v42 = vld [vmem:[#allocation2 + $0xf8] sm:$0xff] }
 0x4bd   : > { %v3482_v14 = vadd.f32 %v3481_v2, %v3393_v12  ;;  %v3871_v26 = vmul.f32 %v3743_v18, %v3743_v18  ;;  %v3840_v31 = vsub.f32 %v3776_v30, %v3808_v33  ;;  %v3841_v1 = vsub.f32 %v3777_v15, %v3809_v42 }
 0x4be   : > { %v4158_v11 = vsel %vm4157_vm15, %v9222_v9, %v4156_v53  ;;  %v4165_v5 = vmul.f32 0.5, %v4164_v22  ;;  %v4184_v12 = vand.u32 2147483648, %v9269_v51 }
 0x4bf   : > { %v3571_v25 = vadd.f32 %v9231_v44, %v3482_v14  ;;  %v4161_v50 = vsel %vm4159_vm0, %v4160_v63, %v4158_v11  ;;  %v3935_v47 = vadd.f32 %v3903_v59, %v3871_v26  ;;  %v3396_v44 = vadd.f32 %v9251_v16, %v9238_v55  ;;  %v3402_v10 = vpop.f32.mrf.mxu1 }
 0x4c0   : > { %4380 = vxpose.xlu2.b32.cont [15/16] (narrow) %v4161_v50, 32  ;;  %v4166_v38 = vsub.f32 1.5, %v4165_v5  ;;  %v3904_v3 = vmul.f32 %v3840_v31, %v3840_v31  ;;  %v3905_v53 = vmul.f32 %v3841_v1, %v3841_v1 }
 0x4c1   : > { %v5870_v40 = vpop.eup %5869  ;;  %v3619_v13 = vmax.f32 %v3571_v25, 0.0  ;;  %v9289_v9 = vadd.f32 1e-06, %v3935_v47 }
 0x4c2   : > { %v4175_v7 = vmul.f32 %v5870_v40, %v9269_v51  ;;  %v9291_v24 = vld [vmem:[#allocation2 + $0x109] sm:$0xff]  ;;  %v4167_v21 = vmul.f32 %v5868_v48, %v4166_v38 }
 0x4c3   : > { %3651 = vst.msk [vmem:[#allocation2 + $0x111] sm:$0xff] %vm1757_vm13, %v3619_v13  ;;  %v3744_v0 = vsub.f32 %v9291_v24, %v9206_v58  ;;  %5871 = vrsqrt.f32 %v9289_v9  ;;  %v3810_v26 = vld [vmem:[#allocation2 + $0x108] sm:$0xff]  ;;  %vm4193_vm5 = vcmp.eq.f32.partialorder %v9289_v9, inf  ;;  %vm4195_vm6 = vcmp.eq.f32.partialorder %v9289_v9, 0.0 }
 0x4c4   : > { %v3484_v32 = vpop.f32.mrf.mxu2  ;;  %v4176_v46 = vmul.f32 %v5870_v40, %v4175_v7  ;;  %v4168_v49 = vmul.f32 %v4167_v21, %v9244_v19 }
 0x4c5   : > { %v3485_v28 = vadd.f32 %v3484_v32, %v3396_v44  ;;  %v3872_v8 = vmul.f32 %v3744_v0, %v3744_v0 }
 0x4c6   : > { %v4177_v55 = vmul.f32 0.5, %v4176_v46  ;;  %v4170_v54 = vsel %vm4169_vm1, %v9244_v19, %v4168_v49 }
 0x4c7   : > { %v3574_v41 = vadd.f32 %v9260_v39, %v3485_v28  ;;  %v3936_v58 = vadd.f32 %v3904_v3, %v3872_v8  ;;  %v4173_v29 = vsel %vm4171_vm2, %v4172_v37, %v4170_v54  ;;  %v3398_v39 = vadd.f32 %v9251_v16, %v9267_v36  ;;  %v3405_v0 = vpop.f32.mrf.mxu1 }
 0x4c8   : > { %v4178_v4 = vsub.f32 1.5, %v4177_v55  ;;  %4381 = vxpose.xlu2.b32.end [16/16] (narrow) %v4173_v29, 32  ;;  %v3403_v29 = vadd.f32 %v9251_v16, %v3402_v10 }
 0x4c9   : > { %v3620_v61 = vmax.f32 %v3574_v41, 0.0  ;;  %v9305_v52 = vadd.f32 1e-06, %v3936_v58  ;;  %v5872_v35 = vpop.eup %5871 }
 0x4ca   : > { %v4179_v57 = vmul.f32 %v5870_v40, %v4178_v4  ;;  %v9307_v62 = vld [vmem:[#allocation2 + $0x111] sm:$0xff]  ;;  %v4187_v19 = vmul.f32 %v5872_v35, %v9289_v9  ;;  %v3580_v40 = vpop.f32.mrf.mxu3 }
 0x4cb   : > { %3652 = vst.msk [vmem:[#allocation2 + $0x121] sm:$0xff] %vm1757_vm13, %v3620_v61  ;;  %5873 = vrsqrt.f32 %v9305_v52  ;;  %v3745_v43 = vsub.f32 %v9307_v62, %v9224_v56  ;;  %v3778_v18 = vld [vmem:[#allocation2 + $0x10a] sm:$0xff]  ;;  %v3779_v49 = vld [vmem:[#allocation2 + $0x112] sm:$0xff]  ;;  %vm4205_vm7 = vcmp.eq.f32.partialorder %v9305_v52, inf  ;;  %vm4207_vm8 = vcmp.eq.f32.partialorder %v9305_v52, 0.0 }
 0x4cc   : > { %v3486_v60 = vpop.f32.mrf.mxu2  ;;  %v4180_v48 = vmul.f32 %v4179_v57, %v9269_v51  ;;  %v4188_v45 = vmul.f32 %v5872_v35, %v4187_v19  ;;  %v3842_v25 = vsub.f32 %v3778_v18, %v3810_v26  ;;  %v3811_v8 = vld [vmem:[#allocation2 + $0x110] sm:$0xff]  ;;  %v4208_v57 = vand.u32 2147483648, %v9305_v52 }
 0x4cd   : > { %v3487_v23 = vadd.f32 %v3486_v60, %v3398_v39  ;;  %v3873_v2 = vmul.f32 %v3745_v43, %v3745_v43  ;;  %v3843_v42 = vsub.f32 %v3779_v49, %v3811_v8 }
 0x4ce   : > { %v4182_v36 = vsel %vm4181_vm3, %v9269_v51, %v4180_v48  ;;  %v4189_v22 = vmul.f32 0.5, %v4188_v45  ;;  %v3401_v51 = vadd.f32 %v9251_v16, %v9286_v20  ;;  %v3906_v21 = vmul.f32 %v3842_v25, %v3842_v25 }
 0x4cf   : > { %v3576_v14 = vadd.f32 %v3575_v27, %v3487_v23  ;;  %v4185_v63 = vsel %vm4183_vm4, %v4184_v12, %v4182_v36  ;;  %v3937_v11 = vadd.f32 %v3905_v53, %v3873_v2  ;;  %v4196_v20 = vand.u32 2147483648, %v9289_v9  ;;  %v3407_v45 = vpop.f32.mrf.mxu1 }
 0x4d0   : > { %4398 = vxpose.xlu0.b32.start [1/16] (narrow) %v4185_v63, 32  ;;  %v4190_v30 = vsub.f32 1.5, %v4189_v22  ;;  %v3907_v60 = vmul.f32 %v3843_v42, %v3843_v42 }
 0x4d1   : > { %v5874_v56 = vpop.eup %5873  ;;  %v3621_v59 = vmax.f32 %v3576_v14, 0.0  ;;  %v9322_v5 = vadd.f32 1e-06, %v3937_v11 }
 0x4d2   : > { %v4199_v50 = vmul.f32 %v5874_v56, %v9305_v52  ;;  %v9324_v47 = vld [vmem:[#allocation2 + $0x121] sm:$0xff]  ;;  %v4191_v27 = vmul.f32 %v5872_v35, %v4190_v30  ;;  %v3583_v39 = vpop.f32.mrf.mxu3 }
 0x4d3   : > { %3653 = vst.msk [vmem:[#allocation2 + $0x129] sm:$0xff] %vm1757_vm13, %v3621_v59  ;;  %v3746_v33 = vsub.f32 %v9324_v47, %v9246_v34  ;;  %5875 = vrsqrt.f32 %v9322_v5  ;;  %vm4217_vm9 = vcmp.eq.f32.partialorder %v9322_v5, inf  ;;  %vm4219_vm10 = vcmp.eq.f32.partialorder %v9322_v5, 0.0 }
 0x4d4   : > { %v3489_v13 = vpop.f32.mrf.mxu2  ;;  %v4200_v38 = vmul.f32 %v5874_v56, %v4199_v50  ;;  %v4192_v7 = vmul.f32 %v4191_v27, %v9289_v9 }
 0x4d5   : > { %v3490_v31 = vadd.f32 %v3489_v13, %v3401_v51  ;;  %v3874_v44 = vmul.f32 %v3746_v33, %v3746_v33  ;;  %v4220_v33 = vand.u32 2147483648, %v9322_v5 }
 0x4d6   : > { %v4201_v32 = vmul.f32 0.5, %v4200_v38  ;;  %v4194_v28 = vsel %vm4193_vm5, %v9289_v9, %v4192_v7 }
 0x4d7   : > { %v3579_v46 = vadd.f32 %v3578_v17, %v3490_v31  ;;  %v3938_v34 = vadd.f32 %v3906_v21, %v3874_v44  ;;  %v4197_v3 = vsel %vm4195_vm6, %v4196_v20, %v4194_v28  ;;  %v3410_v28 = vpop.f32.mrf.mxu1 }
 0x4d8   : > { %v4202_v37 = vsub.f32 1.5, %v4201_v32  ;;  %4399 = vxpose.xlu0.b32.cont [2/16] (narrow) %v4197_v3, 32  ;;  %v3408_v3 = vadd.f32 %v9251_v16, %v3407_v45 }
 0x4d9   : > { %v3622_v55 = vmax.f32 %v3579_v46, 0.0  ;;  %v9337_v41 = vadd.f32 1e-06, %v3938_v34  ;;  %v5876_v54 = vpop.eup %5875 }
 0x4da   : > { %v4203_v58 = vmul.f32 %v5874_v56, %v4202_v37  ;;  %v9339_v15 = vld [vmem:[#allocation2 + $0x129] sm:$0xff]  ;;  %v4211_v9 = vmul.f32 %v5876_v54, %v9322_v5  ;;  %v3585_v44 = vpop.f32.mrf.mxu3 }
 0x4db   : > { %3654 = vst.msk [vmem:[#allocation2 + $0x139] sm:$0xff] %vm1757_vm13, %v3622_v55  ;;  %5877 = vrsqrt.f32 %v9337_v41  ;;  %v3747_v35 = vsub.f32 %v9339_v15, %v9271_v6  ;;  %v3780_v48 = vld [vmem:[#allocation2 + $0x122] sm:$0xff]  ;;  %v3781_v31 = vld [vmem:[#allocation2 + $0x12a] sm:$0xff]  ;;  %vm4229_vm11 = vcmp.eq.f32.partialorder %v9337_v41, inf  ;;  %v4232_v42 = vand.u32 2147483648, %v9337_v41 }
 0x4dc   : > { %v3491_v4 = vpop.f32.mrf.mxu2  ;;  %v4204_v61 = vmul.f32 %v4203_v58, %v9305_v52  ;;  %v4212_v1 = vmul.f32 %v5876_v54, %v4211_v9  ;;  %v3812_v6 = vld [vmem:[#allocation2 + $0x120] sm:$0xff]  ;;  %v3813_v7 = vld [vmem:[#allocation2 + $0x128] sm:$0xff]  ;;  %vm4231_vm12 = vcmp.eq.f32.partialorder %v9337_v41, 0.0 }
 0x4dd   : > { %v3492_v17 = vadd.f32 %v3491_v4, %v3403_v29  ;;  %v3875_v10 = vmul.f32 %v3747_v35, %v3747_v35  ;;  %v3844_v14 = vsub.f32 %v3780_v48, %v3812_v6  ;;  %v3845_v8 = vsub.f32 %v3781_v31, %v3813_v7 }
 0x4de   : > { %v4206_v19 = vsel %vm4205_vm7, %v9305_v52, %v4204_v61  ;;  %v4213_v12 = vmul.f32 0.5, %v4212_v1  ;;  %v3406_v52 = vadd.f32 %v9251_v16, %v3405_v0 }
 0x4df   : > { %v3581_v43 = vadd.f32 %v3580_v40, %v3492_v17  ;;  %v4209_v23 = vsel %vm4207_vm8, %v4208_v57, %v4206_v19  ;;  %v3939_v36 = vadd.f32 %v3907_v60, %v3875_v10  ;;  %v3908_v27 = vmul.f32 %v3844_v14, %v3844_v14 }
 0x4e0   : > { %4400 = vxpose.xlu0.b32.cont [3/16] (narrow) %v4209_v23, 32  ;;  %v4214_v18 = vsub.f32 1.5, %v4213_v12  ;;  %v3909_v61 = vmul.f32 %v3845_v8, %v3845_v8 }
 0x4e1   : > { %v5878_v2 = vpop.eup %5877  ;;  %v3623_v53 = vmax.f32 %v3581_v43, 0.0  ;;  %v9353_v22 = vadd.f32 1e-06, %v3939_v36 }
 0x4e2   : > { %v4223_v63 = vmul.f32 %v5878_v2, %v9337_v41  ;;  %v9355_v11 = vld [vmem:[#allocation2 + $0x139] sm:$0xff]  ;;  %v4215_v26 = vmul.f32 %v5876_v54, %v4214_v18  ;;  %v3588_v43 = vpop.f32.mrf.mxu3 }
 0x4e3   : > { %3655 = vst.msk [vmem:[#allocation2 + $0x141] sm:$0xff] %vm1757_vm13, %v3623_v53  ;;  %v3748_v56 = vsub.f32 %v9355_v11, %v9291_v24  ;;  %5879 = vrsqrt.f32 %v9353_v22  ;;  %v3814_v19 = vld [vmem:[#allocation2 + $0x138] sm:$0xff]  ;;  %vm4241_vm14 = vcmp.eq.f32.partialorder %v9353_v22, inf  ;;  %vm4243_vm15 = vcmp.eq.f32.partialorder %v9353_v22, 0.0 }
 0x4e4   : > { %v3494_v59 = vpop.f32.mrf.mxu2  ;;  %v4224_v30 = vmul.f32 %v5878_v2, %v4223_v63  ;;  %v4216_v50 = vmul.f32 %v4215_v26, %v9322_v5 }
 0x4e5   : > { %v3495_v25 = vadd.f32 %v3494_v59, %v3406_v52  ;;  %v3876_v51 = vmul.f32 %v3748_v56, %v3748_v56  ;;  %v4244_v56 = vand.u32 2147483648, %v9353_v22 }
 0x4e6   : > { %v4225_v40 = vmul.f32 0.5, %v4224_v30  ;;  %v4218_v38 = vsel %vm4217_vm9, %v9322_v5, %v4216_v50 }
 0x4e7   : > { %v3584_v13 = vadd.f32 %v3583_v39, %v3495_v25  ;;  %v3940_v24 = vadd.f32 %v3908_v27, %v3876_v51  ;;  %v4221_v21 = vsel %vm4219_vm10, %v4220_v33, %v4218_v38 }
 0x4e8   : > { %v4226_v0 = vsub.f32 1.5, %v4225_v40  ;;  %4401 = vxpose.xlu0.b32.cont [4/16] (narrow) %v4221_v21, 32 }
 0x4e9   : > { %v3624_v20 = vmax.f32 %v3584_v13, 0.0  ;;  %v9367_v32 = vadd.f32 1e-06, %v3940_v24  ;;  %v5880_v46 = vpop.eup %5879 }
 0x4ea   : > { %v4227_v34 = vmul.f32 %v5878_v2, %v4226_v0  ;;  %v9369_v49 = vld [vmem:[#allocation2 + $0x141] sm:$0xff]  ;;  %v4235_v5 = vmul.f32 %v5880_v46, %v9353_v22  ;;  %v3412_v2 = vpop.f32.mrf.mxu1  ;;  %v3590_v21 = vpop.f32.mrf.mxu3 }
 0x4eb   : > { %3656 = vst.msk [vmem:[#allocation2 + $0x151] sm:$0xff] %vm1757_vm13, %v3624_v20  ;;  %5881 = vrsqrt.f32 %v9367_v32  ;;  %v3749_v54 = vsub.f32 %v9369_v49, %v9307_v62  ;;  %v3782_v35 = vld [vmem:[#allocation2 + $0x13a] sm:$0xff]  ;;  %v3783_v50 = vld [vmem:[#allocation2 + $0x142] sm:$0xff]  ;;  %vm4253_vm0 = vcmp.eq.f32.partialorder %v9367_v32, inf  ;;  %vm4255_vm1 = vcmp.eq.f32.partialorder %v9367_v32, 0.0 }
 0x4ec   : > { %v3496_v37 = vpop.f32.mrf.mxu2  ;;  %v4228_v55 = vmul.f32 %v4227_v34, %v9337_v41  ;;  %v4236_v29 = vmul.f32 %v5880_v46, %v4235_v5  ;;  %v3846_v48 = vsub.f32 %v3782_v35, %v3814_v19  ;;  %v3815_v51 = vld [vmem:[#allocation2 + $0x140] sm:$0xff]  ;;  %v4256_v34 = vand.u32 2147483648, %v9367_v32 }
 0x4ed   : > { %v3497_v58 = vadd.f32 %v3496_v37, %v3408_v3  ;;  %v3877_v4 = vmul.f32 %v3749_v54, %v3749_v54  ;;  %v3847_v7 = vsub.f32 %v3783_v50, %v3815_v51 }
 0x4ee   : > { %v4230_v9 = vsel %vm4229_vm11, %v9337_v41, %v4228_v55  ;;  %v4237_v1 = vmul.f32 0.5, %v4236_v29  ;;  %v3411_v41 = vadd.f32 %v9251_v16, %v3410_v28  ;;  %v3910_v26 = vmul.f32 %v3846_v48, %v3846_v48 }
 0x4ef   : > { %v3586_v17 = vadd.f32 %v3585_v44, %v3497_v58  ;;  %v4233_v57 = vsel %vm4231_vm12, %v4232_v42, %v4230_v9  ;;  %v3941_v39 = vadd.f32 %v3909_v61, %v3877_v4  ;;  %v3413_v44 = vadd.f32 %v9251_v16, %v3412_v2 }
 0x4f0   : > { %4402 = vxpose.xlu0.b32.cont [5/16] (narrow) %v4233_v57, 32  ;;  %v4238_v60 = vsub.f32 1.5, %v4237_v1  ;;  %v3911_v55 = vmul.f32 %v3847_v7, %v3847_v7 }
 0x4f1   : > { %v5882_v10 = vpop.eup %5881  ;;  %v3625_v62 = vmax.f32 %v3586_v17, 0.0  ;;  %v9383_v12 = vadd.f32 1e-06, %v3941_v39 }
 0x4f2   : > { %v4247_v23 = vmul.f32 %v5882_v10, %v9367_v32  ;;  %v9385_v45 = vld [vmem:[#allocation2 + $0x151] sm:$0xff]  ;;  %v4239_v36 = vmul.f32 %v5880_v46, %v4238_v60  ;;  %v3415_v3 = vpop.f32.mrf.mxu1 }
 0x4f3   : > { %3657 = vst.msk [vmem:[#allocation2 + $0x159] sm:$0xff] %vm1757_vm13, %v3625_v62  ;;  %v3750_v6 = vsub.f32 %v9385_v45, %v9324_v47  ;;  %5883 = vrsqrt.f32 %v9383_v12  ;;  %v3816_v4 = vld [vmem:[#allocation2 + $0x150] sm:$0xff]  ;;  %v3593_v62 = vpop.f32.mrf.mxu3  ;;  %vm4265_vm2 = vcmp.eq.f32.partialorder %v9383_v12, inf  ;;  %vm4267_vm3 = vcmp.eq.f32.partialorder %v9383_v12, 0.0 }
 0x4f4   : > { %v3499_v53 = vpop.f32.mrf.mxu2  ;;  %v4248_v18 = vmul.f32 %v5882_v10, %v4247_v23  ;;  %v4240_v63 = vmul.f32 %v4239_v36, %v9353_v22 }
 0x4f5   : > { %v3500_v14 = vadd.f32 %v3499_v53, %v3411_v41  ;;  %v3878_v52 = vmul.f32 %v3750_v6, %v3750_v6  ;;  %v4268_v6 = vand.u32 2147483648, %v9383_v12 }
 0x4f6   : > { %v4249_v59 = vmul.f32 0.5, %v4248_v18  ;;  %v4242_v25 = vsel %vm4241_vm14, %v9353_v22, %v4240_v63 }
 0x4f7   : > { %v3589_v30 = vadd.f32 %v3588_v43, %v3500_v14  ;;  %v3942_v47 = vadd.f32 %v3910_v26, %v3878_v52  ;;  %v4245_v27 = vsel %vm4243_vm15, %v4244_v56, %v4242_v25 }
 0x4f8   : > { %v4250_v33 = vsub.f32 1.5, %v4249_v59  ;;  %4403 = vxpose.xlu0.b32.cont [6/16] (narrow) %v4245_v27, 32 }
 0x4f9   : > { %v3626_v40 = vmax.f32 %v3589_v30, 0.0  ;;  %v9397_v13 = vadd.f32 1e-06, %v3942_v47  ;;  %v5884_v38 = vpop.eup %5883 }
 0x4fa   : > { %v4251_v24 = vmul.f32 %v5882_v10, %v4250_v33  ;;  %v9399_v31 = vld [vmem:[#allocation2 + $0x159] sm:$0xff]  ;;  %v4259_v22 = vmul.f32 %v5884_v38, %v9383_v12  ;;  %v3417_v52 = vpop.f32.mrf.mxu1 }
 0x4fb   : > { %3658 = vst.msk [vmem:[#allocation2 + $0x169] sm:$0xff] %vm1757_vm13, %v3626_v40  ;;  %5885 = vrsqrt.f32 %v9397_v13  ;;  %v3751_v46 = vsub.f32 %v9399_v31, %v9339_v15  ;;  %v3784_v54 = vld [vmem:[#allocation2 + $0x152] sm:$0xff]  ;;  %v3785_v14 = vld [vmem:[#allocation2 + $0x15a] sm:$0xff]  ;;  %v3418_v27 = vadd.f32 %v9251_v16, %v3417_v52  ;;  %vm4277_vm4 = vcmp.eq.f32.partialorder %v9397_v13, inf }
 0x4fc   : > { %v3501_v0 = vpop.f32.mrf.mxu2  ;;  %v4252_v20 = vmul.f32 %v4251_v24, %v9367_v32  ;;  %v4260_v8 = vmul.f32 %v5884_v38, %v4259_v22  ;;  %v3848_v17 = vsub.f32 %v3784_v54, %v3816_v4  ;;  %v3817_v63 = vld [vmem:[#allocation2 + $0x158] sm:$0xff]  ;;  %v4280_v7 = vand.u32 2147483648, %v9397_v13  ;;  %v3595_v22 = vpop.f32.mrf.mxu3 }
 0x4fd   : > { %v3502_v28 = vadd.f32 %v3501_v0, %v3413_v44  ;;  %v3879_v37 = vmul.f32 %v3751_v46, %v3751_v46  ;;  %v3849_v51 = vsub.f32 %v3785_v14, %v3817_v63  ;;  %vm4279_vm5 = vcmp.eq.f32.partialorder %v9397_v13, 0.0  ;;  %v3692_v4 = vld [vmem:[#allocation2 + $0x199] sm:$0xff] }
 0x4fe   : > { %v4254_v5 = vsel %vm4253_vm0, %v9367_v32, %v4252_v20  ;;  %v4261_v29 = vmul.f32 0.5, %v4260_v8  ;;  %v3416_v32 = vadd.f32 %v9251_v16, %v3415_v3  ;;  %v3912_v36 = vmul.f32 %v3848_v17, %v3848_v17 }
 0x4ff   : > { %v3591_v58 = vadd.f32 %v3590_v21, %v3502_v28  ;;  %v4257_v42 = vsel %vm4255_vm1, %v4256_v34, %v4254_v5  ;;  %v3943_v9 = vadd.f32 %v3911_v55, %v3879_v37  ;;  %v3913_v0 = vmul.f32 %v3849_v51, %v3849_v51 }
 0x500   : > { %4404 = vxpose.xlu0.b32.cont [7/16] (narrow) %v4257_v42, 32  ;;  %v4262_v35 = vsub.f32 1.5, %v4261_v29 }
 0x501   : > { %v5886_v15 = vpop.eup %5885  ;;  %v3627_v61 = vmax.f32 %v3591_v58, 0.0  ;;  %v9413_v1 = vadd.f32 1e-06, %v3943_v9 }
 0x502   : > { %v4271_v57 = vmul.f32 %v5886_v15, %v9397_v13  ;;  %v9415_v39 = vld [vmem:[#allocation2 + $0x169] sm:$0xff]  ;;  %v4263_v19 = vmul.f32 %v5884_v38, %v4262_v35 }
 0x503   : > { %3659 = vst.msk [vmem:[#allocation2 + $0x171] sm:$0xff] %vm1757_vm13, %v3627_v61  ;;  %v3752_v10 = vsub.f32 %v9415_v39, %v9355_v11  ;;  %5887 = vrsqrt.f32 %v9413_v1  ;;  %v3818_v3 = vld [vmem:[#allocation2 + $0x168] sm:$0xff]  ;;  %vm4289_vm6 = vcmp.eq.f32.partialorder %v9413_v1, inf  ;;  %v4292_v17 = vand.u32 2147483648, %v9413_v1 }
 0x504   : > { %v3504_v60 = vpop.f32.mrf.mxu2  ;;  %v4272_v48 = vmul.f32 %v5886_v15, %v4271_v57  ;;  %v4264_v23 = vmul.f32 %v4263_v19, %v9383_v12 }
 0x505   : > { %v3505_v43 = vadd.f32 %v3504_v60, %v3416_v32  ;;  %v3880_v41 = vmul.f32 %v3752_v10, %v3752_v10 }
 0x506   : > { %v4273_v2 = vmul.f32 0.5, %v4272_v48  ;;  %v4266_v18 = vsel %vm4265_vm2, %v9383_v12, %v4264_v23 }
 0x507   : > { %v3594_v53 = vadd.f32 %v3593_v62, %v3505_v43  ;;  %v3944_v11 = vadd.f32 %v3912_v36, %v3880_v41  ;;  %v4269_v26 = vsel %vm4267_vm3, %v4268_v6, %v4266_v18  ;;  %v3756_v62 = vsub.f32 %v3692_v4, %v9415_v39  ;;  %v3693_v43 = vld [vmem:[#allocation2 + $0x1a1] sm:$0xff] }
 0x508   : > { %v4274_v56 = vsub.f32 1.5, %v4273_v2  ;;  %4405 = vxpose.xlu0.b32.cont [8/16] (narrow) %v4269_v26, 32 }
 0x509   : > { %v3628_v59 = vmax.f32 %v3594_v53, 0.0  ;;  %v9427_v30 = vadd.f32 1e-06, %v3944_v11  ;;  %v5888_v25 = vpop.eup %5887  ;;  %v3884_v14 = vmul.f32 %v3756_v62, %v3756_v62 }
 0x50a   : > { %v4275_v47 = vmul.f32 %v5886_v15, %v4274_v56  ;;  %v9429_v50 = vld [vmem:[#allocation2 + $0x171] sm:$0xff]  ;;  %v4283_v12 = vmul.f32 %v5888_v25, %v9413_v1 }
 0x50b   : > { %3660 = vst.msk [vmem:[#allocation2 + $0x181] sm:$0xff] %vm1757_vm13, %v3628_v59  ;;  %5889 = vrsqrt.f32 %v9427_v30  ;;  %v3753_v38 = vsub.f32 %v9429_v50, %v9369_v49  ;;  %v3786_v20 = vld [vmem:[#allocation2 + $0x16a] sm:$0xff]  ;;  %v3787_v10 = vld [vmem:[#allocation2 + $0x172] sm:$0xff]  ;;  %v3757_v39 = vsub.f32 %v3693_v43, %v9429_v50  ;;  %vm4301_vm7 = vcmp.eq.f32.partialorder %v9427_v30, inf }
 0x50c   : > { %v3506_v33 = vpop.f32.mrf.mxu2  ;;  %v4276_v40 = vmul.f32 %v4275_v47, %v9397_v13  ;;  %v4284_v44 = vmul.f32 %v5888_v25, %v4283_v12  ;;  %v3850_v55 = vsub.f32 %v3786_v20, %v3818_v3  ;;  %vm4303_vm8 = vcmp.eq.f32.partialorder %v9427_v30, 0.0 }
 0x50d   : > { %v3507_v24 = vadd.f32 %v3506_v33, %v3418_v27  ;;  %v3881_v21 = vmul.f32 %v3753_v38, %v3753_v38  ;;  %v4304_v59 = vand.u32 2147483648, %v9427_v30  ;;  %v3885_v38 = vmul.f32 %v3757_v39, %v3757_v39 }
 0x50e   : > { %v4278_v16 = vsel %vm4277_vm4, %v9397_v13, %v4276_v40  ;;  %v4285_v34 = vmul.f32 0.5, %v4284_v44  ;;  %v3914_v35 = vmul.f32 %v3850_v55, %v3850_v55 }
 0x50f   : > { %v3596_v46 = vadd.f32 %v3595_v22, %v3507_v24  ;;  %v4281_v28 = vsel %vm4279_vm5, %v4280_v7, %v4278_v16  ;;  %v3945_v8 = vadd.f32 %v3913_v0, %v3881_v21 }
 0x510   : > { %4406 = vxpose.xlu0.b32.cont [9/16] (narrow) %v4281_v28, 32  ;;  %v4286_v37 = vsub.f32 1.5, %v4285_v34 }
 0x511   : > { %v5890_v49 = vpop.eup %5889  ;;  %v3629_v5 = vmax.f32 %v3596_v46, 0.0  ;;  %v9443_v58 = vadd.f32 1e-06, %v3945_v8 }
 0x512   : > { %v4295_v54 = vmul.f32 %v5890_v49, %v9427_v30  ;;  %v3690_v42 = vld [vmem:[#allocation2 + $0x181] sm:$0xff]  ;;  %v4287_v13 = vmul.f32 %v5888_v25, %v4286_v37 }
 0x513   : > { %3661 = vst.msk [vmem:[#allocation2 + $0x189] sm:$0xff] %vm1757_vm13, %v3629_v5  ;;  %v3754_v29 = vsub.f32 %v3690_v42, %v9385_v45  ;;  %5891 = vrsqrt.f32 %v9443_v58  ;;  %vm4291_vm13 = vcmp.eq.f32.partialorder %v9413_v1, 0.0  ;;  %v3819_v45 = vld [vmem:[#allocation2 + $0x170] sm:$0xff]  ;;  %vm4313_vm9 = vcmp.eq.f32.partialorder %v9443_v58, inf }
 0x514   : > { %v4296_v9 = vmul.f32 %v5890_v49, %v4295_v54  ;;  %v4288_v15 = vmul.f32 %v4287_v13, %v9413_v1  ;;  %v3851_v2 = vsub.f32 %v3787_v10, %v3819_v45  ;;  %v4316_v8 = vand.u32 2147483648, %v9443_v58 }
 0x515   : > { %v3882_v61 = vmul.f32 %v3754_v29, %v3754_v29  ;;  %vm4315_vm10 = vcmp.eq.f32.partialorder %v9443_v58, 0.0 }
 0x516   : > { %v4297_v57 = vmul.f32 0.5, %v4296_v9  ;;  %v4290_v32 = vsel %vm4289_vm6, %v9413_v1, %v4288_v15  ;;  %v3820_v1 = vld [vmem:[#allocation2 + $0x180] sm:$0xff]  ;;  %v3915_v12 = vmul.f32 %v3851_v2, %v3851_v2 }
 0x517   : > { %v3946_v19 = vadd.f32 %v3914_v35, %v3882_v61  ;;  %v4293_v60 = vsel %vm4291_vm13, %v4292_v17, %v4290_v32 }
 0x518   : > { %v4298_v48 = vsub.f32 1.5, %v4297_v57  ;;  %4407 = vxpose.xlu0.b32.cont [10/16] (narrow) %v4293_v60, 32 }
 0x519   : > { %v9454_v23 = vadd.f32 1e-06, %v3946_v19  ;;  %v5892_v41 = vpop.eup %5891 }
 0x51a   : > { %v4299_v36 = vmul.f32 %v5890_v49, %v4298_v48  ;;  %v3691_v6 = vld [vmem:[#allocation2 + $0x189] sm:$0xff]  ;;  %v4307_v11 = vmul.f32 %v5892_v41, %v9443_v58 }
 0x51b   : > { %v3788_v53 = vld [vmem:[#allocation2 + $0x182] sm:$0xff]  ;;  %v3789_v18 = vld [vmem:[#allocation2 + $0x18a] sm:$0xff]  ;;  %5893 = vrsqrt.f32 %v9454_v23  ;;  %v3755_v26 = vsub.f32 %v3691_v6, %v9399_v31  ;;  %vm4325_vm11 = vcmp.eq.f32.partialorder %v9454_v23, inf  ;;  %v4328_v15 = vand.u32 2147483648, %v9454_v23 }
 0x51c   : > { %v3821_v63 = vld [vmem:[#allocation2 + $0x188] sm:$0xff]  ;;  %v4300_v52 = vmul.f32 %v4299_v36, %v9427_v30  ;;  %v3852_v56 = vsub.f32 %v3788_v53, %v3820_v1  ;;  %v4308_v25 = vmul.f32 %v5892_v41, %v4307_v11  ;;  %vm4327_vm12 = vcmp.eq.f32.partialorder %v9454_v23, 0.0 }
 0x51d   : > { %v3853_v47 = vsub.f32 %v3789_v18, %v3821_v63  ;;  %v3883_v27 = vmul.f32 %v3755_v26, %v3755_v26 }
 0x51e   : > { %v4302_v51 = vsel %vm4301_vm7, %v9427_v30, %v4300_v52  ;;  %v3916_v33 = vmul.f32 %v3852_v56, %v3852_v56  ;;  %v4309_v40 = vmul.f32 0.5, %v4308_v25  ;;  %v4382_v56 = vpop.trf.xlu2 }
 0x51f   : > { %v4305_v50 = vsel %vm4303_vm8, %v4304_v59, %v4302_v51  ;;  %v3917_v24 = vmul.f32 %v3853_v47, %v3853_v47  ;;  %v3947_v7 = vadd.f32 %v3915_v12, %v3883_v27  ;;  %4430 = vst [vmem:[%s217_s10] sm:$0xff] %v4382_v56 }
 0x520   : > { %v3948_v44 = vadd.f32 %v3916_v33, %v3884_v14  ;;  %4408 = vxpose.xlu0.b32.cont [11/16] (narrow) %v4305_v50, 32  ;;  %v4310_v31 = vsub.f32 1.5, %v4309_v40 }
 0x521   : > { %v5894_v22 = vpop.eup %5893  ;;  %v3949_v16 = vadd.f32 %v3917_v24, %v3885_v38  ;;  %v3979_v0 = vadd.f32 1e-06, %v3947_v7 }
 0x522   : > { %v4319_v21 = vmul.f32 %v5894_v22, %v9454_v23  ;;  %v3980_v20 = vadd.f32 1e-06, %v3948_v44  ;;  %v4311_v46 = vmul.f32 %v5892_v41, %v4310_v31 }
 0x523   : > { %v3981_v28 = vadd.f32 1e-06, %v3949_v16  ;;  %5895 = vrsqrt.f32 %v3979_v0  ;;  %vm4337_vm14 = vcmp.eq.f32.partialorder %v3979_v0, inf  ;;  %v4340_v36 = vand.u32 2147483648, %v3979_v0 }
 0x524   : > { %v4320_v30 = vmul.f32 %v5894_v22, %v4319_v21  ;;  %v4312_v34 = vmul.f32 %v4311_v46, %v9443_v58  ;;  %5897 = vrsqrt.f32 %v3980_v20  ;;  %vm4339_vm15 = vcmp.eq.f32.partialorder %v3979_v0, 0.0 }
 0x525   : > { %5899 = vrsqrt.f32 %v3981_v28  ;;  %vm4349_vm0 = vcmp.eq.f32.partialorder %v3980_v20, inf  ;;  %v4352_v1 = vand.u32 2147483648, %v3980_v20  ;;  %vm4351_vm1 = vcmp.eq.f32.partialorder %v3980_v20, 0.0 }
 0x526   : > { %v4321_v3 = vmul.f32 0.5, %v4320_v30  ;;  %v4314_v49 = vsel %vm4313_vm9, %v9443_v58, %v4312_v34  ;;  %vm4361_vm2 = vcmp.eq.f32.partialorder %v3981_v28, inf  ;;  %v4364_v52 = vand.u32 2147483648, %v3981_v28  ;;  %v4383_v59 = vpop.trf.xlu2 }
 0x527   : > { %v4317_v5 = vsel %vm4315_vm10, %v4316_v8, %v4314_v49  ;;  %vm4363_vm3 = vcmp.eq.f32.partialorder %v3981_v28, 0.0  ;;  %4432 = vst [vmem:[%s217_s10 + $0x10] sm:$0xff] %v4383_v59 }
 0x528   : > { %v4322_v37 = vsub.f32 1.5, %v4321_v3  ;;  %4409 = vxpose.xlu0.b32.cont [12/16] (narrow) %v4317_v5, 32 }
 0x529   : > { %v5896_v55 = vpop.eup %5895 }
 0x52a   : > { %v4323_v54 = vmul.f32 %v5894_v22, %v4322_v37  ;;  %v5898_v42 = vpop.eup %5897  ;;  %v4331_v13 = vmul.f32 %v5896_v55, %v3979_v0 }
 0x52b   : > { %v5900_v29 = vpop.eup %5899  ;;  %v4343_v4 = vmul.f32 %v5898_v42, %v3980_v20 }
 0x52c   : > { %v4324_v9 = vmul.f32 %v4323_v54, %v9454_v23  ;;  %v4332_v61 = vmul.f32 %v5896_v55, %v4331_v13  ;;  %v4355_v35 = vmul.f32 %v5900_v29, %v3981_v28 }
 0x52d   : > { %v4344_v58 = vmul.f32 %v5898_v42, %v4343_v4 }
 0x52e   : > { %v4326_v17 = vsel %vm4325_vm11, %v9454_v23, %v4324_v9  ;;  %v4333_v32 = vmul.f32 0.5, %v4332_v61  ;;  %v4356_v45 = vmul.f32 %v5900_v29, %v4355_v35  ;;  %v4384_v25 = vpop.trf.xlu2 }
 0x52f   : > { %v4329_v57 = vsel %vm4327_vm12, %v4328_v15, %v4326_v17  ;;  %v4345_v19 = vmul.f32 0.5, %v4344_v58  ;;  %4434 = vst [vmem:[%s217_s10 + $0x20] sm:$0xff] %v4384_v25 }
 0x530   : > { %4410 = vxpose.xlu0.b32.cont [13/16] (narrow) %v4329_v57, 32  ;;  %v4334_v10 = vsub.f32 1.5, %v4333_v32  ;;  %v4357_v41 = vmul.f32 0.5, %v4356_v45 }
 0x531   : > { %v4346_v62 = vsub.f32 1.5, %v4345_v19 }
 0x532   : > { %v4335_v60 = vmul.f32 %v5896_v55, %v4334_v10  ;;  %v4358_v23 = vsub.f32 1.5, %v4357_v41 }
 0x533   : > { %v4347_v43 = vmul.f32 %v5898_v42, %v4346_v62 }
 0x534   : > { %v4336_v48 = vmul.f32 %v4335_v60, %v3979_v0  ;;  %v4359_v11 = vmul.f32 %v5900_v29, %v4358_v23 }
 0x535   : > { %v4348_v53 = vmul.f32 %v4347_v43, %v3980_v20 }
 0x536   : > { %v4338_v6 = vsel %vm4337_vm14, %v3979_v0, %v4336_v48  ;;  %v4360_v39 = vmul.f32 %v4359_v11, %v3981_v28  ;;  %v4385_v47 = vpop.trf.xlu2 }
 0x537   : > { %v4341_v2 = vsel %vm4339_vm15, %v4340_v36, %v4338_v6  ;;  %v4350_v18 = vsel %vm4349_vm0, %v3980_v20, %v4348_v53  ;;  %4436 = vst [vmem:[%s217_s10 + $0x30] sm:$0xff] %v4385_v47 }
 0x538   : > { %4411 = vxpose.xlu0.b32.cont [14/16] (narrow) %v4341_v2, 32  ;;  %v4353_v14 = vsel %vm4351_vm1, %v4352_v1, %v4350_v18  ;;  %v4362_v63 = vsel %vm4361_vm2, %v3981_v28, %v4360_v39 }
 0x539   : > { %v4365_v26 = vsel %vm4363_vm3, %v4364_v52, %v4362_v63 }
 0x540   : > { %4412 = vxpose.xlu0.b32.cont [15/16] (narrow) %v4353_v14, 32 }
 0x548   : > { %4413 = vxpose.xlu0.b32.end [16/16] (narrow) %v4365_v26, 32 }
 0x574   : > { %v4414_v51 = vpop.trf.xlu0 }
 0x575   : > { %4431 = vst [vmem:[%s217_s10 + $0x8] sm:$0xff] %v4414_v51 }
 0x57c   : > { %v4415_v27 = vpop.trf.xlu0 }
 0x57d   : > { %4433 = vst [vmem:[%s217_s10 + $0x18] sm:$0xff] %v4415_v27 }
 0x584   : > { %v4416_v12 = vpop.trf.xlu0 }
 0x585   : > { %4435 = vst [vmem:[%s217_s10 + $0x28] sm:$0xff] %v4416_v12 }
 0x58c   : > { %v4417_v33 = vpop.trf.xlu0 }
 0x58d   : > { %4437 = vst [vmem:[%s217_s10 + $0x38] sm:$0xff] %v4417_v33 }
 0x58e   : > { %5959 = shalt.err (!%p5956_p3)
}
 0x58f   : > { %s6009_s8 = smov 256   ;;  %s6010_s9 = smov 16  }
 0x590   : > { %4661 = dma.vmem_to_hbm [thread:$0]  (%p6079_p5), %s4452_s23, 1024, %s4454_s25, %s4439_s26, %s6009_s8, %s6009_s8, %s6010_s9  }
 0x591 PF: > { %p4667_p4 = scmp.ge.s32.totalorder %s5994_s21, 2  ;;  %s4468_s10 = sand.u32 1, %s5982_s18  }
 0x592   : > { %s4469_s11 = scalar_lea.sflag [#allocation4], %s4468_s10 }
 0x593   : > { %p4664_p7 = pnand %p4667_p4, %p6083_p6 }
 0x595   : > { %p4665_p8 = pneg %p4664_p7 }
 0x597   : > { %5977 = dma.done.wait (%p4665_p8), %s4469_s11, 1024  }
 0x598   : > { %5979 = vsyncadd (%p4665_p8), %s4469_s11, 4294966272  ;;  %p15_p9 = scmp.ge.s32.totalorder %s6066_s24, 4   ;;  %s9729_s18 = smov %s5986_s19 }
 0x599   : > { %s9730_s19 = smov %s5990_s20  ;;  %s9731_s20 = smov %s6077_s27 }
 0x59a   : > { %s9732_s21 = smov %s6066_s24  ;;  %17 = sbr.rel (!%p15_p9) target bundleno = 3 (0x3), region = 78 }
 0x59f   :  { %4475 = vsyncpa [#allocation4], 1 }
 0x5a0   :  { %4477 = vsyncpa [#allocation4 + $0x1], 1 }

</bundles_post_ra>
